<compile_context>
chip_gen: v5e
topology: v5e:2x2
jax: 0.10.0
libtpu: 0.0.40
codegen_flags: <defaults>
</compile_context>

<pallas_src>
import math
from functools import partial

import jax
import jax.numpy as jnp
from jax.experimental import pallas as pl
from jax.experimental.pallas import tpu as pltpu


# ---------------------------------------------------------------------------
# Tile helpers (keep blocks big; respect the (8, 128) divisibility rule)
# ---------------------------------------------------------------------------
def _row_tile(m: int, target: int = 256) -> int:
    if m <= target:
        return m
    t = (target // 8) * 8
    while t > 8 and m % t != 0:
        t -= 8
    return t if m % t == 0 else m


def _col_tile(n: int, target: int = 512) -> int:
    if n <= target:
        return n
    t = (target // 128) * 128
    while t > 128 and n % t != 0:
        t -= 128
    return t if n % t == 0 else n


# ---------------------------------------------------------------------------
# Kernel 1: fused linear  (out = relu?(x @ W + b))
# ---------------------------------------------------------------------------
def _linear_kernel(x_ref, w_ref, b_ref, o_ref, *, relu: bool):
    acc = jnp.dot(x_ref[...], w_ref[...], preferred_element_type=jnp.float32)
    acc = acc + b_ref[...]
    if relu:
        acc = jnp.maximum(acc, 0.0)
    o_ref[...] = acc.astype(o_ref.dtype)


def pallas_linear(x2d, w, b=None, *, relu: bool = False):
    """x2d: (M, K); w: (K, N); b: (N,) or None.  Lane-dense N (multiple of 128)."""
    M, K = x2d.shape
    K2, N = w.shape
    assert K == K2
    if b is None:
        b = jnp.zeros((N,), dtype=x2d.dtype)
    b2 = b.reshape(1, N).astype(x2d.dtype)

    tm = _row_tile(M)
    tn = _col_tile(N)
    grid = (M // tm, N // tn)

    return pl.pallas_call(
        partial(_linear_kernel, relu=relu),
        out_shape=jax.ShapeDtypeStruct((M, N), x2d.dtype),
        grid=grid,
        in_specs=[
            pl.BlockSpec((tm, K), lambda i, j: (i, 0)),
            pl.BlockSpec((K, tn), lambda i, j: (0, j)),
            pl.BlockSpec((1, tn), lambda i, j: (0, j)),
        ],
        out_specs=pl.BlockSpec((tm, tn), lambda i, j: (i, j)),
        compiler_params=pltpu.CompilerParams(
            dimension_semantics=("parallel", "parallel")),
    )(x2d, w, b2)


# ---------------------------------------------------------------------------
# Kernel 2: multi-head scaled-dot-product attention (all heads per grid step)
# ---------------------------------------------------------------------------
def _mha_kernel(q_ref, k_ref, v_ref, m_ref, o_ref, *, scale: float):
    q = q_ref[0]                         # (H, S, dk)
    k = k_ref[0]                         # (H, S, dk)
    v = v_ref[0]                         # (H, S, dv)
    s = jnp.einsum("hqd,hkd->hqk", q, k,
                   preferred_element_type=jnp.float32) * scale
    s = s - jnp.max(s, axis=-1, keepdims=True)
    e = jnp.exp(s)
    p = e / jnp.sum(e, axis=-1, keepdims=True)
    out = jnp.einsum("hqk,hkd->hqd", p, v, preferred_element_type=jnp.float32)
    mask = m_ref[0]                      # (S, dv) float: 1.0 keep / 0.0 fill
    out = jnp.where(mask == 0.0, jnp.float32(1e-9), out)
    o_ref[0] = out.astype(o_ref.dtype)


def pallas_attention(qh, kh, vh, mask3, *, scale: float):
    """qh/kh/vh: (B, H, S, dk); mask3: (B, S, dk) float (1 = keep)."""
    B, H, S, dk = qh.shape
    return pl.pallas_call(
        partial(_mha_kernel, scale=scale),
        out_shape=jax.ShapeDtypeStruct((B, H, S, dk), qh.dtype),
        grid=(B,),
        in_specs=[
            pl.BlockSpec((1, H, S, dk), lambda b: (b, 0, 0, 0)),
            pl.BlockSpec((1, H, S, dk), lambda b: (b, 0, 0, 0)),
            pl.BlockSpec((1, H, S, dk), lambda b: (b, 0, 0, 0)),
            pl.BlockSpec((1, S, dk), lambda b: (b, 0, 0)),
        ],
        out_specs=pl.BlockSpec((1, H, S, dk), lambda b: (b, 0, 0, 0)),
        compiler_params=pltpu.CompilerParams(
            dimension_semantics=("parallel",)),
    )(qh, kh, vh, mask3)


# ---------------------------------------------------------------------------
# Kernel 3: fused residual add + Normalization
#   norm = alpha * (z - mean(z)) / (std(z, unbiased) - eps) + bias,  z = x + y
# ---------------------------------------------------------------------------
def _add_norm_kernel(x_ref, y_ref, a_ref, b_ref, o_ref, *, eps: float, d: int):
    z = x_ref[...] + y_ref[...]                             # (tm, D)
    mean = jnp.mean(z, axis=-1, keepdims=True)
    c = z - mean
    var = jnp.sum(c * c, axis=-1, keepdims=True) * (1.0 / (d - 1))  # torch.std (ddof=1)
    std = jnp.sqrt(var)
    o_ref[...] = (a_ref[...] * c / (std - eps) + b_ref[...]).astype(o_ref.dtype)


def pallas_add_norm(x2d, y2d, alpha, bias, *, eps: float = 1e-6):
    M, D = x2d.shape
    tm = _row_tile(M)
    return pl.pallas_call(
        partial(_add_norm_kernel, eps=eps, d=D),
        out_shape=jax.ShapeDtypeStruct((M, D), x2d.dtype),
        grid=(M // tm,),
        in_specs=[
            pl.BlockSpec((tm, D), lambda i: (i, 0)),
            pl.BlockSpec((tm, D), lambda i: (i, 0)),
            pl.BlockSpec((1, D), lambda i: (0, 0)),
            pl.BlockSpec((1, D), lambda i: (0, 0)),
        ],
        out_specs=pl.BlockSpec((tm, D), lambda i: (i, 0)),
        compiler_params=pltpu.CompilerParams(
            dimension_semantics=("parallel",)),
    )(x2d, y2d, alpha.reshape(1, D), bias.reshape(1, D))


# ---------------------------------------------------------------------------
# Module-level wrappers
# ---------------------------------------------------------------------------
def multi_head_attention(q, k, v, mask, p, *, heads: int, d_k: int):
    B, S, D = q.shape
    Q = pallas_linear(q.reshape(B * S, D), p["w_q"])
    K = pallas_linear(k.reshape(B * S, D), p["w_k"])
    V = pallas_linear(v.reshape(B * S, D), p["w_v"])

    def to_heads(x):   # (B*S, D) -> (B, H, S, dk)   (wrapper-side layout plumbing)
        return x.reshape(B, S, heads, d_k).transpose(0, 2, 1, 3)

    Qh, Kh, Vh = to_heads(Q), to_heads(K), to_heads(V)

    if mask is None:
        mask3 = jnp.ones((B, S, d_k), dtype=q.dtype)
    else:
        mask3 = jnp.broadcast_to(
            mask.astype(q.dtype).reshape(B, S, 1), (B, S, d_k))

    attn = pallas_attention(Qh, Kh, Vh, mask3, scale=1.0 / math.sqrt(d_k))
    out = attn.transpose(0, 2, 1, 3).reshape(B * S, D)
    out = pallas_linear(out, p["w_o"], p["b_o"])
    return out.reshape(B, S, D)


def feed_forward(x2d, p):
    h = pallas_linear(x2d, p["w1"], p["b1"], relu=True)
    return pallas_linear(h, p["w2"], p["b2"])


def decoder_block_forward(encoder_output, target, enc_mask, dec_mask, params):
    B, S, D = target.shape
    heads, d_k, eps = params["heads"], params["d_k"], params["eps"]
    alpha, bias = params["alpha"], params["bias"]
    attn_p = params["attn"]          # shared between self- and cross-attention (as in the spec)

    # 1) masked self-attention + residual + norm (residual fused into norm kernel)
    a1 = multi_head_attention(target, target, target, dec_mask, attn_p,
                              heads=heads, d_k=d_k)
    x1 = pallas_add_norm(target.reshape(B * S, D), a1.reshape(B * S, D),
                         alpha, bias, eps=eps)

    # 2) cross-attention + residual + norm
    a2 = multi_head_attention(x1.reshape(B, S, D), encoder_output, encoder_output,
                              enc_mask, attn_p, heads=heads, d_k=d_k)
    x2 = pallas_add_norm(x1, a2.reshape(B * S, D), alpha, bias, eps=eps)

    # 3) feed-forward + residual + norm
    ff = feed_forward(x2, params["ff"])
    x3 = pallas_add_norm(x2, ff, alpha, bias, eps=eps)
    return x3.reshape(B, S, D)


# ---------------------------------------------------------------------------
# Plain-JAX reference (mirrors the PyTorch forward semantics)
# ---------------------------------------------------------------------------
def reference_decoder_block(encoder_output, target, enc_mask, dec_mask, params):
    heads, d_k, eps = params["heads"], params["d_k"], params["eps"]
    alpha, bias = params["alpha"], params["bias"]
    ap, fp = params["attn"], params["ff"]

    def norm(x):
        mean = jnp.mean(x, axis=-1, keepdims=True)
        std = jnp.std(x, axis=-1, keepdims=True, ddof=1)
        return alpha * (x - mean) / (std - eps) + bias

    def mha(q, k, v, mask):
        B, S, D = q.shape
        def proj(x, w):
            return (x.reshape(B * S, D) @ w).reshape(B, S, heads, d_k).transpose(0, 2, 1, 3)
        Q, K, V = proj(q, ap["w_q"]), proj(k, ap["w_k"]), proj(v, ap["w_v"])
        s = jnp.einsum("bhqd,bhkd->bhqk", Q, K) / math.sqrt(d_k)
        p = jax.nn.softmax(s, axis=-1)
        out = jnp.einsum("bhqk,bhkd->bhqd", p, V)
        if mask is not None:
            m = mask.astype(out.dtype).reshape(B, 1, S, 1)
            out = jnp.where(m == 0, 1e-9, out)
        out = out.transpose(0, 2, 1, 3).reshape(B, S, D)
        return out @ ap["w_o"] + ap["b_o"]

    def ff(x):
        return jnp.maximum(x @ fp["w1"] + fp["b1"], 0.0) @ fp["w2"] + fp["b2"]

    x1 = norm(target + mha(target, target, target, dec_mask))
    x2 = norm(x1 + mha(x1, encoder_output, encoder_output, enc_mask))
    x3 = norm(x2 + ff(x2))
    return x3


# ---------------------------------------------------------------------------
if __name__ == "__main__":
    # Make kernel dots and the reference use the same (full-f32) matmul path.
    jax.config.update("jax_default_matmul_precision", "highest")

    d_model = 512          # hidden_size must equal MHA's d_model for the residuals
    heads = 8
    d_k = d_model // heads  # 64
    d_ff = 2048
    batch, seq = 2, 8

    key = jax.random.PRNGKey(0)
    ks = jax.random.split(key, 16)

    def init(k, shape, scale):
        return jax.random.normal(k, shape, dtype=jnp.float32) * scale

    sd = 1.0 / math.sqrt(d_model)
    params = dict(
        heads=heads, d_k=d_k, eps=1e-6,
        # Normalization params (spec inits to zeros; random here so the check is non-trivial)
        alpha=init(ks[9], (d_model,), 1.0),
        bias=init(ks[10], (d_model,), 0.02),
        attn=dict(
            w_q=init(ks[0], (d_model, d_model), sd),
            w_k=init(ks[1], (d_model, d_model), sd),
            w_v=init(ks[2], (d_model, d_model), sd),
            w_o=init(ks[3], (d_model, d_model), sd),
            b_o=init(ks[4], (d_model,), 0.02),
        ),
        ff=dict(
            w1=init(ks[5], (d_model, d_ff), sd),
            b1=init(ks[6], (d_ff,), 0.02),
            w2=init(ks[7], (d_ff, d_model), 1.0 / math.sqrt(d_ff)),
            b2=init(ks[8], (d_model,), 0.02),
        ),
    )

    encoder_output = jax.random.normal(ks[11], (batch, seq, d_model), dtype=jnp.float32)
    target = jax.random.normal(ks[12], (batch, seq, d_model), dtype=jnp.float32)
    dec_mask = jnp.ones((batch, seq), dtype=jnp.bool_)                     # keep all positions
    enc_mask = jnp.ones((batch, seq), dtype=jnp.bool_).at[:, -1].set(False)  # mask last position

    out = decoder_block_forward(encoder_output, target, enc_mask, dec_mask, params)
    out = jax.block_until_ready(out)

    ref = reference_decoder_block(encoder_output, target, enc_mask, dec_mask, params)
    ref = jax.block_until_ready(ref)

    assert out.shape == target.shape
    max_diff = jnp.max(jnp.abs(out - ref))
    assert jnp.allclose(out, ref, atol=5e-2, rtol=5e-2), f"mismatch vs reference, max|diff|={max_diff}"

    print("KERNEL_OK")
</pallas_src>

<mosaic_0001>
module attributes {stable_mosaic.version = 11 : i64} {
  func.func @_linear_kernel(%arg0: i32, %arg1: i32, %arg2: memref<16x512xf32, #tpu.memory_space<vmem>>, %arg3: memref<512x512xf32, #tpu.memory_space<vmem>>, %arg4: memref<1x512xf32, #tpu.memory_space<vmem>>, %arg5: memref<16x512xf32, #tpu.memory_space<vmem>>) attributes {dimension_semantics = [#tpu.dimension_semantics<parallel>, #tpu.dimension_semantics<parallel>], iteration_bounds = array<i64: 1, 1>, scalar_prefetch = 0 : i64, scratch_operands = 0 : i64, tpu.core_type = #tpu.core_type<tc>, window_params = [{transform_indices = @transform_0, window_bounds = array<i64: 16, 512>}, {transform_indices = @transform_1, window_bounds = array<i64: 512, 512>}, {transform_indices = @transform_2, window_bounds = array<i64: 1, 512>}, {transform_indices = @transform_3, window_bounds = array<i64: 16, 512>}]} {
    %c0 = arith.constant 0 : index
    %c0_0 = arith.constant 0 : index
    %0 = vector.load %arg2[%c0, %c0_0] : memref<16x512xf32, #tpu.memory_space<vmem>>, vector<16x512xf32>
    %c0_1 = arith.constant 0 : index
    %c0_2 = arith.constant 0 : index
    %1 = vector.load %arg3[%c0_1, %c0_2] : memref<512x512xf32, #tpu.memory_space<vmem>>, vector<512x512xf32>
    %cst = arith.constant dense<0.000000e+00> : vector<16x512xf32>
    %2 = tpu.matmul %0, %1, %cst {dimension_numbers = #tpu.dot_dimension_numbers<[1], [0], [0], [1], [0, 0, 1, 1], [], []>, precision = #tpu.contract_precision<fp32>} : vector<16x512xf32>, vector<512x512xf32>, vector<16x512xf32> -> vector<16x512xf32>
    %c0_3 = arith.constant 0 : index
    %c0_4 = arith.constant 0 : index
    %3 = vector.load %arg4[%c0_3, %c0_4] : memref<1x512xf32, #tpu.memory_space<vmem>>, vector<1x512xf32>
    %4 = vector.broadcast %3 : vector<1x512xf32> to vector<16x512xf32>
    %5 = arith.addf %2, %4 : vector<16x512xf32>
    %c0_5 = arith.constant 0 : index
    %c0_6 = arith.constant 0 : index
    %6 = vector.load %arg5[%c0_5, %c0_6] : memref<16x512xf32, #tpu.memory_space<vmem>>, vector<16x512xf32>
    tpu.vector_store %arg5[%c0_5, %c0_6], %5 {strides = array<i32>} : memref<16x512xf32, #tpu.memory_space<vmem>>, vector<16x512xf32>,
    return
  }
  func.func @transform_0(%arg0: i32, %arg1: i32) -> (i32, i32) {
    %c0_i32 = arith.constant 0 : i32
    %c0_i32_0 = arith.constant 0 : i32
    return %arg0, %c0_i32 : i32, i32
  }
  func.func @transform_1(%arg0: i32, %arg1: i32) -> (i32, i32) {
    %c0_i32 = arith.constant 0 : i32
    %c0_i32_0 = arith.constant 0 : i32
    return %c0_i32, %arg1 : i32, i32
  }
  func.func @transform_2(%arg0: i32, %arg1: i32) -> (i32, i32) {
    %c0_i32 = arith.constant 0 : i32
    %c0_i32_0 = arith.constant 0 : i32
    return %c0_i32, %arg1 : i32, i32
  }
  func.func @transform_3(%arg0: i32, %arg1: i32) -> (i32, i32) {
    %c0_i32 = arith.constant 0 : i32
    return %arg0, %arg1 : i32, i32
  }
}

</mosaic_0001>

<bundles_post_ra>
// kernel: tpu_custom_call.1
= control target key start
LH: loop header
LB: loop body
LE: loop exit
PB: predicated region body
PF: predicated region fallthrough
CT: control target
= control target key end

     0   :  { %8 = vsyncpa [#allocation3], 0  ;;  %s10870_s0 = inlined_call_operand.hbm [shape: f32[16,512], index: 0, kind: input, shape index: {}]   ;;  %s10871_s1 = inlined_call_operand.hbm [shape: f32[512,512], index: 1, kind: input, shape index: {}]   ;;  %s10872_s2 = inlined_call_operand.hbm [shape: f32[1,512], index: 2, kind: input, shape index: {}]   ;;  %s10873_s3 = inlined_call_operand.hbm [shape: f32[16,512], index: 3, kind: output, shape index: {}]  }
   0x1   :  { %9 = vsyncpa [#allocation6], 0 }
   0x2   :  { %10 = vsyncpa [#allocation4], 0  ;;  %s28_s14 = sshll.u32 %s10871_s1, 4  ;;  %s6425_s15 = smov [#allocation5]   ;;  %s29_s14 = int_to_ptr.hbm [resolvable:$true] %s28_s14 }
   0x3   :  { %s30_s16 = sshll.u32 %s6425_s15, 4  ;;  %s15_s19 = sshll.u32 %s10870_s0, 4  ;;  %s31_s16 = int_to_ptr.vmem [resolvable:$true] %s30_s16  ;;  %s16_s19 = int_to_ptr.hbm [resolvable:$true] %s15_s19 }
   0x4   :  { %s6426_s20 = smov 512   ;;  %s6427_s21 = smov 32  }
   0x5   :  { %36 = dma.hbm_to_vmem [thread:$0]  %s29_s14, 32768, %s31_s16, [#allocation6], %s6426_s20, %s6426_s20, %s6427_s21  }
   0x6   :  { %s6428_s22 = smov [#allocation2]   ;;  %s42_s1 = sshll.u32 %s10872_s2, 4  ;;  %s43_s1 = int_to_ptr.hbm [resolvable:$true] %s42_s1 }
   0x7   :  { %s17_s23 = sshll.u32 %s6428_s22, 4  ;;  %s6429_s0 = smov [#allocation7]   ;;  %s18_s23 = int_to_ptr.vmem [resolvable:$true] %s17_s23 }
   0x8   :  { %23 = dma.hbm_to_vmem [thread:$0]  %s16_s19, 1024, %s18_s23, [#allocation3], %s6426_s20, %s6426_s20, %s6427_s21  }
   0x9   :  { %s44_s26 = sshll.u32 %s6429_s0, 4  ;;  %s45_s26 = int_to_ptr.vmem [resolvable:$true] %s44_s26 }
   0xa   :  { %47 = dma.hbm_to_vmem [thread:$0]  %s43_s1, 64, %s45_s26, [#allocation6]  }
   0xb   :  { %6419 = dma.done.wait [#allocation3], 1024  }
   0xc   :  { %6420 = vsyncadd [#allocation3], 4294966272 }
   0xd   :  { %6421 = dma.done.wait [#allocation6], 32832  }
   0xe   :  { %6422 = vsyncadd [#allocation6], 4294934464  ;;  %v128_v0 = vld [vmem:[#allocation5 + $0x1e0] sm:$0xff]  ;;  %s6430_s2 = smov [#allocation8]   ;;  %s6300_s30 = sshll.u32 %s10873_s3, 4  ;;  %s6301_s30 = int_to_ptr.hbm [resolvable:$true] %s6300_s30 }
   0xf   :  { %v124_v1 = vld [vmem:[#allocation5 + $0x1c0] sm:$0xff]  ;;  %v6466_v3 = vand.u32 4294901760, %v128_v0  ;;  %s6298_s27 = sshll.u32 %s6430_s2, 4  ;;  %s6299_s27 = int_to_ptr.vmem [resolvable:$true] %s6298_s27 }
  0x10   :  { %v120_v2 = vld [vmem:[#allocation5 + $0x1a0] sm:$0xff]  ;;  %v6468_v4 = vand.u32 4294901760, %v124_v1 }
  0x11   :  { %v6470_v5 = vand.u32 4294901760, %v120_v2  ;;  %v116_v6 = vld [vmem:[#allocation5 + $0x180] sm:$0xff]  ;;  %335 = vmatpush.msra.mxu0 %v6466_v3  ;;  %v6480_v14 = vsub.f32 %v128_v0, %v6466_v3  ;;  %548 = vmatpush.msra.mxu3 %v6466_v3 }
  0x12   :  { %v112_v7 = vld [vmem:[#allocation5 + $0x160] sm:$0xff]  ;;  %v6472_v9 = vand.u32 4294901760, %v116_v6  ;;  %v6483_v15 = vsub.f32 %v124_v1, %v6468_v4 }
  0x13   :  { %v108_v8 = vld [vmem:[#allocation5 + $0x140] sm:$0xff]  ;;  %v6474_v10 = vand.u32 4294901760, %v112_v7  ;;  %v6487_v16 = vsub.f32 %v120_v2, %v6470_v5  ;;  %337 = vmatpush.msra.mxu0 %v6468_v4  ;;  %490 = vmatpush.msra.mxu2 %v6480_v14  ;;  %v385_v22 = vand.u32 4294901760, %v6480_v14 }
  0x14   :  { %v6476_v11 = vand.u32 4294901760, %v108_v8  ;;  %v104_v12 = vld [vmem:[#allocation5 + $0x120] sm:$0xff]  ;;  %v6492_v19 = vsub.f32 %v116_v6, %v6472_v9  ;;  %v10889_v23 = vand.u32 4294901760, %v6483_v15  ;;  %550 = vmatpush.msra.mxu3 %v6468_v4 }
  0x15   :  { %v100_v13 = vld [vmem:[#allocation5 + $0x100] sm:$0xff]  ;;  %v6489_v17 = vand.u32 4294901760, %v104_v12  ;;  %v6495_v20 = vsub.f32 %v112_v7, %v6474_v10  ;;  %v10887_v24 = vand.u32 4294901760, %v6487_v16  ;;  %339 = vmatpush.msra.mxu0 %v6470_v5  ;;  %493 = vmatpush.msra.mxu2 %v6483_v15  ;;  %v386_v30 = vsub.f32 %v6480_v14, %v385_v22 }
  0x16   :  { %v96_v18 = vld [vmem:[#allocation5 + $0xe0] sm:$0xff]  ;;  %v6497_v21 = vand.u32 4294901760, %v100_v13  ;;  %v6505_v25 = vsub.f32 %v108_v8, %v6476_v11  ;;  %v10886_v27 = vand.u32 4294901760, %v6492_v19  ;;  %v392_v31 = vsub.f32 %v6483_v15, %v10889_v23  ;;  %552 = vmatpush.msra.mxu3 %v6470_v5 }
  0x17   :  { %v92_v26 = vld [vmem:[#allocation5 + $0xc0] sm:$0xff]  ;;  %v6509_v28 = vand.u32 4294901760, %v96_v18  ;;  %v6512_v29 = vsub.f32 %v104_v12, %v6489_v17  ;;  %v398_v32 = vsub.f32 %v6487_v16, %v10887_v24  ;;  %v10883_v33 = vand.u32 4294901760, %v6495_v20  ;;  %341 = vmatpush.msra.mxu0 %v6472_v9  ;;  %496 = vmatpush.msra.mxu2 %v6487_v16 }
  0x18   :  { %v6527_v34 = vand.u32 4294901760, %v92_v26  ;;  %v6530_v35 = vsub.f32 %v100_v13, %v6497_v21  ;;  %v88_v36 = vld [vmem:[#allocation5 + $0xa0] sm:$0xff]  ;;  %v387_v37 = vand.u32 4294901760, %v386_v30  ;;  %v393_v38 = vand.u32 4294901760, %v392_v31  ;;  %554 = vmatpush.msra.mxu3 %v6472_v9 }
  0x19   :  { %v404_v39 = vsub.f32 %v6492_v19, %v10886_v27  ;;  %v10882_v40 = vand.u32 4294901760, %v6505_v25  ;;  %v6540_v41 = vsub.f32 %v96_v18, %v6509_v28  ;;  %v84_v42 = vld [vmem:[#allocation5 + $0x80] sm:$0xff]  ;;  %343 = vmatpush.msra.mxu0 %v6474_v10  ;;  %v399_v43 = vand.u32 4294901760, %v398_v32  ;;  %499 = vmatpush.msra.mxu2 %v6492_v19 }
  0x1a   :  { %388 = vmatpush.msra.mxu1 %v387_v37  ;;  %v410_v44 = vsub.f32 %v6495_v20, %v10883_v33  ;;  %v6546_v45 = vand.u32 4294901760, %v88_v36  ;;  %v10880_v46 = vand.u32 4294901760, %v6512_v29  ;;  %556 = vmatpush.msra.mxu3 %v6474_v10  ;;  %v10879_v47 = vand.u32 4294901760, %v6530_v35  ;;  %v80_v48 = vld [vmem:[#allocation5 + $0x60] sm:$0xff] }
  0x1b   :  { %345 = vmatpush.msra.mxu0 %v6476_v11  ;;  %v405_v49 = vand.u32 4294901760, %v404_v39  ;;  %v416_v50 = vsub.f32 %v6505_v25, %v10882_v40  ;;  %v6556_v51 = vand.u32 4294901760, %v84_v42  ;;  %v6559_v52 = vsub.f32 %v92_v26, %v6527_v34  ;;  %502 = vmatpush.msra.mxu2 %v6495_v20  ;;  %v76_v54 = vld [vmem:[#allocation5 + $0x40] sm:$0xff] }
  0x1c   :  { %394 = vmatpush.msra.mxu1 %v393_v38  ;;  %558 = vmatpush.msra.mxu3 %v6476_v11  ;;  %v10877_v53 = vand.u32 4294901760, %v6540_v41  ;;  %v411_v55 = vand.u32 4294901760, %v410_v44  ;;  %v422_v56 = vsub.f32 %v6512_v29, %v10880_v46  ;;  %v6568_v57 = vand.u32 4294901760, %v80_v48  ;;  %v192_v59 = vld [vmem:[#allocation5 + $0x3e0] sm:$0xff] }
  0x1d   :  { %347 = vmatpush.msra.mxu0 %v6489_v17  ;;  %v6571_v58 = vsub.f32 %v88_v36, %v6546_v45  ;;  %505 = vmatpush.msra.mxu2 %v6505_v25  ;;  %v428_v60 = vsub.f32 %v6530_v35, %v10879_v47  ;;  %v72_v61 = vld [vmem:[#allocation5 + $0x20] sm:$0xff]  ;;  %v417_v62 = vand.u32 4294901760, %v416_v50  ;;  %v6579_v63 = vand.u32 4294901760, %v76_v54 }
  0x1e   :  { %400 = vmatpush.msra.mxu1 %v399_v43  ;;  %560 = vmatpush.msra.mxu3 %v6489_v17  ;;  %v10876_v0 = vand.u32 4294901760, %v6559_v52  ;;  %v6583_v1 = vsub.f32 %v84_v42, %v6556_v51  ;;  %v188_v2 = vld [vmem:[#allocation5 + $0x3c0] sm:$0xff]  ;;  %v434_v6 = vsub.f32 %v6540_v41, %v10877_v53  ;;  %v6590_v8 = vand.u32 4294901760, %v192_v59 }
  0x1f   :  { %349 = vmatpush.msra.mxu0 %v6497_v21  ;;  %508 = vmatpush.msra.mxu2 %v6512_v29  ;;  %v68_v7 = vld [vmem:[#allocation5] sm:$0xff]  ;;  %v423_v12 = vand.u32 4294901760, %v422_v56  ;;  %v6593_v13 = vand.u32 4294901760, %v72_v61  ;;  %v10874_v18 = vand.u32 4294901760, %v6571_v58  ;;  %v6597_v26 = vsub.f32 %v80_v48, %v6568_v57 }
  0x20   :  { %406 = vmatpush.msra.mxu1 %v405_v49  ;;  %562 = vmatpush.msra.mxu3 %v6497_v21  ;;  %v429_v30 = vand.u32 4294901760, %v428_v60  ;;  %v6601_v31 = vand.u32 4294901760, %v188_v2  ;;  %v184_v32 = vld [vmem:[#allocation5 + $0x3a0] sm:$0xff]  ;;  %v440_v36 = vsub.f32 %v6559_v52, %v10876_v0  ;;  %v6607_v37 = vand.u32 4294901760, %v68_v7 }
  0x21   :  { %351 = vmatpush.msra.mxu0 %v6509_v28  ;;  %511 = vmatpush.msra.mxu2 %v6530_v35  ;;  %v10875_v38 = vand.u32 4294901760, %v6583_v1  ;;  %v6611_v39 = vsub.f32 %v76_v54, %v6579_v63  ;;  %v180_v42 = vld [vmem:[#allocation5 + $0x380] sm:$0xff]  ;;  %v435_v43 = vand.u32 4294901760, %v434_v6  ;;  %v6616_v44 = vsub.f32 %v192_v59, %v6590_v8 }
  0x22   :  { %412 = vmatpush.msra.mxu1 %v411_v55  ;;  %564 = vmatpush.msra.mxu3 %v6509_v28  ;;  %11093 = vst [vmem:[#allocation12_spill] sm:$0xff] %v6607_v37  ;;  %v446_v48 = vsub.f32 %v6571_v58, %v10874_v18  ;;  %v10878_v49 = vand.u32 4294901760, %v6597_v26  ;;  %v6624_v50 = vsub.f32 %v72_v61, %v6593_v13  ;;  %v6626_v54 = vand.u32 4294901760, %v184_v32  ;;  %v176_v55 = vld [vmem:[#allocation5 + $0x360] sm:$0xff] }
  0x23   :  { %353 = vmatpush.msra.mxu0 %v6527_v34  ;;  %514 = vmatpush.msra.mxu2 %v6540_v41  ;;  %v6631_v56 = vsub.f32 %v188_v2, %v6601_v31  ;;  %v6633_v59 = vand.u32 4294901760, %v180_v42  ;;  %v441_v60 = vand.u32 4294901760, %v440_v36  ;;  %v452_v61 = vsub.f32 %v6583_v1, %v10875_v38  ;;  %v172_v18 = vld [vmem:[#allocation5 + $0x340] sm:$0xff] }
  0x24   :  { %418 = vmatpush.msra.mxu1 %v417_v62  ;;  %566 = vmatpush.msra.mxu3 %v6527_v34  ;;  %v10881_v62 = vand.u32 4294901760, %v6611_v39  ;;  %v6641_v6 = vsub.f32 %v68_v7, %v6607_v37  ;;  %v10884_v2 = vand.u32 4294901760, %v6616_v44  ;;  %v458_v36 = vsub.f32 %v6597_v26, %v10878_v49  ;;  %v156_v23 = vld [vmem:[#allocation5 + $0x2c0] sm:$0xff] }
  0x25   :  { %355 = vmatpush.msra.mxu0 %v6546_v45  ;;  %517 = vmatpush.msra.mxu2 %v6559_v52  ;;  %v10885_v7 = vand.u32 4294901760, %v6624_v50  ;;  %v6654_v38 = vsub.f32 %v184_v32, %v6626_v54  ;;  %v10888_v0 = vand.u32 4294901760, %v6631_v56  ;;  %v6660_v53 = vsub.f32 %v180_v42, %v6633_v59 }
  0x26   :  { %424 = vmatpush.msra.mxu1 %v423_v12  ;;  %568 = vmatpush.msra.mxu3 %v6546_v45  ;;  %v6646_v12 = vand.u32 4294901760, %v176_v55  ;;  %v464_v49 = vsub.f32 %v6611_v39, %v10881_v62  ;;  %v10890_v32 = vand.u32 4294901760, %v6641_v6  ;;  %v6667_v47 = vand.u32 4294901760, %v172_v18 }
  0x27   :  { %357 = vmatpush.msra.mxu0 %v6556_v51  ;;  %520 = vmatpush.msra.mxu2 %v6571_v58  ;;  %v758_v42 = vsub.f32 %v6616_v44, %v10884_v2  ;;  %v470_v62 = vsub.f32 %v6624_v50, %v10885_v7  ;;  %v10891_v40 = vand.u32 4294901760, %v6654_v38  ;;  %v11094_v14 = vand.u32 4294901760, %v6483_v15 }
  0x28   :  { %430 = vmatpush.msra.mxu1 %v429_v30  ;;  %570 = vmatpush.msra.mxu3 %v6556_v51  ;;  %v447_v30 = vand.u32 4294901760, %v446_v48  ;;  %v453_v48 = vand.u32 4294901760, %v452_v61  ;;  %v6675_v46 = vsub.f32 %v176_v55, %v6646_v12  ;;  %v459_v61 = vand.u32 4294901760, %v458_v36 }
  0x29   :  { %359 = vmatpush.msra.mxu0 %v6568_v57  ;;  %523 = vmatpush.msra.mxu2 %v6583_v1  ;;  %v764_v55 = vsub.f32 %v6631_v56, %v10888_v0  ;;  %v465_v36 = vand.u32 4294901760, %v464_v49  ;;  %v476_v7 = vsub.f32 %v6641_v6, %v10890_v32  ;;  %v6695_v27 = vsub.f32 %v172_v18, %v6667_v47 }
  0x2a   :  { %436 = vmatpush.msra.mxu1 %v435_v43  ;;  %572 = vmatpush.msra.mxu3 %v6568_v57  ;;  %v168_v43 = vld [vmem:[#allocation5 + $0x320] sm:$0xff]  ;;  %v759_v0 = vand.u32 4294901760, %v758_v42  ;;  %v471_v49 = vand.u32 4294901760, %v470_v62  ;;  %v770_v18 = vsub.f32 %v6654_v38, %v10891_v40  ;;  %v11095_v42 = vand.u32 4294901760, %v6660_v53 }
  0x2b   :  { %361 = vmatpush.msra.mxu0 %v6579_v63  ;;  %526 = vmatpush.msra.mxu2 %v6597_v26  ;;  %v6682_v33 = vand.u32 4294901760, %v168_v43  ;;  %v477_v40 = vand.u32 4294901760, %v476_v7  ;;  %v11096_v15 = vand.u32 4294901760, %v6487_v16  ;;  %v11098_v16 = vand.u32 4294901760, %v6492_v19 }
  0x2c   :  { %442 = vmatpush.msra.mxu1 %v441_v60  ;;  %574 = vmatpush.msra.mxu3 %v6579_v63  ;;  %v164_v60 = vld [vmem:[#allocation5 + $0x300] sm:$0xff]  ;;  %v776_v62 = vsub.f32 %v6660_v53, %v11095_v42  ;;  %v771_v7 = vand.u32 4294901760, %v770_v18  ;;  %v11100_v19 = vand.u32 4294901760, %v6495_v20  ;;  %v11103_v20 = vand.u32 4294901760, %v6505_v25 }
  0x2d   :  { %363 = vmatpush.msra.mxu0 %v6593_v13  ;;  %529 = vmatpush.msra.mxu2 %v6611_v39  ;;  %v6697_v24 = vand.u32 4294901760, %v164_v60  ;;  %v148_v42 = vld [vmem:[#allocation5 + $0x280] sm:$0xff] }
  0x2e   :  { %448 = vmatpush.msra.mxu1 %v447_v30  ;;  %576 = vmatpush.msra.mxu3 %v6593_v13  ;;  %v160_v30 = vld [vmem:[#allocation5 + $0x2e0] sm:$0xff] }
  0x2f   :  { %365 = vmatpush.msra.mxu0 %v6607_v37  ;;  %532 = vmatpush.msra.mxu2 %v6624_v50  ;;  %v6710_v32 = vand.u32 4294901760, %v160_v30  ;;  %v6721_v2 = vsub.f32 %v164_v60, %v6697_v24 }
  0x30   :  { %454 = vmatpush.msra.mxu1 %v453_v48  ;;  %578 = vmatpush.msra.mxu3 %v6607_v37  ;;  %v6708_v48 = vsub.f32 %v168_v43, %v6682_v33  ;;  %v6723_v37 = vand.u32 4294901760, %v156_v23 }
  0x31   :  { %595 = vmatpush.msrb.mxu0 %v385_v22  ;;  %535 = vmatpush.msra.mxu2 %v6641_v6  ;;  %v765_v22 = vand.u32 4294901760, %v764_v55  ;;  %v11097_v55 = vand.u32 4294901760, %v6675_v46  ;;  %v6733_v60 = vsub.f32 %v160_v30, %v6710_v32 }
  0x32   :  { %460 = vmatpush.msra.mxu1 %v459_v61  ;;  %v152_v61 = vld [vmem:[#allocation5 + $0x2a0] sm:$0xff]  ;;  %760 = vmatpush.msrb.mxu3 %v759_v0  ;;  %v777_v0 = vand.u32 4294901760, %v776_v62  ;;  %v6745_v30 = vsub.f32 %v156_v23, %v6723_v37 }
  0x33   :  { %599 = vmatpush.msrb.mxu0 %v11094_v14  ;;  %707 = vmatpush.msrb.mxu2 %v6590_v8  ;;  %v782_v14 = vsub.f32 %v6675_v46, %v11097_v55  ;;  %v6735_v43 = vand.u32 4294901760, %v152_v61  ;;  %v144_v55 = vld [vmem:[#allocation5 + $0x260] sm:$0xff] }
  0x34   :  { %466 = vmatpush.msra.mxu1 %v465_v36  ;;  %766 = vmatpush.msrb.mxu3 %v765_v22  ;;  %v6747_v36 = vand.u32 4294901760, %v148_v42 }
  0x35   :  { %603 = vmatpush.msrb.mxu0 %v11096_v15  ;;  %709 = vmatpush.msrb.mxu2 %v6601_v31  ;;  %v60_v15 = vld [vmem:[#allocation2] sm:$0xff]  ;;  %v783_v22 = vand.u32 4294901760, %v782_v14  ;;  %v6758_v23 = vsub.f32 %v152_v61, %v6735_v43  ;;  %v11104_v14 = vand.u32 4294901760, %v6721_v2 }
  0x36   :  { %472 = vmatpush.msra.mxu1 %v471_v49  ;;  %v11099_v49 = vand.u32 4294901760, %v6695_v27  ;;  %772 = vmatpush.msrb.mxu3 %v771_v7  ;;  %v6771_v61 = vsub.f32 %v148_v42, %v6747_v36 }
  0x37   :  { %607 = vmatpush.msrb.mxu0 %v11098_v16  ;;  %711 = vmatpush.msrb.mxu2 %v6626_v54  ;;  %v800_v7 = vsub.f32 %v6721_v2, %v11104_v14  ;;  %v11105_v16 = vand.u32 4294901760, %v6512_v29  ;;  %v136_v14 = vld [vmem:[#allocation5 + $0x220] sm:$0xff]  ;;  %v11108_v29 = vand.u32 4294901760, %v6530_v35 }
  0x38   :  { %478 = vmatpush.msra.mxu1 %v477_v40  ;;  %v788_v18 = vsub.f32 %v6695_v27, %v11099_v49  ;;  %v11101_v40 = vand.u32 4294901760, %v6708_v48  ;;  %v6760_v49 = vand.u32 4294901760, %v60_v15  ;;  %778 = vmatpush.msrb.mxu3 %v777_v0  ;;  %v11106_v0 = vand.u32 4294901760, %v6733_v60 }
  0x39   :  { %611 = vmatpush.msrb.mxu0 %v11100_v19  ;;  %713 = vmatpush.msrb.mxu2 %v6633_v59  ;;  %v811_v19 = vand.u32 4294901760, %v6745_v30 }
  0x3a   :  { %666 = vmatpush.msrb.mxu1 %v6466_v3  ;;  %v794_v62 = vsub.f32 %v6708_v48, %v11101_v40  ;;  %11102 = vst [vmem:[#allocation13_spill] sm:$0xff] %v6760_v49  ;;  %v789_v3 = vand.u32 4294901760, %v788_v18  ;;  %v140_v40 = vld [vmem:[#allocation5 + $0x240] sm:$0xff]  ;;  %784 = vmatpush.msrb.mxu3 %v783_v22  ;;  %v806_v18 = vsub.f32 %v6733_v60, %v11106_v0  ;;  %v801_v22 = vand.u32 4294901760, %v800_v7 }
  0x3b   :  { %615 = vmatpush.msrb.mxu0 %v11103_v20  ;;  %715 = vmatpush.msrb.mxu2 %v6646_v12  ;;  %v10893_v20 = vand.u32 4294901760, %v6758_v23  ;;  %v6784_v42 = vsub.f32 %v60_v15, %v6760_v49  ;;  %v11109_v15 = vand.u32 4294901760, %v6540_v41  ;;  %v132_v0 = vld [vmem:[#allocation5 + $0x200] sm:$0xff] }
  0x3c   :  { %668 = vmatpush.msrb.mxu1 %v6468_v4  ;;  %v6776_v4 = vand.u32 4294901760, %v144_v55  ;;  %v795_v25 = vand.u32 4294901760, %v794_v62  ;;  %790 = vmatpush.msrb.mxu3 %v789_v3  ;;  %v812_v62 = vsub.f32 %v6745_v30, %v811_v19  ;;  %v807_v3 = vand.u32 4294901760, %v806_v18 }
  0x3d   :  { %619 = vmatpush.msrb.mxu0 %v11105_v16  ;;  %717 = vmatpush.msrb.mxu2 %v6667_v47  ;;  %11107 = vst [vmem:[#allocation14_spill] sm:$0xff] %v6784_v42  ;;  %v823_v16 = vand.u32 4294901760, %v6771_v61  ;;  %v818_v7 = vsub.f32 %v6758_v23, %v10893_v20  ;;  %v6809_v41 = vand.u32 4294901760, %v6784_v42 }
  0x3e   :  { %670 = vmatpush.msrb.mxu1 %v6470_v5  ;;  %v6789_v5 = vand.u32 4294901760, %v140_v40  ;;  %v6800_v35 = vsub.f32 %v144_v55, %v6776_v4  ;;  %796 = vmatpush.msrb.mxu3 %v795_v25  ;;  %v813_v25 = vand.u32 4294901760, %v812_v62 }
  0x3f   :  { %623 = vmatpush.msrb.mxu0 %v11108_v29  ;;  %719 = vmatpush.msrb.mxu2 %v6682_v33  ;;  %v64_v29 = vld [vmem:[#allocation2 + $0x20] sm:$0xff]  ;;  %11110 = vst [vmem:[#allocation15_spill] sm:$0xff] %v6809_v41  ;;  %v824_v18 = vsub.f32 %v6771_v61, %v823_v16  ;;  %v369_v62 = vsub.f32 %v6784_v42, %v6809_v41 }
  0x40   :  { %672 = vmatpush.msrb.mxu1 %v6472_v9  ;;  %v6802_v9 = vand.u32 4294901760, %v136_v14  ;;  %v6815_v55 = vsub.f32 %v140_v40, %v6789_v5  ;;  %802 = vmatpush.msrb.mxu3 %v801_v22  ;;  %v6823_v20 = vand.u32 4294901760, %v64_v29  ;;  %v819_v22 = vand.u32 4294901760, %v818_v7 }
  0x41   :  { %627 = vmatpush.msrb.mxu0 %v11109_v15  ;;  %721 = vmatpush.msrb.mxu2 %v6697_v24  ;;  %v6821_v15 = vand.u32 4294901760, %v132_v0  ;;  %v11116_v7 = vand.u32 4294901760, %v6597_v26 }
  0x42   :  { %674 = vmatpush.msrb.mxu1 %v6474_v10  ;;  %v11111_v10 = vand.u32 4294901760, %v6559_v52  ;;  %11112 = vst [vmem:[#allocation16_spill] sm:$0xff] %v6823_v20  ;;  %v11113_v52 = vand.u32 4294901760, %v6571_v58  ;;  %v6830_v40 = vsub.f32 %v136_v14, %v6802_v9  ;;  %808 = vmatpush.msrb.mxu3 %v807_v3  ;;  %v835_v58 = vand.u32 4294901760, %v6815_v55 }
  0x43   :  { %723 = vmatpush.msrb.mxu2 %v6710_v32  ;;  %v6841_v14 = vsub.f32 %v64_v29, %v6823_v20  ;;  %v6844_v3 = vsub.f32 %v132_v0, %v6821_v15  ;;  %v6854_v29 = vand.u32 4294901760, %v369_v62  ;;  %v11118_v0 = vand.u32 4294901760, %v6611_v39  ;;  %582 = vmatmul.f32.vlgmr.msra.gmra.mxu3 %v6809_v41 }
  0x44   :  { %631 = vmatpush.msrb.mxu0 %v11111_v10  ;;  %676 = vmatpush.msrb.mxu1 %v6476_v11  ;;  %v829_v11 = vand.u32 4294901760, %v6800_v35  ;;  %v11114_v10 = vand.u32 4294901760, %v6583_v1  ;;  %v841_v1 = vand.u32 4294901760, %v6830_v40  ;;  %v11122_v62 = vand.u32 4294901760, %v6641_v6 }
  0x45   :  { %725 = vmatpush.msrb.mxu2 %v6723_v37  ;;  %814 = vmatpush.msrb.mxu3 %v813_v25  ;;  %11115 = vst [vmem:[#allocation17_spill] sm:$0xff] %v6841_v14  ;;  %v847_v26 = vand.u32 4294901760, %v6844_v3  ;;  %v6865_v25 = vand.u32 4294901760, %v6841_v14 }
  0x46   :  { %635 = vmatpush.msrb.mxu0 %v11113_v52  ;;  %678 = vmatpush.msrb.mxu1 %v6489_v17  ;;  %v825_v17 = vand.u32 4294901760, %v824_v18  ;;  %v61_v52 = vld [vmem:[#allocation2 + $0x8] sm:$0xff]  ;;  %11117 = vst [vmem:[#allocation18_spill] sm:$0xff] %v6854_v29  ;;  %v842_v39 = vsub.f32 %v6830_v40, %v841_v1 }
  0x47   :  { %727 = vmatpush.msrb.mxu2 %v6735_v43  ;;  %820 = vmatpush.msrb.mxu3 %v819_v22  ;;  %11119 = vst [vmem:[#allocation19_spill] sm:$0xff] %v6865_v25  ;;  %v6867_v18 = vand.u32 4294901760, %v61_v52  ;;  %v11121_v22 = vand.u32 4294901760, %v6624_v50  ;;  %v377_v50 = vsub.f32 %v6841_v14, %v6865_v25 }
  0x48   :  { %639 = vmatpush.msrb.mxu0 %v11114_v10  ;;  %680 = vmatpush.msrb.mxu1 %v6497_v21  ;;  %v830_v21 = vsub.f32 %v6800_v35, %v829_v11  ;;  %v843_v6 = vand.u32 4294901760, %v842_v39  ;;  %v228_v39 = vld [vmem:[#allocation5 + $0x500] sm:$0xff] }
  0x49   :  { %729 = vmatpush.msrb.mxu2 %v6747_v36  ;;  %826 = vmatpush.msrb.mxu3 %v825_v17  ;;  %11120 = vst [vmem:[#allocation20_spill] sm:$0xff] %v6867_v18  ;;  %v6888_v17 = vsub.f32 %v61_v52, %v6867_v18  ;;  %v11127_v52 = vand.u32 4294901760, %v6631_v56 }
  0x4a   :  { %643 = vmatpush.msrb.mxu0 %v11116_v7  ;;  %682 = vmatpush.msrb.mxu1 %v6509_v28  ;;  %v836_v28 = vsub.f32 %v6815_v55, %v835_v58  ;;  %v6896_v7 = vand.u32 4294901760, %v377_v50 }
  0x4b   :  { %538 = vmatmul.f32.vlgmr.msra.gmra.mxu2 %v6784_v42  ;;  %371 = vmatmul.f32.vlgmr.msra.gmra.mxu0 %v6854_v29  ;;  %11123 = vst [vmem:[#allocation21_spill] sm:$0xff] %v6888_v17 }
  0x4c   :  { %647 = vmatpush.msrb.mxu0 %v11118_v0  ;;  %684 = vmatpush.msrb.mxu1 %v6527_v34  ;;  %v831_v34 = vand.u32 4294901760, %v830_v21  ;;  %v837_v10 = vand.u32 4294901760, %v836_v28  ;;  %11124 = vst [vmem:[#allocation22_spill] sm:$0xff] %v6896_v7  ;;  %v6899_v21 = vand.u32 4294901760, %v6888_v17  ;;  %v11128_v0 = vld [vmem:[#allocation12_spill] sm:$0xff] }
  0x4d   :  { %731 = vmatpush.msrb.mxu2 %v6776_v4  ;;  %480 = vmatmul.f32.vlgmr.msra.gmra.mxu1 %v6760_v49 }
  0x4e   :  { %651 = vmatpush.msrb.mxu0 %v11121_v22  ;;  %686 = vmatpush.msrb.mxu1 %v6546_v45  ;;  %v848_v45 = vsub.f32 %v6844_v3, %v847_v26  ;;  %11125 = vst [vmem:[#allocation23_spill] sm:$0xff] %v6899_v21 }
  0x4f   :  { %733 = vmatpush.msrb.mxu2 %v6789_v5  ;;  %832 = vmatpush.msrb.mxu3 %v831_v34 }
  0x50   :  { %655 = vmatpush.msrb.mxu0 %v11122_v62  ;;  %688 = vmatpush.msrb.mxu1 %v6556_v51  ;;  %v849_v51 = vand.u32 4294901760, %v848_v45  ;;  %v224_v62 = vld [vmem:[#allocation5 + $0x4e0] sm:$0xff] }
  0x51   :  { %735 = vmatpush.msrb.mxu2 %v6802_v9  ;;  %838 = vmatpush.msrb.mxu3 %v837_v10 }
  0x52   :  { %862 = vmatpush.msra.mxu0 %v6616_v44  ;;  %690 = vmatpush.msrb.mxu1 %v6568_v57  ;;  %v11126_v57 = vand.u32 4294901760, %v6616_v44  ;;  %v11129_v44 = vand.u32 4294901760, %v6654_v38 }
  0x53   :  { %737 = vmatpush.msrb.mxu2 %v6821_v15  ;;  %844 = vmatpush.msrb.mxu3 %v843_v6 }
  0x54   :  { %865 = vmatpush.msra.mxu0 %v6631_v56  ;;  %692 = vmatpush.msrb.mxu1 %v6579_v63  ;;  %v741_v63 = vsub.f32 %v6888_v17, %v6899_v21  ;;  %v11131_v56 = vand.u32 4294901760, %v6660_v53 }
  0x55   :  { %543 = vmatmul.f32.gmra.mxu2 %v6841_v14  ;;  %850 = vmatpush.msrb.mxu3 %v849_v51 }
  0x56   :  { %868 = vmatpush.msra.mxu0 %v6654_v38  ;;  %967 = vmatpush.msra.mxu2 %v11126_v57  ;;  %v6920_v28 = vand.u32 4294901760, %v741_v63  ;;  %v11137_v38 = vand.u32 4294901760, %v6708_v48  ;;  %v220_v57 = vld [vmem:[#allocation5 + $0x4c0] sm:$0xff] }
  0x57   :  { %694 = vmatpush.msrb.mxu1 %v6593_v13  ;;  %379 = vmatmul.f32.gmra.mxu0 %v6896_v7  ;;  %v65_v13 = vld [vmem:[#allocation2 + $0x28] sm:$0xff] }
  0x58   :  { %588 = vmatmul.f32.gmra.mxu3 %v6865_v25  ;;  %871 = vmatpush.msra.mxu0 %v6660_v53  ;;  %11130 = vst [vmem:[#allocation12_spill] sm:$0xff] %v6920_v28  ;;  %v6927_v22 = vand.u32 4294901760, %v65_v13  ;;  %v300_v25 = vld [vmem:[#allocation5 + $0x740] sm:$0xff] }
  0x59   :  { %971 = vmatpush.msra.mxu2 %v11127_v52  ;;  %1038 = vmatpush.msra.mxu3 %v6590_v8 }
  0x5a   :  { %696 = vmatpush.msrb.mxu1 %v11128_v0  ;;  %874 = vmatpush.msra.mxu0 %v6675_v46  ;;  %11132 = vst [vmem:[#allocation24_spill] sm:$0xff] %v6927_v22  ;;  %v6939_v53 = vsub.f32 %v65_v13, %v6927_v22  ;;  %v216_v13 = vld [vmem:[#allocation5 + $0x4a0] sm:$0xff] }
  0x5b   :  { %484 = vmatmul.f32.gmra.mxu1 %v6823_v20  ;;  %975 = vmatpush.msra.mxu2 %v11129_v44 }
  0x5c   :  { %920 = vmatpush.msra.mxu1 %v6590_v8  ;;  %1040 = vmatpush.msra.mxu3 %v6601_v31  ;;  %v11133_v8 = vand.u32 4294901760, %v6675_v46  ;;  %11134 = vst [vmem:[#allocation25_spill] sm:$0xff] %v6939_v53  ;;  %v6951_v46 = vand.u32 4294901760, %v6939_v53 }
  0x5d   :  { %877 = vmatpush.msra.mxu0 %v6695_v27  ;;  %979 = vmatpush.msra.mxu2 %v11131_v56  ;;  %v7082_v56 = vand.u32 4294901760, %v220_v57 }
  0x5e   :  { %922 = vmatpush.msra.mxu1 %v6601_v31  ;;  %1042 = vmatpush.msra.mxu3 %v6626_v54  ;;  %v11135_v31 = vand.u32 4294901760, %v6695_v27  ;;  %11136 = vst [vmem:[#allocation26_spill] sm:$0xff] %v6951_v46  ;;  %v11138_v27 = vand.u32 4294901760, %v6721_v2 }
  0x5f   :  { %743 = vmatmul.f32.vlgmr.msrb.gmra.mxu2 %v6920_v28  ;;  %880 = vmatpush.msra.mxu0 %v6708_v48 }
  0x60   :  { %924 = vmatpush.msra.mxu1 %v6626_v54  ;;  %983 = vmatpush.msra.mxu2 %v11133_v8  ;;  %v749_v54 = vsub.f32 %v6939_v53, %v6951_v46 }
  0x61   :  { %1044 = vmatpush.msra.mxu3 %v6633_v59  ;;  %657 = vmatmul.f32.vlgmr.msrb.gmra.mxu0 %v6760_v49 }
  0x62   :  { %852 = vmatmul.f32.vlgmr.msrb.gmra.mxu3 %v6867_v18  ;;  %883 = vmatpush.msra.mxu0 %v6721_v2  ;;  %v252_v2 = vld [vmem:[#allocation5 + $0x5c0] sm:$0xff] }
  0x63   :  { %926 = vmatpush.msra.mxu1 %v6633_v59  ;;  %987 = vmatpush.msra.mxu2 %v11135_v31  ;;  %v11139_v59 = vand.u32 4294901760, %v6733_v60 }
  0x64   :  { %1046 = vmatpush.msra.mxu3 %v6646_v12  ;;  %698 = vmatmul.f32.vlgmr.msrb.gmra.mxu1 %v6760_v49  ;;  %v7258_v49 = vand.u32 4294901760, %v300_v25 }
  0x65   :  { %886 = vmatpush.msra.mxu0 %v6733_v60  ;;  %928 = vmatpush.msra.mxu1 %v6646_v12  ;;  %v11141_v12 = vand.u32 4294901760, %v6758_v23 }
  0x66   :  { %991 = vmatpush.msra.mxu2 %v11137_v38  ;;  %1048 = vmatpush.msra.mxu3 %v6667_v47  ;;  %v212_v38 = vld [vmem:[#allocation5 + $0x480] sm:$0xff]  ;;  %v7282_v42 = vsub.f32 %v300_v25, %v7258_v49 }
  0x67   :  { %889 = vmatpush.msra.mxu0 %v6745_v30  ;;  %930 = vmatpush.msra.mxu1 %v6667_v47  ;;  %v256_v47 = vld [vmem:[#allocation5 + $0x5e0] sm:$0xff] }
  0x68   :  { %995 = vmatpush.msra.mxu2 %v11138_v27  ;;  %1050 = vmatpush.msra.mxu3 %v6682_v33  ;;  %v6980_v48 = vand.u32 4294901760, %v256_v47  ;;  %v244_v30 = vld [vmem:[#allocation5 + $0x580] sm:$0xff]  ;;  %v7091_v27 = vand.u32 4294901760, %v216_v13 }
  0x69   :  { %892 = vmatpush.msra.mxu0 %v6758_v23  ;;  %932 = vmatpush.msra.mxu1 %v6682_v33  ;;  %v6975_v33 = vand.u32 4294901760, %v749_v54  ;;  %v240_v23 = vld [vmem:[#allocation5 + $0x560] sm:$0xff] }
  0x6a   :  { %999 = vmatpush.msra.mxu2 %v11139_v59  ;;  %1052 = vmatpush.msra.mxu3 %v6697_v24 }
  0x6b   :  { %895 = vmatpush.msra.mxu0 %v6771_v61  ;;  %934 = vmatpush.msra.mxu1 %v6697_v24  ;;  %11140 = vst [vmem:[#allocation27_spill] sm:$0xff] %v6975_v33  ;;  %v248_v24 = vld [vmem:[#allocation5 + $0x5a0] sm:$0xff]  ;;  %v7013_v61 = vand.u32 4294901760, %v240_v23 }
  0x6c   :  { %1003 = vmatpush.msra.mxu2 %v811_v19  ;;  %1054 = vmatpush.msra.mxu3 %v6710_v32  ;;  %v6993_v60 = vand.u32 4294901760, %v248_v24 }
  0x6d   :  { %661 = vmatmul.f32.gmra.mxu0 %v6823_v20  ;;  %936 = vmatpush.msra.mxu1 %v6710_v32  ;;  %v6987_v32 = vand.u32 4294901760, %v252_v2 }
  0x6e   :  { %898 = vmatpush.msra.mxu0 %v6800_v35  ;;  %1007 = vmatpush.msra.mxu2 %v11141_v12  ;;  %v7017_v35 = vsub.f32 %v248_v24, %v6993_v60  ;;  %v208_v12 = vld [vmem:[#allocation5 + $0x460] sm:$0xff] }
  0x6f   :  { %1056 = vmatpush.msra.mxu3 %v6723_v37  ;;  %938 = vmatpush.msra.mxu1 %v6723_v37  ;;  %v6996_v37 = vsub.f32 %v256_v47, %v6980_v48  ;;  %v7004_v19 = vsub.f32 %v252_v2, %v6987_v32  ;;  %v62_v47 = vld [vmem:[#allocation2 + $0x10] sm:$0xff] }
  0x70   :  { %901 = vmatpush.msra.mxu0 %v6815_v55  ;;  %1011 = vmatpush.msra.mxu2 %v823_v16  ;;  %v232_v55 = vld [vmem:[#allocation5 + $0x520] sm:$0xff]  ;;  %v11159_v29 = vand.u32 4294901760, %v7017_v35 }
  0x71   :  { %1058 = vmatpush.msra.mxu3 %v6735_v43  ;;  %751 = vmatmul.f32.gmra.mxu2 %v6975_v33  ;;  %v10903_v16 = vand.u32 4294901760, %v6996_v37  ;;  %v11155_v7 = vand.u32 4294901760, %v6996_v37  ;;  %v11157_v33 = vand.u32 4294901760, %v7004_v19 }
  0x72   :  { %904 = vmatpush.msra.mxu0 %v6830_v40  ;;  %940 = vmatpush.msra.mxu1 %v6735_v43  ;;  %v7009_v43 = vand.u32 4294901760, %v244_v30  ;;  %v10901_v40 = vand.u32 4294901760, %v7017_v35 }
  0x73   :  { %1015 = vmatpush.msra.mxu2 %v829_v11  ;;  %1060 = vmatpush.msra.mxu3 %v6747_v36  ;;  %v236_v11 = vld [vmem:[#allocation5 + $0x540] sm:$0xff] }
  0x74   :  { %856 = vmatmul.f32.gmra.mxu3 %v6927_v22  ;;  %907 = vmatpush.msra.mxu0 %v6844_v3  ;;  %v7030_v34 = vsub.f32 %v244_v30, %v7009_v43  ;;  %v1142_v6 = vsub.f32 %v7017_v35, %v10901_v40 }
  0x75   :  { %942 = vmatpush.msra.mxu1 %v6747_v36  ;;  %1019 = vmatpush.msra.mxu2 %v835_v58  ;;  %v10902_v36 = vand.u32 4294901760, %v7004_v19  ;;  %v7027_v58 = vand.u32 4294901760, %v236_v11 }
  0x76   :  { %1062 = vmatpush.msra.mxu3 %v6776_v4  ;;  %702 = vmatmul.f32.gmra.mxu1 %v6823_v20  ;;  %v10899_v10 = vand.u32 4294901760, %v7030_v34 }
  0x77   :  { %910 = vmatmul.f32.vlgmr.msra.gmra.mxu0 %v6888_v17  ;;  %944 = vmatpush.msra.mxu1 %v6776_v4  ;;  %v1130_v4 = vsub.f32 %v6996_v37, %v10903_v16  ;;  %v1136_v3 = vsub.f32 %v7004_v19, %v10902_v36  ;;  %v7057_v45 = vsub.f32 %v236_v11, %v7027_v58  ;;  %v316_v16 = vld [vmem:[#allocation5 + $0x7c0] sm:$0xff] }
  0x78   :  { %1079 = vmatpush.msrb.mxu0 %v6980_v48  ;;  %1023 = vmatpush.msra.mxu2 %v841_v1  ;;  %v7040_v1 = vsub.f32 %v240_v23, %v7013_v61  ;;  %v1148_v44 = vsub.f32 %v7030_v34, %v10899_v10  ;;  %v7104_v23 = vand.u32 4294901760, %v212_v38  ;;  %v7107_v11 = vsub.f32 %v220_v57, %v7082_v56  ;;  %v66_v10 = vld [vmem:[#allocation2 + $0x30] sm:$0xff] }
  0x79   :  { %1064 = vmatpush.msra.mxu3 %v6789_v5  ;;  %946 = vmatpush.msra.mxu1 %v6789_v5  ;;  %v7044_v5 = vand.u32 4294901760, %v232_v55  ;;  %v1131_v50 = vand.u32 4294901760, %v1130_v4  ;;  %v1137_v52 = vand.u32 4294901760, %v1136_v3  ;;  %v10896_v8 = vand.u32 4294901760, %v7057_v45 }
  0x7a   :  { %1081 = vmatpush.msrb.mxu0 %v6987_v32  ;;  %1027 = vmatpush.msra.mxu2 %v847_v26  ;;  %v7051_v26 = vand.u32 4294901760, %v228_v39  ;;  %v10898_v51 = vand.u32 4294901760, %v7040_v1  ;;  %v1149_v24 = vand.u32 4294901760, %v1148_v44  ;;  %v7110_v4 = vand.u32 4294901760, %v62_v47 }
  0x7b   :  { %1066 = vmatpush.msra.mxu3 %v6802_v9  ;;  %1029 = vmatmul.f32.vlgmr.msra.gmra.mxu2 %v6867_v18  ;;  %v7070_v63 = vsub.f32 %v232_v55, %v7044_v5  ;;  %v1160_v30 = vsub.f32 %v7057_v45, %v10896_v8 }
  0x7c   :  { %1083 = vmatpush.msrb.mxu0 %v6993_v60  ;;  %1234 = vmatpush.msrb.mxu2 %v6996_v37  ;;  %v7075_v0 = vsub.f32 %v228_v39, %v7051_v26  ;;  %v1154_v31 = vsub.f32 %v7040_v1, %v10898_v51  ;;  %v204_v39 = vld [vmem:[#allocation5 + $0x440] sm:$0xff]  ;;  %11142 = vst [vmem:[#allocation28_spill] sm:$0xff] %v7110_v4  ;;  %v7176_v51 = vand.u32 4294901760, %v66_v10 }
  0x7d   :  { %948 = vmatpush.msra.mxu1 %v6802_v9  ;;  %1068 = vmatpush.msra.mxu3 %v6821_v15  ;;  %v7067_v9 = vand.u32 4294901760, %v224_v62  ;;  %v10894_v54 = vand.u32 4294901760, %v7070_v63  ;;  %v7129_v44 = vand.u32 4294901760, %v204_v39 }
  0x7e   :  { %1070 = vmatmul.f32.vlgmr.msra.gmra.mxu3 %v6867_v18  ;;  %1085 = vmatpush.msrb.mxu0 %v7009_v43  ;;  %v10895_v2 = vand.u32 4294901760, %v7075_v0  ;;  %v1155_v55 = vand.u32 4294901760, %v1154_v31  ;;  %v7133_v31 = vsub.f32 %v212_v38, %v7104_v23  ;;  %11145 = vst [vmem:[#allocation31_spill] sm:$0xff] %v7176_v51 }
  0x7f   :  { %1237 = vmatpush.msrb.mxu2 %v7004_v19  ;;  %1292 = vmatpush.msrb.mxu3 %v6980_v48  ;;  %v7095_v59 = vsub.f32 %v224_v62, %v7067_v9  ;;  %v1166_v3 = vsub.f32 %v7070_v63, %v10894_v54  ;;  %v7117_v62 = vand.u32 4294901760, %v208_v12  ;;  %v7138_v54 = vsub.f32 %v62_v47, %v7110_v4  ;;  %v320_v47 = vld [vmem:[#allocation5 + $0x7e0] sm:$0xff] }
  0x80   :  { %950 = vmatpush.msra.mxu1 %v6821_v15  ;;  %1087 = vmatpush.msrb.mxu0 %v7013_v61  ;;  %v1143_v15 = vand.u32 4294901760, %v1142_v6  ;;  %v7121_v6 = vsub.f32 %v216_v13, %v7091_v27  ;;  %v1172_v57 = vsub.f32 %v7075_v0, %v10895_v2  ;;  %v200_v13 = vld [vmem:[#allocation5 + $0x420] sm:$0xff] }
  0x81   :  { %954 = vmatmul.f32.vlgmr.msra.gmra.mxu1 %v6899_v21  ;;  %1240 = vmatpush.msrb.mxu2 %v7017_v35  ;;  %11143 = vst [vmem:[#allocation29_spill] sm:$0xff] %v7138_v54  ;;  %v7146_v38 = vsub.f32 %v208_v12, %v7117_v62  ;;  %v7158_v12 = vsub.f32 %v204_v39, %v7129_v44  ;;  %v7170_v39 = vand.u32 4294901760, %v320_v47  ;;  %v312_v21 = vld [vmem:[#allocation5 + $0x7a0] sm:$0xff] }
  0x82   :  { %1132 = vmatpush.msrb.mxu1 %v1131_v50  ;;  %1294 = vmatpush.msrb.mxu3 %v6987_v32  ;;  %v10897_v50 = vand.u32 4294901760, %v7095_v59  ;;  %v10904_v2 = vand.u32 4294901760, %v7121_v6  ;;  %v1173_v8 = vand.u32 4294901760, %v1172_v57  ;;  %v7163_v57 = vand.u32 4294901760, %v7138_v54  ;;  %v280_v35 = vld [vmem:[#allocation5 + $0x6a0] sm:$0xff] }
  0x83   :  { %1089 = vmatpush.msrb.mxu0 %v7027_v58  ;;  %1243 = vmatpush.msrb.mxu2 %v7030_v34  ;;  %v7212_v18 = vand.u32 4294901760, %v312_v21 }
  0x84   :  { %1138 = vmatpush.msrb.mxu1 %v1137_v52  ;;  %1296 = vmatpush.msrb.mxu3 %v6993_v60  ;;  %v1161_v52 = vand.u32 4294901760, %v1160_v30  ;;  %v1178_v30 = vsub.f32 %v7095_v59, %v10897_v50  ;;  %v196_v50 = vld [vmem:[#allocation5 + $0x400] sm:$0xff]  ;;  %11144 = vst [vmem:[#allocation30_spill] sm:$0xff] %v7163_v57 }
  0x85   :  { %1033 = vmatmul.f32.gmra.mxu2 %v6927_v22  ;;  %1091 = vmatpush.msrb.mxu0 %v7044_v5  ;;  %v7174_v36 = vand.u32 4294901760, %v196_v50  ;;  %11150 = vst [vmem:[#allocation33_spill] sm:$0xff] %v7212_v18 }
  0x86   :  { %1144 = vmatpush.msrb.mxu1 %v1143_v15  ;;  %1246 = vmatpush.msrb.mxu2 %v7040_v1  ;;  %v10900_v15 = vand.u32 4294901760, %v7107_v11 }
  0x87   :  { %1298 = vmatpush.msrb.mxu3 %v7009_v43  ;;  %915 = vmatmul.f32.gmra.mxu0 %v6939_v53  ;;  %v1113_v53 = vsub.f32 %v7138_v54, %v7163_v57  ;;  %v7202_v17 = vsub.f32 %v196_v50, %v7174_v36 }
  0x88   :  { %1074 = vmatmul.f32.gmra.mxu3 %v6927_v22  ;;  %1093 = vmatpush.msrb.mxu0 %v7051_v26  ;;  %v7205_v22 = vsub.f32 %v66_v10, %v7176_v51  ;;  %v304_v10 = vld [vmem:[#allocation5 + $0x760] sm:$0xff] }
  0x89   :  { %1150 = vmatpush.msrb.mxu1 %v1149_v24  ;;  %1249 = vmatpush.msrb.mxu2 %v7057_v45  ;;  %v1167_v24 = vand.u32 4294901760, %v1166_v3  ;;  %v7154_v3 = vand.u32 4294901760, %v200_v13  ;;  %v7216_v50 = vand.u32 4294901760, %v1113_v53  ;;  %v7238_v20 = vand.u32 4294901760, %v304_v10 }
  0x8a   :  { %1300 = vmatpush.msrb.mxu3 %v7013_v61  ;;  %960 = vmatmul.f32.gmra.mxu1 %v6951_v46  ;;  %v7197_v46 = vand.u32 4294901760, %v316_v16  ;;  %11148 = vst [vmem:[#allocation32_spill] sm:$0xff] %v7205_v22  ;;  %v7229_v53 = vand.u32 4294901760, %v7205_v22  ;;  %v11156_v14 = vand.u32 4294901760, %v7202_v17 }
  0x8b   :  { %1095 = vmatpush.msrb.mxu0 %v7067_v9  ;;  %1156 = vmatpush.msrb.mxu1 %v1155_v55  ;;  %v1184_v55 = vsub.f32 %v7107_v11, %v10900_v15  ;;  %v1190_v15 = vsub.f32 %v7121_v6, %v10904_v2  ;;  %v7183_v40 = vsub.f32 %v200_v13, %v7154_v3 }
  0x8c   :  { %1252 = vmatpush.msrb.mxu2 %v7070_v63  ;;  %1302 = vmatpush.msrb.mxu3 %v7027_v58  ;;  %v7195_v13 = vsub.f32 %v320_v47, %v7170_v39  ;;  %v11149_v47 = vand.u32 4294901760, %v7158_v12  ;;  %11151 = vst [vmem:[#allocation34_spill] sm:$0xff] %v7216_v50  ;;  %v7221_v28 = vsub.f32 %v316_v16, %v7197_v46 }
  0x8d   :  { %1097 = vmatpush.msrb.mxu0 %v7082_v56  ;;  %1162 = vmatpush.msrb.mxu1 %v1161_v52  ;;  %v1179_v52 = vand.u32 4294901760, %v1178_v30  ;;  %v11146_v30 = vand.u32 4294901760, %v7133_v31  ;;  %11152 = vst [vmem:[#allocation35_spill] sm:$0xff] %v7229_v53  ;;  %v7263_v37 = vsub.f32 %v304_v10, %v7238_v20 }
  0x8e   :  { %1255 = vmatpush.msrb.mxu2 %v7075_v0  ;;  %1304 = vmatpush.msrb.mxu3 %v7044_v5 }
  0x8f   :  { %1099 = vmatpush.msrb.mxu0 %v7091_v27  ;;  %1168 = vmatpush.msrb.mxu1 %v1167_v24  ;;  %v1185_v24 = vand.u32 4294901760, %v1184_v55  ;;  %v1196_v2 = vsub.f32 %v7133_v31, %v11146_v30  ;;  %v11147_v55 = vand.u32 4294901760, %v7146_v38 }
  0x90   :  { %1258 = vmatpush.msrb.mxu2 %v7095_v59  ;;  %1306 = vmatpush.msrb.mxu3 %v7051_v26 }
  0x91   :  { %1101 = vmatpush.msrb.mxu0 %v7104_v23  ;;  %1174 = vmatpush.msrb.mxu1 %v1173_v8  ;;  %v1191_v8 = vand.u32 4294901760, %v1190_v15  ;;  %v1202_v30 = vsub.f32 %v7146_v38, %v11147_v55  ;;  %v308_v15 = vld [vmem:[#allocation5 + $0x780] sm:$0xff]  ;;  %v1208_v55 = vsub.f32 %v7158_v12, %v11149_v47 }
  0x92   :  { %1261 = vmatpush.msrb.mxu2 %v7107_v11  ;;  %1308 = vmatpush.msrb.mxu3 %v7067_v9  ;;  %v7223_v47 = vand.u32 4294901760, %v308_v15 }
  0x93   :  { %1103 = vmatpush.msrb.mxu0 %v7117_v62  ;;  %1180 = vmatpush.msrb.mxu1 %v1179_v52  ;;  %v1197_v52 = vand.u32 4294901760, %v1196_v2  ;;  %v7236_v2 = vsub.f32 %v312_v21, %v7212_v18  ;;  %v296_v21 = vld [vmem:[#allocation5 + $0x720] sm:$0xff] }
  0x94   :  { %1264 = vmatpush.msrb.mxu2 %v7121_v6  ;;  %1310 = vmatpush.msrb.mxu3 %v7082_v56 }
  0x95   :  { %1105 = vmatpush.msrb.mxu0 %v7129_v44  ;;  %1186 = vmatpush.msrb.mxu1 %v1185_v24  ;;  %v1203_v24 = vand.u32 4294901760, %v1202_v30  ;;  %v11153_v30 = vand.u32 4294901760, %v7183_v40 }
  0x96   :  { %1267 = vmatpush.msrb.mxu2 %v7133_v31  ;;  %1312 = vmatpush.msrb.mxu3 %v7091_v27 }
  0x97   :  { %1107 = vmatpush.msrb.mxu0 %v7154_v3  ;;  %1192 = vmatpush.msrb.mxu1 %v1191_v8  ;;  %v1209_v8 = vand.u32 4294901760, %v1208_v55  ;;  %v1214_v16 = vsub.f32 %v7183_v40, %v11153_v30  ;;  %v7248_v30 = vsub.f32 %v308_v15, %v7223_v47 }
  0x98   :  { %1270 = vmatpush.msrb.mxu2 %v7146_v38  ;;  %1314 = vmatpush.msrb.mxu3 %v7104_v23 }
  0x99   :  { %1109 = vmatpush.msrb.mxu0 %v7174_v36  ;;  %1198 = vmatpush.msrb.mxu1 %v1197_v52  ;;  %v11154_v52 = vand.u32 4294901760, %v7195_v13  ;;  %v1215_v15 = vand.u32 4294901760, %v1214_v16  ;;  %v10943_v10 = vand.u32 4294901760, %v7248_v30 }
  0x9a   :  { %1273 = vmatpush.msrb.mxu2 %v7158_v12  ;;  %1316 = vmatpush.msrb.mxu3 %v7117_v62 }
  0x9b   :  { %1115 = vmatmul.f32.vlgmr.msrb.gmra.mxu0 %v7216_v50  ;;  %1204 = vmatpush.msrb.mxu1 %v1203_v24  ;;  %v1502_v55 = vsub.f32 %v7195_v13, %v11154_v52  ;;  %v1220_v50 = vsub.f32 %v7202_v17, %v11156_v14  ;;  %v1121_v24 = vsub.f32 %v7205_v22, %v7229_v53  ;;  %v7268_v14 = vand.u32 4294901760, %v296_v21  ;;  %v288_v52 = vld [vmem:[#allocation5 + $0x6e0] sm:$0xff] }
  0x9c   :  { %1339 = vmatpush.msra.mxu0 %v11155_v7  ;;  %1276 = vmatpush.msrb.mxu2 %v7183_v40  ;;  %v292_v7 = vld [vmem:[#allocation5 + $0x700] sm:$0xff] }
  0x9d   :  { %1318 = vmatpush.msrb.mxu3 %v7129_v44  ;;  %1210 = vmatpush.msrb.mxu1 %v1209_v8  ;;  %v1503_v41 = vand.u32 4294901760, %v1502_v55  ;;  %v11158_v8 = vand.u32 4294901760, %v7221_v28  ;;  %v7279_v19 = vand.u32 4294901760, %v1121_v24  ;;  %v11161_v55 = vand.u32 4294901760, %v7236_v2 }
  0x9e   :  { %1343 = vmatpush.msra.mxu0 %v11157_v33  ;;  %1279 = vmatpush.msrb.mxu2 %v7202_v17  ;;  %v1221_v33 = vand.u32 4294901760, %v1220_v50  ;;  %v11162_v50 = vand.u32 4294901760, %v7030_v34  ;;  %v7295_v25 = vsub.f32 %v296_v21, %v7268_v14  ;;  %v7297_v24 = vand.u32 4294901760, %v288_v52 }
  0x9f   :  { %1320 = vmatpush.msrb.mxu3 %v7154_v3  ;;  %1282 = vmatmul.f32.vlgmr.msrb.gmra.mxu2 %v7138_v54  ;;  %v1508_v16 = vsub.f32 %v7221_v28, %v11158_v8  ;;  %11160 = vst [vmem:[#allocation36_spill] sm:$0xff] %v7279_v19  ;;  %v7284_v54 = vand.u32 4294901760, %v292_v7  ;;  %v1514_v8 = vsub.f32 %v7236_v2, %v11161_v55 }
  0xa0   :  { %1347 = vmatpush.msra.mxu0 %v11159_v29  ;;  %1451 = vmatpush.msra.mxu2 %v7170_v39  ;;  %v284_v29 = vld [vmem:[#allocation5 + $0x6c0] sm:$0xff]  ;;  %v1520_v55 = vsub.f32 %v7248_v30, %v10943_v10  ;;  %v7320_v34 = vsub.f32 %v288_v52, %v7297_v24 }
  0xa1   :  { %1216 = vmatpush.msrb.mxu1 %v1215_v15  ;;  %1322 = vmatpush.msrb.mxu3 %v7174_v36  ;;  %v1509_v15 = vand.u32 4294901760, %v1508_v16  ;;  %v7308_v21 = vand.u32 4294901760, %v284_v29  ;;  %v1515_v16 = vand.u32 4294901760, %v1514_v8 }
  0xa2   :  { %1326 = vmatmul.f32.vlgmr.msrb.gmra.mxu3 %v7163_v57  ;;  %1351 = vmatpush.msra.mxu0 %v11162_v50  ;;  %v7306_v50 = vsub.f32 %v292_v7, %v7284_v54  ;;  %v11164_v57 = vand.u32 4294901760, %v7263_v37  ;;  %v1521_v8 = vand.u32 4294901760, %v1520_v55 }
  0xa3   :  { %1453 = vmatpush.msra.mxu2 %v7197_v46  ;;  %1504 = vmatpush.msra.mxu3 %v1503_v41  ;;  %v11163_v41 = vand.u32 4294901760, %v7040_v1  ;;  %v11165_v1 = vand.u32 4294901760, %v7057_v45  ;;  %v7333_v52 = vsub.f32 %v284_v29, %v7308_v21 }
  0xa4   :  { %1222 = vmatpush.msrb.mxu1 %v1221_v33  ;;  %1123 = vmatmul.f32.gmra.mxu0 %v7279_v19  ;;  %v1526_v10 = vsub.f32 %v7263_v37, %v11164_v57  ;;  %v276_v33 = vld [vmem:[#allocation5 + $0x680] sm:$0xff]  ;;  %v7322_v19 = vand.u32 4294901760, %v280_v35  ;;  %v10948_v7 = vand.u32 4294901760, %v7306_v50 }
  0xa5   :  { %1224 = vmatmul.f32.vlgmr.msrb.gmra.mxu1 %v7110_v4  ;;  %1355 = vmatpush.msra.mxu0 %v11163_v41  ;;  %v272_v41 = vld [vmem:[#allocation5 + $0x660] sm:$0xff] }
  0xa6   :  { %1410 = vmatpush.msra.mxu1 %v6980_v48  ;;  %1455 = vmatpush.msra.mxu2 %v7212_v18  ;;  %v11166_v48 = vand.u32 4294901760, %v7282_v42  ;;  %v7335_v18 = vand.u32 4294901760, %v276_v33  ;;  %v1527_v45 = vand.u32 4294901760, %v1526_v10  ;;  %v7346_v29 = vsub.f32 %v280_v35, %v7322_v19 }
  0xa7   :  { %1510 = vmatpush.msra.mxu3 %v1509_v15  ;;  %1359 = vmatpush.msra.mxu0 %v11165_v1  ;;  %v11167_v15 = vand.u32 4294901760, %v7070_v63  ;;  %v11169_v63 = vand.u32 4294901760, %v7075_v0  ;;  %v1544_v10 = vsub.f32 %v7306_v50, %v10948_v7  ;;  %v63_v1 = vld [vmem:[#allocation2 + $0x18] sm:$0xff] }
  0xa8   :  { %1412 = vmatpush.msra.mxu1 %v6987_v32  ;;  %1457 = vmatpush.msra.mxu2 %v7223_v47  ;;  %v1532_v57 = vsub.f32 %v7282_v42, %v11166_v48  ;;  %v11168_v32 = vand.u32 4294901760, %v7295_v25  ;;  %v7348_v48 = vand.u32 4294901760, %v272_v41  ;;  %v7359_v35 = vsub.f32 %v276_v33, %v7335_v18 }
  0xa9   :  { %1516 = vmatpush.msra.mxu3 %v1515_v16  ;;  %1287 = vmatmul.f32.gmra.mxu2 %v7205_v22  ;;  %v268_v16 = vld [vmem:[#allocation5 + $0x640] sm:$0xff]  ;;  %v11174_v22 = vand.u32 4294901760, %v7107_v11  ;;  %v11176_v11 = vand.u32 4294901760, %v7121_v6 }
  0xaa   :  { %1363 = vmatpush.msra.mxu0 %v11167_v15  ;;  %1414 = vmatpush.msra.mxu1 %v6993_v60  ;;  %v1538_v55 = vsub.f32 %v7295_v25, %v11168_v32  ;;  %v1533_v60 = vand.u32 4294901760, %v1532_v57  ;;  %v264_v32 = vld [vmem:[#allocation5 + $0x620] sm:$0xff]  ;;  %v11170_v57 = vand.u32 4294901760, %v7320_v34  ;;  %v7371_v33 = vsub.f32 %v272_v41, %v7348_v48 }
  0xab   :  { %1459 = vmatpush.msra.mxu2 %v7238_v20  ;;  %1522 = vmatpush.msra.mxu3 %v1521_v8  ;;  %v7363_v8 = vand.u32 4294901760, %v268_v16  ;;  %v260_v15 = vld [vmem:[#allocation5 + $0x600] sm:$0xff]  ;;  %v1567_v41 = vand.u32 4294901760, %v7359_v35 }
  0xac   :  { %1332 = vmatmul.f32.gmra.mxu3 %v7229_v53  ;;  %1367 = vmatpush.msra.mxu0 %v11169_v63  ;;  %v1539_v0 = vand.u32 4294901760, %v1538_v55  ;;  %v1550_v63 = vsub.f32 %v7320_v34, %v11170_v57  ;;  %v7376_v53 = vand.u32 4294901760, %v264_v32  ;;  %v1545_v55 = vand.u32 4294901760, %v1544_v10 }
  0xad   :  { %1416 = vmatpush.msra.mxu1 %v7009_v43  ;;  %1461 = vmatpush.msra.mxu2 %v7258_v49  ;;  %v11171_v43 = vand.u32 4294901760, %v7095_v59  ;;  %v11173_v57 = vand.u32 4294901760, %v7333_v52  ;;  %v7391_v59 = vand.u32 4294901760, %v260_v15  ;;  %v11175_v10 = vand.u32 4294901760, %v7346_v29 }
  0xae   :  { %1528 = vmatpush.msra.mxu3 %v1527_v45  ;;  %1228 = vmatmul.f32.gmra.mxu1 %v7176_v51  ;;  %v7378_v45 = vand.u32 4294901760, %v63_v1 }
  0xaf   :  { %1371 = vmatpush.msra.mxu0 %v11171_v43  ;;  %1418 = vmatpush.msra.mxu1 %v7013_v61  ;;  %v1556_v7 = vsub.f32 %v7333_v52, %v11173_v57  ;;  %v7389_v61 = vsub.f32 %v268_v16, %v7363_v8  ;;  %v1562_v43 = vsub.f32 %v7346_v29, %v11175_v10  ;;  %v1573_v57 = vand.u32 4294901760, %v7371_v33 }
  0xb0   :  { %11172 = vst [vmem:[#allocation37_spill] sm:$0xff] %v7378_v45  ;;  %1463 = vmatpush.msra.mxu2 %v7268_v14  ;;  %1534 = vmatpush.msra.mxu3 %v1533_v60  ;;  %v1551_v60 = vand.u32 4294901760, %v1550_v63  ;;  %v11178_v63 = vand.u32 4294901760, %v7133_v31  ;;  %v7416_v6 = vsub.f32 %v260_v15, %v7391_v59 }
  0xb1   :  { %1375 = vmatpush.msra.mxu0 %v11174_v22  ;;  %1420 = vmatpush.msra.mxu1 %v7027_v58  ;;  %v7402_v22 = vsub.f32 %v264_v32, %v7376_v53  ;;  %v7405_v58 = vsub.f32 %v63_v1, %v7378_v45  ;;  %v1557_v16 = vand.u32 4294901760, %v1556_v7  ;;  %v1563_v1 = vand.u32 4294901760, %v1562_v43  ;;  %v67_v32 = vld [vmem:[#allocation2 + $0x38] sm:$0xff] }
  0xb2   :  { %1465 = vmatpush.msra.mxu2 %v7284_v54  ;;  %1540 = vmatpush.msra.mxu3 %v1539_v0  ;;  %v1568_v0 = vsub.f32 %v7359_v35, %v1567_v41  ;;  %v1574_v7 = vsub.f32 %v7371_v33, %v1573_v57  ;;  %v7437_v10 = vand.u32 4294901760, %v67_v32 }
  0xb3   :  { %1379 = vmatpush.msra.mxu0 %v11176_v11  ;;  %1422 = vmatpush.msra.mxu1 %v7044_v5  ;;  %11177 = vst [vmem:[#allocation38_spill] sm:$0xff] %v7405_v58  ;;  %v1579_v5 = vand.u32 4294901760, %v7389_v61  ;;  %v7427_v31 = vand.u32 4294901760, %v7405_v58  ;;  %v11183_v11 = vand.u32 4294901760, %v7183_v40 }
  0xb4   :  { %1467 = vmatpush.msra.mxu2 %v7297_v24  ;;  %1546 = vmatpush.msra.mxu3 %v1545_v55  ;;  %v11179_v55 = vand.u32 4294901760, %v7146_v38  ;;  %v1569_v15 = vand.u32 4294901760, %v1568_v0  ;;  %11182 = vst [vmem:[#allocation40_spill] sm:$0xff] %v7437_v10  ;;  %v1575_v43 = vand.u32 4294901760, %v1574_v7  ;;  %v11189_v7 = vand.u32 4294901760, %v7221_v28 }
  0xb5   :  { %1383 = vmatpush.msra.mxu0 %v11178_v63  ;;  %1424 = vmatpush.msra.mxu1 %v7051_v26  ;;  %v1585_v26 = vand.u32 4294901760, %v7402_v22  ;;  %11180 = vst [vmem:[#allocation39_spill] sm:$0xff] %v7427_v31  ;;  %v1580_v38 = vsub.f32 %v7389_v61, %v1579_v5 }
  0xb6   :  { %1469 = vmatpush.msra.mxu2 %v7308_v21  ;;  %1552 = vmatpush.msra.mxu3 %v1551_v60  ;;  %v11181_v60 = vand.u32 4294901760, %v7158_v12  ;;  %v1485_v12 = vsub.f32 %v7405_v58, %v7427_v31 }
  0xb7   :  { %1387 = vmatpush.msra.mxu0 %v11179_v55  ;;  %1426 = vmatpush.msra.mxu1 %v7067_v9  ;;  %v1591_v9 = vand.u32 4294901760, %v7416_v6  ;;  %v1581_v0 = vand.u32 4294901760, %v1580_v38 }
  0xb8   :  { %1471 = vmatpush.msra.mxu2 %v7322_v19  ;;  %1558 = vmatpush.msra.mxu3 %v1557_v16  ;;  %v11184_v16 = vand.u32 4294901760, %v7202_v17  ;;  %v7461_v17 = vand.u32 4294901760, %v1485_v12 }
  0xb9   :  { %1391 = vmatpush.msra.mxu0 %v11181_v60  ;;  %1428 = vmatpush.msra.mxu1 %v7082_v56  ;;  %v1586_v56 = vsub.f32 %v7402_v22, %v1585_v26  ;;  %v1592_v40 = vsub.f32 %v7416_v6, %v1591_v9 }
  0xba   :  { %1473 = vmatpush.msra.mxu2 %v7335_v18  ;;  %1564 = vmatpush.msra.mxu3 %v1563_v1  ;;  %11186 = vst [vmem:[#allocation42_spill] sm:$0xff] %v7461_v17 }
  0xbb   :  { %1395 = vmatpush.msra.mxu0 %v11183_v11  ;;  %1430 = vmatpush.msra.mxu1 %v7091_v27  ;;  %v7456_v27 = vsub.f32 %v67_v32, %v7437_v10  ;;  %v1587_v63 = vand.u32 4294901760, %v1586_v56 }
  0xbc   :  { %1475 = vmatpush.msra.mxu2 %v7348_v48  ;;  %1570 = vmatpush.msra.mxu3 %v1569_v15 }
  0xbd   :  { %1399 = vmatpush.msra.mxu0 %v11184_v16  ;;  %1432 = vmatpush.msra.mxu1 %v7104_v23  ;;  %11185 = vst [vmem:[#allocation41_spill] sm:$0xff] %v7456_v27  ;;  %v1593_v23 = vand.u32 4294901760, %v1592_v40  ;;  %v7467_v1 = vand.u32 4294901760, %v7456_v27  ;;  %v89_v40 = vld [vmem:[#allocation5 + $0xa8] sm:$0xff] }
  0xbe   :  { %1477 = vmatpush.msra.mxu2 %v7363_v8  ;;  %1576 = vmatpush.msra.mxu3 %v1575_v43 }
  0xbf   :  { %1401 = vmatmul.f32.vlgmr.msra.gmra.mxu0 %v7110_v4  ;;  %1434 = vmatpush.msra.mxu1 %v7117_v62  ;;  %11187 = vst [vmem:[#allocation43_spill] sm:$0xff] %v7467_v1  ;;  %v11188_v62 = vand.u32 4294901760, %v7195_v13 }
  0xc0   :  { %1606 = vmatpush.msrb.mxu0 %v7195_v13  ;;  %1479 = vmatpush.msra.mxu2 %v7376_v53  ;;  %v11191_v13 = vand.u32 4294901760, %v7236_v2 }
  0xc1   :  { %1582 = vmatpush.msra.mxu3 %v1581_v0  ;;  %1436 = vmatpush.msra.mxu1 %v7129_v44  ;;  %v1493_v44 = vsub.f32 %v7456_v27, %v7467_v1 }
  0xc2   :  { %1609 = vmatpush.msrb.mxu0 %v7221_v28  ;;  %1481 = vmatpush.msra.mxu2 %v7391_v59  ;;  %v11192_v28 = vand.u32 4294901760, %v7248_v30 }
  0xc3   :  { %1588 = vmatpush.msra.mxu3 %v1587_v63  ;;  %1487 = vmatmul.f32.vlgmr.msra.gmra.mxu2 %v7461_v17  ;;  %v157_v17 = vld [vmem:[#allocation5 + $0x2c8] sm:$0xff] }
  0xc4   :  { %1612 = vmatpush.msrb.mxu0 %v7236_v2  ;;  %1711 = vmatpush.msrb.mxu2 %v11188_v62  ;;  %v11196_v2 = vand.u32 4294901760, %v7295_v25 }
  0xc5   :  { %1438 = vmatpush.msra.mxu1 %v7154_v3  ;;  %1594 = vmatpush.msra.mxu3 %v1593_v23  ;;  %v7487_v3 = vand.u32 4294901760, %v1493_v44 }
  0xc6   :  { %1596 = vmatmul.f32.vlgmr.msra.gmra.mxu3 %v7378_v45  ;;  %1615 = vmatpush.msrb.mxu0 %v7248_v30  ;;  %v11199_v30 = vand.u32 4294901760, %v7333_v52 }
  0xc7   :  { %1715 = vmatpush.msrb.mxu2 %v11189_v7  ;;  %1782 = vmatpush.msrb.mxu3 %v7170_v39  ;;  %11190 = vst [vmem:[#allocation44_spill] sm:$0xff] %v7487_v3  ;;  %v85_v7 = vld [vmem:[#allocation5 + $0x88] sm:$0xff] }
  0xc8   :  { %1440 = vmatpush.msra.mxu1 %v7174_v36  ;;  %1405 = vmatmul.f32.gmra.mxu0 %v7176_v51  ;;  %v11193_v36 = vld [vmem:[#allocation33_spill] sm:$0xff] }
  0xc9   :  { %1442 = vmatmul.f32.vlgmr.msra.gmra.mxu1 %v7110_v4  ;;  %1618 = vmatpush.msrb.mxu0 %v7263_v37 }
  0xca   :  { %1664 = vmatpush.msrb.mxu1 %v7170_v39  ;;  %1719 = vmatpush.msrb.mxu2 %v11191_v13  ;;  %v11194_v39 = vand.u32 4294901760, %v7263_v37  ;;  %v7643_v13 = vand.u32 4294901760, %v89_v40 }
  0xcb   :  { %1784 = vmatpush.msrb.mxu3 %v7197_v46  ;;  %1621 = vmatpush.msrb.mxu0 %v7282_v42 }
  0xcc   :  { %1666 = vmatpush.msrb.mxu1 %v7197_v46  ;;  %1723 = vmatpush.msrb.mxu2 %v11192_v28  ;;  %v11195_v46 = vand.u32 4294901760, %v7282_v42  ;;  %v11197_v42 = vand.u32 4294901760, %v7306_v50 }
  0xcd   :  { %1786 = vmatpush.msrb.mxu3 %v11193_v36  ;;  %1495 = vmatmul.f32.gmra.mxu2 %v7487_v3 }
  0xce   :  { %1624 = vmatpush.msrb.mxu0 %v7295_v25  ;;  %1668 = vmatpush.msrb.mxu1 %v11193_v36  ;;  %v11200_v25 = vand.u32 4294901760, %v7346_v29 }
  0xcf   :  { %1727 = vmatpush.msrb.mxu2 %v11194_v39  ;;  %1788 = vmatpush.msrb.mxu3 %v7223_v47 }
  0xd0   :  { %1600 = vmatmul.f32.gmra.mxu3 %v7437_v10  ;;  %1627 = vmatpush.msrb.mxu0 %v7306_v50  ;;  %v117_v50 = vld [vmem:[#allocation5 + $0x188] sm:$0xff] }
  0xd1   :  { %1670 = vmatpush.msrb.mxu1 %v7223_v47  ;;  %1731 = vmatpush.msrb.mxu2 %v11195_v46  ;;  %v129_v47 = vld [vmem:[#allocation5 + $0x1e8] sm:$0xff] }
  0xd2   :  { %1790 = vmatpush.msrb.mxu3 %v7238_v20  ;;  %1446 = vmatmul.f32.gmra.mxu1 %v7176_v51  ;;  %v7531_v37 = vand.u32 4294901760, %v129_v47  ;;  %v81_v46 = vld [vmem:[#allocation5 + $0x68] sm:$0xff] }
  0xd3   :  { %1630 = vmatpush.msrb.mxu0 %v7320_v34  ;;  %1672 = vmatpush.msrb.mxu1 %v7238_v20  ;;  %v11198_v20 = vand.u32 4294901760, %v7320_v34 }
  0xd4   :  { %1735 = vmatpush.msrb.mxu2 %v11196_v2  ;;  %1792 = vmatpush.msrb.mxu3 %v7258_v49 }
  0xd5   :  { %1633 = vmatpush.msrb.mxu0 %v7333_v52  ;;  %1674 = vmatpush.msrb.mxu1 %v7258_v49  ;;  %v125_v49 = vld [vmem:[#allocation5 + $0x1c8] sm:$0xff] }
  0xd6   :  { %1739 = vmatpush.msrb.mxu2 %v11197_v42  ;;  %1794 = vmatpush.msrb.mxu3 %v7268_v14  ;;  %v7538_v34 = vand.u32 4294901760, %v125_v49  ;;  %v113_v52 = vld [vmem:[#allocation5 + $0x168] sm:$0xff] }
  0xd7   :  { %1636 = vmatpush.msrb.mxu0 %v7346_v29  ;;  %1676 = vmatpush.msrb.mxu1 %v7268_v14  ;;  %v121_v14 = vld [vmem:[#allocation5 + $0x1a8] sm:$0xff]  ;;  %v7560_v29 = vand.u32 4294901760, %v117_v50 }
  0xd8   :  { %1743 = vmatpush.msrb.mxu2 %v11198_v20  ;;  %1796 = vmatpush.msrb.mxu3 %v7284_v54 }
  0xd9   :  { %1639 = vmatpush.msrb.mxu0 %v7359_v35  ;;  %1678 = vmatpush.msrb.mxu1 %v7284_v54  ;;  %v7545_v54 = vand.u32 4294901760, %v121_v14 }
  0xda   :  { %1747 = vmatpush.msrb.mxu2 %v11199_v30  ;;  %1798 = vmatpush.msrb.mxu3 %v7297_v24  ;;  %v77_v30 = vld [vmem:[#allocation5 + $0x48] sm:$0xff] }
  0xdb   :  { %1642 = vmatpush.msrb.mxu0 %v7371_v33  ;;  %1680 = vmatpush.msrb.mxu1 %v7297_v24  ;;  %v7548_v24 = vsub.f32 %v129_v47, %v7531_v37  ;;  %v7569_v33 = vsub.f32 %v121_v14, %v7545_v54  ;;  %v7658_v47 = vand.u32 4294901760, %v85_v7 }
  0xdc   :  { %1751 = vmatpush.msrb.mxu2 %v11200_v25  ;;  %1800 = vmatpush.msrb.mxu3 %v7308_v21  ;;  %v7667_v25 = vand.u32 4294901760, %v81_v46 }
  0xdd   :  { %1645 = vmatpush.msrb.mxu0 %v7389_v61  ;;  %1682 = vmatpush.msrb.mxu1 %v7308_v21  ;;  %v7556_v21 = vsub.f32 %v125_v49, %v7538_v34  ;;  %v10965_v35 = vand.u32 4294901760, %v7548_v24  ;;  %v105_v61 = vld [vmem:[#allocation5 + $0x128] sm:$0xff] }
  0xde   :  { %1755 = vmatpush.msrb.mxu2 %v1567_v41  ;;  %1802 = vmatpush.msrb.mxu3 %v7322_v19  ;;  %v109_v41 = vld [vmem:[#allocation5 + $0x148] sm:$0xff]  ;;  %v7596_v55 = vand.u32 4294901760, %v105_v61 }
  0xdf   :  { %1648 = vmatpush.msrb.mxu0 %v7402_v22  ;;  %1684 = vmatpush.msrb.mxu1 %v7322_v19  ;;  %v7565_v19 = vand.u32 4294901760, %v113_v52  ;;  %v10963_v22 = vand.u32 4294901760, %v7569_v33 }
  0xe0   :  { %1759 = vmatpush.msrb.mxu2 %v1573_v57  ;;  %1804 = vmatpush.msrb.mxu3 %v7335_v18  ;;  %v7579_v57 = vand.u32 4294901760, %v109_v41  ;;  %v7622_v12 = vsub.f32 %v105_v61, %v7596_v55 }
  0xe1   :  { %1651 = vmatpush.msrb.mxu0 %v7416_v6  ;;  %1686 = vmatpush.msrb.mxu1 %v7335_v18  ;;  %v10964_v18 = vand.u32 4294901760, %v7556_v21  ;;  %v7592_v32 = vsub.f32 %v113_v52, %v7565_v19  ;;  %v1886_v11 = vsub.f32 %v7569_v33, %v10963_v22  ;;  %v7671_v52 = vsub.f32 %v89_v40, %v7643_v13  ;;  %v173_v22 = vld [vmem:[#allocation5 + $0x348] sm:$0xff] }
  0xe2   :  { %1763 = vmatpush.msrb.mxu2 %v1579_v5  ;;  %1806 = vmatpush.msrb.mxu3 %v7348_v48  ;;  %v7582_v5 = vsub.f32 %v117_v50, %v7560_v29  ;;  %v7609_v38 = vsub.f32 %v109_v41, %v7579_v57  ;;  %v10956_v28 = vand.u32 4294901760, %v7622_v12  ;;  %v7693_v40 = vsub.f32 %v81_v46, %v7667_v25 }
  0xe3   :  { %1654 = vmatmul.f32.vlgmr.msrb.gmra.mxu0 %v7405_v58  ;;  %1688 = vmatpush.msrb.mxu1 %v7348_v48  ;;  %v1874_v48 = vsub.f32 %v7548_v24, %v10965_v35  ;;  %v1880_v6 = vsub.f32 %v7556_v21, %v10964_v18  ;;  %v7775_v18 = vand.u32 4294901760, %v173_v22  ;;  %v161_v58 = vld [vmem:[#allocation5 + $0x2e8] sm:$0xff] }
  0xe4   :  { %1823 = vmatpush.msra.mxu0 %v7531_v37  ;;  %1767 = vmatpush.msrb.mxu2 %v1585_v26  ;;  %v97_v26 = vld [vmem:[#allocation5 + $0xe8] sm:$0xff]  ;;  %v10961_v60 = vand.u32 4294901760, %v7582_v5  ;;  %v10958_v23 = vand.u32 4294901760, %v7609_v38  ;;  %v1910_v14 = vsub.f32 %v7622_v12, %v10956_v28  ;;  %v7818_v51 = vand.u32 4294901760, %v161_v58 }
  0xe5   :  { %1808 = vmatpush.msrb.mxu3 %v7363_v8  ;;  %1690 = vmatpush.msrb.mxu1 %v7363_v8  ;;  %v101_v8 = vld [vmem:[#allocation5 + $0x108] sm:$0xff]  ;;  %v1875_v43 = vand.u32 4294901760, %v1874_v48  ;;  %v7619_v56 = vand.u32 4294901760, %v97_v26  ;;  %v1881_v16 = vand.u32 4294901760, %v1880_v6  ;;  %v7683_v6 = vsub.f32 %v85_v7, %v7658_v47 }
  0xe6   :  { %1825 = vmatpush.msra.mxu0 %v7538_v34  ;;  %1771 = vmatpush.msrb.mxu2 %v1591_v9  ;;  %v7605_v15 = vand.u32 4294901760, %v101_v8  ;;  %v93_v9 = vld [vmem:[#allocation5 + $0xc8] sm:$0xff]  ;;  %v1892_v63 = vsub.f32 %v7582_v5, %v10961_v60  ;;  %v1904_v42 = vsub.f32 %v7609_v38, %v10958_v23  ;;  %v7845_v4 = vsub.f32 %v161_v58, %v7818_v51 }
  0xe7   :  { %1810 = vmatpush.msrb.mxu3 %v7376_v53  ;;  %1773 = vmatmul.f32.vlgmr.msrb.gmra.mxu2 %v7378_v45  ;;  %v7626_v0 = vand.u32 4294901760, %v93_v9  ;;  %v7647_v36 = vsub.f32 %v97_v26, %v7619_v56  ;;  %v73_v26 = vld [vmem:[#allocation5 + $0x28] sm:$0xff] }
  0xe8   :  { %1827 = vmatpush.msra.mxu0 %v7545_v54  ;;  %1978 = vmatpush.msra.mxu2 %v7548_v24  ;;  %v7635_v62 = vsub.f32 %v101_v8, %v7605_v15  ;;  %v1893_v2 = vand.u32 4294901760, %v1892_v63  ;;  %v1905_v61 = vand.u32 4294901760, %v1904_v42  ;;  %v7680_v8 = vand.u32 4294901760, %v77_v30  ;;  %v69_v63 = vld [vmem:[#allocation5 + $0x8] sm:$0xff] }
  0xe9   :  { %1692 = vmatpush.msrb.mxu1 %v7376_v53  ;;  %1812 = vmatpush.msrb.mxu3 %v7391_v59  ;;  %v10959_v53 = vand.u32 4294901760, %v7592_v32  ;;  %v7651_v39 = vsub.f32 %v93_v9, %v7626_v0  ;;  %v10954_v50 = vand.u32 4294901760, %v7647_v36  ;;  %v193_v9 = vld [vmem:[#allocation5 + $0x3e8] sm:$0xff]  ;;  %v10960_v42 = vand.u32 4294901760, %v7683_v6 }
  0xea   :  { %1814 = vmatmul.f32.vlgmr.msrb.gmra.mxu3 %v7378_v45  ;;  %1829 = vmatpush.msra.mxu0 %v7560_v29  ;;  %v10955_v20 = vand.u32 4294901760, %v7635_v62  ;;  %v189_v7 = vld [vmem:[#allocation5 + $0x3c8] sm:$0xff]  ;;  %v7705_v46 = vsub.f32 %v77_v30, %v7680_v8  ;;  %v10962_v30 = vand.u32 4294901760, %v7693_v40 }
  0xeb   :  { %1981 = vmatpush.msra.mxu2 %v7556_v21  ;;  %2036 = vmatpush.msra.mxu3 %v7531_v37  ;;  %v1898_v44 = vsub.f32 %v7592_v32, %v10959_v53  ;;  %v10953_v41 = vand.u32 4294901760, %v7651_v39  ;;  %v181_v53 = vld [vmem:[#allocation5 + $0x388] sm:$0xff] }
  0xec   :  { %1694 = vmatpush.msrb.mxu1 %v7391_v59  ;;  %1659 = vmatmul.f32.gmra.mxu0 %v7456_v27  ;;  %v1887_v59 = vand.u32 4294901760, %v1886_v11  ;;  %v1916_v48 = vsub.f32 %v7635_v62, %v10955_v20  ;;  %v1922_v11 = vsub.f32 %v7647_v36, %v10954_v50 }
  0xed   :  { %1698 = vmatmul.f32.vlgmr.msrb.gmra.mxu1 %v7427_v31  ;;  %1831 = vmatpush.msra.mxu0 %v7565_v19  ;;  %v1899_v49 = vand.u32 4294901760, %v1898_v44  ;;  %v7700_v44 = vand.u32 4294901760, %v73_v26  ;;  %v165_v31 = vld [vmem:[#allocation5 + $0x308] sm:$0xff] }
  0xee   :  { %1876 = vmatpush.msra.mxu1 %v1875_v43  ;;  %1984 = vmatpush.msra.mxu2 %v7569_v33  ;;  %v1911_v43 = vand.u32 4294901760, %v1910_v14  ;;  %v7711_v14 = vand.u32 4294901760, %v69_v63  ;;  %v1923_v50 = vand.u32 4294901760, %v1922_v11  ;;  %v10966_v11 = vand.u32 4294901760, %v7705_v46 }
  0xef   :  { %2038 = vmatpush.msra.mxu3 %v7538_v34  ;;  %1833 = vmatpush.msra.mxu0 %v7579_v57  ;;  %v7723_v28 = vsub.f32 %v73_v26, %v7700_v44  ;;  %v7803_v3 = vand.u32 4294901760, %v165_v31 }
  0xf0   :  { %1882 = vmatpush.msra.mxu1 %v1881_v16  ;;  %1987 = vmatpush.msra.mxu2 %v7582_v5  ;;  %v10957_v16 = vand.u32 4294901760, %v7671_v52  ;;  %v7738_v26 = vsub.f32 %v69_v63, %v7711_v14  ;;  %v7750_v63 = vand.u32 4294901760, %v181_v53 }
  0xf1   :  { %2040 = vmatpush.msra.mxu3 %v7545_v54  ;;  %1777 = vmatmul.f32.gmra.mxu2 %v7437_v10  ;;  %v10971_v60 = vand.u32 4294901760, %v7723_v28 }
  0xf2   :  { %1835 = vmatpush.msra.mxu0 %v7596_v55  ;;  %1888 = vmatpush.msra.mxu1 %v1887_v59  ;;  %v1928_v59 = vsub.f32 %v7651_v39, %v10953_v41  ;;  %v185_v41 = vld [vmem:[#allocation5 + $0x3a8] sm:$0xff]  ;;  %11202 = vst [vmem:[#allocation45_spill] sm:$0xff] %v7750_v63 }
  0xf3   :  { %1990 = vmatpush.msra.mxu2 %v7592_v32  ;;  %2042 = vmatpush.msra.mxu3 %v7560_v29  ;;  %v7733_v23 = vand.u32 4294901760, %v185_v41 }
  0xf4   :  { %1818 = vmatmul.f32.gmra.mxu3 %v7437_v10  ;;  %1837 = vmatpush.msra.mxu0 %v7605_v15  ;;  %v1929_v20 = vand.u32 4294901760, %v1928_v59 }
  0xf5   :  { %1894 = vmatpush.msra.mxu1 %v1893_v2  ;;  %1993 = vmatpush.msra.mxu2 %v7609_v38  ;;  %v1917_v2 = vand.u32 4294901760, %v1916_v48  ;;  %v7718_v48 = vand.u32 4294901760, %v189_v7 }
  0xf6   :  { %2044 = vmatpush.msra.mxu3 %v7565_v19  ;;  %1704 = vmatmul.f32.gmra.mxu1 %v7467_v1 }
  0xf7   :  { %1839 = vmatpush.msra.mxu0 %v7619_v56  ;;  %1900 = vmatpush.msra.mxu1 %v1899_v49  ;;  %v7707_v49 = vand.u32 4294901760, %v193_v9  ;;  %11201 = vst [vmem:[#allocation33_spill] sm:$0xff] %v7718_v48 }
  0xf8   :  { %1996 = vmatpush.msra.mxu2 %v7622_v12  ;;  %2046 = vmatpush.msra.mxu3 %v7579_v57 }
  0xf9   :  { %1841 = vmatpush.msra.mxu0 %v7626_v0  ;;  %1906 = vmatpush.msra.mxu1 %v1905_v61  ;;  %v1934_v61 = vsub.f32 %v7671_v52, %v10957_v16  ;;  %v7731_v16 = vsub.f32 %v193_v9, %v7707_v49  ;;  %v7745_v9 = vsub.f32 %v189_v7, %v7718_v48 }
  0xfa   :  { %1999 = vmatpush.msra.mxu2 %v7635_v62  ;;  %2048 = vmatpush.msra.mxu3 %v7596_v55  ;;  %v7773_v7 = vsub.f32 %v181_v53, %v7750_v63  ;;  %v11204_v53 = vand.u32 4294901760, %v7738_v26 }
  0xfb   :  { %1843 = vmatpush.msra.mxu0 %v7643_v13  ;;  %1912 = vmatpush.msra.mxu1 %v1911_v43  ;;  %v1940_v43 = vsub.f32 %v7683_v6, %v10960_v42  ;;  %v1935_v59 = vand.u32 4294901760, %v1934_v61  ;;  %v177_v42 = vld [vmem:[#allocation5 + $0x368] sm:$0xff]  ;;  %v1952_v61 = vsub.f32 %v7705_v46, %v10966_v11 }
  0xfc   :  { %2002 = vmatpush.msra.mxu2 %v7647_v36  ;;  %2050 = vmatpush.msra.mxu3 %v7605_v15  ;;  %v7763_v35 = vand.u32 4294901760, %v177_v42  ;;  %v169_v11 = vld [vmem:[#allocation5 + $0x328] sm:$0xff] }
  0xfd   :  { %1845 = vmatpush.msra.mxu0 %v7658_v47  ;;  %1918 = vmatpush.msra.mxu1 %v1917_v2  ;;  %v1946_v2 = vsub.f32 %v7693_v40, %v10962_v30  ;;  %v7758_v30 = vsub.f32 %v185_v41, %v7733_v23  ;;  %v1958_v41 = vsub.f32 %v7723_v28, %v10971_v60 }
  0xfe   :  { %2005 = vmatpush.msra.mxu2 %v7651_v39  ;;  %2052 = vmatpush.msra.mxu3 %v7619_v56  ;;  %v1964_v60 = vsub.f32 %v7738_v26, %v11204_v53  ;;  %v7788_v27 = vsub.f32 %v177_v42, %v7763_v35  ;;  %v7801_v42 = vsub.f32 %v173_v22, %v7775_v18 }
  0xff   :  { %1847 = vmatpush.msra.mxu0 %v7667_v25  ;;  %1924 = vmatpush.msra.mxu1 %v1923_v50  ;;  %v1941_v50 = vand.u32 4294901760, %v1940_v43  ;;  %v1959_v10 = vand.u32 4294901760, %v1958_v41  ;;  %v7831_v41 = vand.u32 4294901760, %v157_v17 }
 0x100   :  { %2008 = vmatpush.msra.mxu2 %v7671_v52  ;;  %2054 = vmatpush.msra.mxu3 %v7626_v0  ;;  %v1965_v22 = vand.u32 4294901760, %v1964_v60 }
 0x101   :  { %1849 = vmatpush.msra.mxu0 %v7680_v8  ;;  %1930 = vmatpush.msra.mxu1 %v1929_v20  ;;  %v1947_v20 = vand.u32 4294901760, %v1946_v2  ;;  %v11203_v2 = vand.u32 4294901760, %v7731_v16  ;;  %v7858_v58 = vsub.f32 %v157_v17, %v7831_v41 }
 0x102   :  { %2011 = vmatpush.msra.mxu2 %v7683_v6  ;;  %2056 = vmatpush.msra.mxu3 %v7643_v13 }
 0x103   :  { %1851 = vmatpush.msra.mxu0 %v7700_v44  ;;  %1936 = vmatpush.msra.mxu1 %v1935_v59  ;;  %v1953_v59 = vand.u32 4294901760, %v1952_v61  ;;  %v2246_v43 = vsub.f32 %v7731_v16, %v11203_v2  ;;  %v11206_v61 = vand.u32 4294901760, %v7548_v24  ;;  %v11207_v2 = vand.u32 4294901760, %v7745_v9  ;;  %v7805_v24 = vpop.f32.mrf.mxu0 }
 0x104   :  { %2014 = vmatpush.msra.mxu2 %v7693_v40  ;;  %2058 = vmatpush.msra.mxu3 %v7658_v47 }
 0x105   :  { %1853 = vmatpush.msra.mxu0 %v7711_v14  ;;  %1942 = vmatpush.msra.mxu1 %v1941_v50  ;;  %v7790_v50 = vand.u32 4294901760, %v169_v11  ;;  %v2252_v1 = vsub.f32 %v7745_v9, %v11207_v2  ;;  %v11209_v2 = vand.u32 4294901760, %v7758_v30 }
 0x106   :  { %2017 = vmatpush.msra.mxu2 %v7705_v46  ;;  %2060 = vmatpush.msra.mxu3 %v7667_v25 }
 0x107   :  { %11205 = vst [vmem:[#allocation46_spill] sm:$0xff] %v7790_v50  ;;  %2083 = vmatpush.msrb.mxu0 %v11206_v61  ;;  %1948 = vmatpush.msra.mxu1 %v1947_v20  ;;  %v11208_v20 = vand.u32 4294901760, %v7556_v21  ;;  %v2247_v61 = vand.u32 4294901760, %v2246_v43  ;;  %v2258_v45 = vsub.f32 %v7758_v30, %v11209_v2  ;;  %v7816_v53 = vsub.f32 %v169_v11, %v7790_v50 }
 0x108   :  { %2020 = vmatpush.msra.mxu2 %v7723_v28  ;;  %2062 = vmatpush.msra.mxu3 %v7680_v8  ;;  %v11210_v21 = vand.u32 4294901760, %v7569_v33  ;;  %v2253_v43 = vand.u32 4294901760, %v2252_v1  ;;  %v7829_v11 = vsub.f32 %v165_v31, %v7803_v3  ;;  %v11212_v33 = vand.u32 4294901760, %v7582_v5 }
 0x109   :  { %2087 = vmatpush.msrb.mxu0 %v11208_v20  ;;  %1954 = vmatpush.msra.mxu1 %v1953_v59  ;;  %v153_v59 = vld [vmem:[#allocation5 + $0x2a8] sm:$0xff]  ;;  %v11211_v20 = vand.u32 4294901760, %v7773_v7  ;;  %v2259_v1 = vand.u32 4294901760, %v2258_v45  ;;  %v11214_v45 = vand.u32 4294901760, %v7592_v32  ;;  %v11216_v32 = vand.u32 4294901760, %v7609_v38 }
 0x10a   :  { %2023 = vmatpush.msra.mxu2 %v7738_v26  ;;  %2064 = vmatpush.msra.mxu3 %v7700_v44  ;;  %v7847_v5 = vand.u32 4294901760, %v153_v59 }
 0x10b   :  { %2091 = vmatpush.msrb.mxu0 %v11210_v21  ;;  %1960 = vmatpush.msra.mxu1 %v1959_v10  ;;  %v2264_v60 = vsub.f32 %v7773_v7, %v11211_v20  ;;  %v7836_v10 = vpop.f32.mrf.mxu1  ;;  %v7838_v21 = vpop.f32.mrf.mxu2  ;;  %v11213_v20 = vand.u32 4294901760, %v7788_v27 }
 0x10c   :  { %2195 = vmatpush.msrb.mxu2 %v7707_v49  ;;  %2066 = vmatpush.msra.mxu3 %v7711_v14  ;;  %v7873_v31 = vsub.f32 %v153_v59, %v7847_v5  ;;  %v7875_v38 = vpop.f32.mrf.mxu0 }
 0x10d   :  { %2095 = vmatpush.msrb.mxu0 %v11212_v33  ;;  %1966 = vmatpush.msra.mxu1 %v1965_v22  ;;  %v2270_v2 = vsub.f32 %v7788_v27, %v11213_v20  ;;  %v149_v33 = vld [vmem:[#allocation5 + $0x288] sm:$0xff]  ;;  %v11215_v22 = vand.u32 4294901760, %v7801_v42 }
 0x10e   :  { %2197 = vmatpush.msrb.mxu2 %v7718_v48  ;;  %2248 = vmatpush.msrb.mxu3 %v2247_v61  ;;  %v2265_v61 = vand.u32 4294901760, %v2264_v60  ;;  %v7860_v48 = vpop.f32.mrf.mxu3 }
 0x10f   :  { %2099 = vmatpush.msrb.mxu0 %v11214_v45  ;;  %2154 = vmatpush.msrb.mxu1 %v7531_v37  ;;  %v2276_v20 = vsub.f32 %v7801_v42, %v11215_v22  ;;  %v7865_v37 = vand.u32 4294901760, %v149_v33  ;;  %v2271_v60 = vand.u32 4294901760, %v2270_v2  ;;  %v11217_v45 = vand.u32 4294901760, %v7816_v53 }
 0x110   :  { %2199 = vmatpush.msrb.mxu2 %v7733_v23  ;;  %2254 = vmatpush.msrb.mxu3 %v2253_v43  ;;  %v145_v43 = vld [vmem:[#allocation5 + $0x268] sm:$0xff] }
 0x111   :  { %2103 = vmatpush.msrb.mxu0 %v11216_v32  ;;  %2156 = vmatpush.msrb.mxu1 %v7538_v34  ;;  %v2282_v22 = vsub.f32 %v7816_v53, %v11217_v45  ;;  %v11218_v34 = vand.u32 4294901760, %v7622_v12  ;;  %v141_v32 = vld [vmem:[#allocation5 + $0x248] sm:$0xff]  ;;  %v2277_v2 = vand.u32 4294901760, %v2276_v20  ;;  %v7885_v59 = vand.u32 4294901760, %v145_v43 }
 0x112   :  { %2201 = vmatpush.msrb.mxu2 %v7750_v63  ;;  %2260 = vmatpush.msrb.mxu3 %v2259_v1  ;;  %v11219_v1 = vand.u32 4294901760, %v7829_v11  ;;  %v11220_v63 = vand.u32 4294901760, %v7635_v62  ;;  %v137_v12 = vld [vmem:[#allocation5 + $0x228] sm:$0xff]  ;;  %v11221_v20 = vand.u32 4294901760, %v7845_v4  ;;  %v7898_v17 = vand.u32 4294901760, %v141_v32 }
 0x113   :  { %2107 = vmatpush.msrb.mxu0 %v11218_v34  ;;  %2158 = vmatpush.msrb.mxu1 %v7545_v54  ;;  %v7891_v54 = vsub.f32 %v149_v33, %v7865_v37  ;;  %v11222_v62 = vand.u32 4294901760, %v7647_v36  ;;  %v133_v36 = vld [vmem:[#allocation5 + $0x208] sm:$0xff] }
 0x114   :  { %2203 = vmatpush.msrb.mxu2 %v7763_v35  ;;  %2266 = vmatpush.msrb.mxu3 %v2265_v61  ;;  %v2288_v45 = vsub.f32 %v7829_v11, %v11219_v1  ;;  %v2283_v61 = vand.u32 4294901760, %v2282_v22  ;;  %v2294_v34 = vsub.f32 %v7845_v4, %v11221_v20  ;;  %v7912_v20 = vsub.f32 %v145_v43, %v7885_v59 }
 0x115   :  { %2111 = vmatpush.msrb.mxu0 %v11220_v63  ;;  %2160 = vmatpush.msrb.mxu1 %v7560_v29  ;;  %v7903_v29 = vpop.f32.mrf.mxu1  ;;  %v7905_v63 = vpop.f32.mrf.mxu2  ;;  %v7914_v1 = vand.u32 4294901760, %v137_v12  ;;  %v7925_v43 = vsub.f32 %v141_v32, %v7898_v17 }
 0x116   :  { %2205 = vmatpush.msrb.mxu2 %v7775_v18  ;;  %2272 = vmatpush.msrb.mxu3 %v2271_v60  ;;  %v2289_v33 = vand.u32 4294901760, %v2288_v45  ;;  %v11223_v60 = vand.u32 4294901760, %v7858_v58  ;;  %v11225_v45 = vand.u32 4294901760, %v7873_v31  ;;  %v7939_v32 = vpop.f32.mrf.mxu0 }
 0x117   :  { %2115 = vmatpush.msrb.mxu0 %v11222_v62  ;;  %2162 = vmatpush.msrb.mxu1 %v7565_v19  ;;  %v11224_v19 = vand.u32 4294901760, %v7651_v39  ;;  %v2311_v62 = vand.u32 4294901760, %v7891_v54  ;;  %v11226_v39 = vand.u32 4294901760, %v7671_v52 }
 0x118   :  { %2207 = vmatpush.msrb.mxu2 %v7790_v50  ;;  %2278 = vmatpush.msrb.mxu3 %v2277_v2  ;;  %v2300_v22 = vsub.f32 %v7858_v58, %v11223_v60  ;;  %v2295_v2 = vand.u32 4294901760, %v2294_v34  ;;  %v2306_v60 = vsub.f32 %v7873_v31, %v11225_v45  ;;  %v7927_v50 = vpop.f32.mrf.mxu3  ;;  %v2317_v34 = vand.u32 4294901760, %v7912_v20 }
 0x119   :  { %2119 = vmatpush.msrb.mxu0 %v11224_v19  ;;  %2164 = vmatpush.msrb.mxu1 %v7579_v57  ;;  %v7932_v57 = vand.u32 4294901760, %v133_v36  ;;  %v7937_v19 = vsub.f32 %v137_v12, %v7914_v1  ;;  %v11227_v45 = vand.u32 4294901760, %v7683_v6  ;;  %v11228_v12 = vand.u32 4294901760, %v7693_v40 }
 0x11a   :  { %2209 = vmatpush.msrb.mxu2 %v7803_v3  ;;  %2284 = vmatpush.msrb.mxu3 %v2283_v61  ;;  %v2301_v61 = vand.u32 4294901760, %v2300_v22  ;;  %v2307_v52 = vand.u32 4294901760, %v2306_v60  ;;  %v324_v22 = vld [vmem:[#allocation7] sm:$0xf]  ;;  %v11229_v60 = vand.u32 4294901760, %v7705_v46  ;;  %v11231_v46 = vand.u32 4294901760, %v7723_v28 }
 0x11b   :  { %2123 = vmatpush.msrb.mxu0 %v11226_v39  ;;  %2166 = vmatpush.msrb.mxu1 %v7596_v55  ;;  %v2312_v55 = vsub.f32 %v7891_v54, %v2311_v62  ;;  %v7953_v6 = vsub.f32 %v133_v36, %v7932_v57  ;;  %v326_v39 = vperm.slane %v324_v22, 0  ;;  %v11233_v28 = vld [vmem:[#allocation15_spill] sm:$0xff] }
 0x11c   :  { %2211 = vmatpush.msrb.mxu2 %v7818_v51  ;;  %2290 = vmatpush.msrb.mxu3 %v2289_v33  ;;  %v10994_v33 = vand.u32 4294901760, %v7925_v43 }
 0x11d   :  { %2127 = vmatpush.msrb.mxu0 %v11227_v45  ;;  %2168 = vmatpush.msrb.mxu1 %v7605_v15  ;;  %v2318_v15 = vsub.f32 %v7912_v20, %v2317_v34  ;;  %v2313_v40 = vand.u32 4294901760, %v2312_v55  ;;  %v7965_v36 = vpop.f32.mrf.mxu2  ;;  %v11230_v45 = vld [vmem:[#allocation14_spill] sm:$0xff] }
 0x11e   :  { %2213 = vmatpush.msrb.mxu2 %v7831_v41  ;;  %2296 = vmatpush.msrb.mxu3 %v2295_v2  ;;  %v2329_v2 = vand.u32 4294901760, %v7937_v19 }
 0x11f   :  { %2131 = vmatpush.msrb.mxu0 %v11228_v12  ;;  %2170 = vmatpush.msrb.mxu1 %v7619_v56  ;;  %v7963_v56 = vpop.f32.mrf.mxu1  ;;  %v2319_v55 = vand.u32 4294901760, %v2318_v15  ;;  %v11232_v12 = vld [vmem:[#allocation18_spill] sm:$0xff] }
 0x120   :  { %2215 = vmatpush.msrb.mxu2 %v7847_v5  ;;  %2302 = vmatpush.msrb.mxu3 %v2301_v61  ;;  %v2324_v61 = vsub.f32 %v7925_v43, %v10994_v33  ;;  %v7980_v22 = vpop.f32.mrf.mxu3  ;;  %v7987_v33 = vpop.f32.mrf.mxu0 }
 0x121   :  { %2135 = vmatpush.msrb.mxu0 %v11229_v60  ;;  %2172 = vmatpush.msrb.mxu1 %v7626_v0  ;;  %v2335_v0 = vand.u32 4294901760, %v7953_v6  ;;  %v373_v60 = vadd.f32 %v7805_v24, %v326_v39 }
 0x122   :  { %2217 = vmatpush.msrb.mxu2 %v7865_v37  ;;  %2308 = vmatpush.msrb.mxu3 %v2307_v52  ;;  %v2330_v52 = vsub.f32 %v7937_v19, %v2329_v2 }
 0x123   :  { %2026 = vmatmul.f32.vlgmr.msra.gmra.mxu2 %v11230_v45  ;;  %2139 = vmatpush.msrb.mxu0 %v11231_v46  ;;  %v11234_v46 = vand.u32 4294901760, %v7738_v26  ;;  %v2336_v15 = vsub.f32 %v7953_v6, %v2335_v0  ;;  %v482_v26 = vadd.f32 %v7836_v10, %v373_v60  ;;  %v11236_v10 = vld [vmem:[#allocation17_spill] sm:$0xff]  ;;  %v11237_v60 = vand.u32 4294901760, %v7731_v16 }
 0x124   :  { %2174 = vmatpush.msrb.mxu1 %v7643_v13  ;;  %2219 = vmatpush.msrb.mxu2 %v7885_v59  ;;  %v2325_v13 = vand.u32 4294901760, %v2324_v61  ;;  %v2331_v24 = vand.u32 4294901760, %v2330_v52 }
 0x125   :  { %2314 = vmatpush.msrb.mxu3 %v2313_v40  ;;  %1859 = vmatmul.f32.vlgmr.msra.gmra.mxu0 %v11232_v12  ;;  %v11235_v40 = vld [vmem:[#allocation13_spill] sm:$0xff]  ;;  %v540_v52 = vadd.f32 %v7838_v21, %v482_v26  ;;  %v11242_v21 = vand.u32 4294901760, %v7758_v30 }
 0x126   :  { %2070 = vmatmul.f32.vlgmr.msra.gmra.mxu3 %v11233_v28  ;;  %2143 = vmatpush.msrb.mxu0 %v11234_v46  ;;  %v8000_v46 = vpop.f32.mrf.mxu2 }
 0x127   :  { %2176 = vmatpush.msrb.mxu1 %v7658_v47  ;;  %2221 = vmatpush.msrb.mxu2 %v7898_v17  ;;  %v7998_v61 = vpop.f32.mrf.mxu1  ;;  %v2337_v47 = vand.u32 4294901760, %v2336_v15  ;;  %v11240_v15 = vand.u32 4294901760, %v7745_v9 }
 0x128   :  { %2320 = vmatpush.msrb.mxu3 %v2319_v55  ;;  %1968 = vmatmul.f32.vlgmr.msra.gmra.mxu1 %v11235_v40  ;;  %v381_v55 = vadd.f32 %v7875_v38, %v326_v39  ;;  %v11239_v39 = vld [vmem:[#allocation19_spill] sm:$0xff] }
 0x129   :  { %2350 = vmatpush.msra.mxu0 %v7731_v16  ;;  %2178 = vmatpush.msrb.mxu1 %v7667_v25  ;;  %v8007_v25 = vpop.f32.mrf.mxu3  ;;  %v584_v16 = vadd.f32 %v7860_v48, %v540_v52  ;;  %v11248_v52 = vld [vmem:[#allocation20_spill] sm:$0xff] }
 0x12a   :  { %2223 = vmatpush.msrb.mxu2 %v7914_v1  ;;  %2326 = vmatpush.msrb.mxu3 %v2325_v13  ;;  %v486_v38 = vadd.f32 %v7903_v29, %v381_v55  ;;  %v911_v13 = vpop.f32.mrf.mxu0 }
 0x12b   :  { %2353 = vmatpush.msra.mxu0 %v7745_v9  ;;  %2180 = vmatpush.msrb.mxu1 %v7680_v8  ;;  %v11238_v8 = vld [vmem:[#allocation22_spill] sm:$0xff]  ;;  %v11243_v9 = vld [vmem:[#allocation33_spill] sm:$0xff]  ;;  %v659_v48 = vadd.f32 %v7939_v32, %v584_v16  ;;  %v11253_v16 = vand.u32 4294901760, %v7845_v4 }
 0x12c   :  { %2225 = vmatpush.msrb.mxu2 %v7932_v57  ;;  %2332 = vmatpush.msrb.mxu3 %v2331_v24  ;;  %v545_v29 = vadd.f32 %v7905_v63, %v486_v38  ;;  %v11245_v63 = vld [vmem:[#allocation12_spill] sm:$0xff]  ;;  %v11247_v32 = vld [vmem:[#allocation45_spill] sm:$0xff]  ;;  %v11250_v38 = vand.u32 4294901760, %v7816_v53 }
 0x12d   :  { %2031 = vmatmul.f32.gmra.mxu2 %v11236_v10  ;;  %2356 = vmatpush.msra.mxu0 %v7758_v30  ;;  %v700_v55 = vadd.f32 %v7963_v56, %v659_v48  ;;  %v241_v48 = vld [vmem:[#allocation5 + $0x568] sm:$0xff] }
 0x12e   :  { %2455 = vmatpush.msra.mxu2 %v11237_v60  ;;  %2182 = vmatpush.msrb.mxu1 %v7700_v44  ;;  %v11241_v44 = vld [vmem:[#allocation16_spill] sm:$0xff]  ;;  %v8029_v26 = vpop.f32.mrf.mxu2 }
 0x12f   :  { %2338 = vmatpush.msrb.mxu3 %v2337_v47  ;;  %1867 = vmatmul.f32.gmra.mxu0 %v11238_v8  ;;  %v955_v24 = vpop.f32.mrf.mxu1  ;;  %v11246_v47 = vand.u32 4294901760, %v7788_v27 }
 0x130   :  { %2076 = vmatmul.f32.gmra.mxu3 %v11239_v39  ;;  %2359 = vmatpush.msra.mxu0 %v7773_v7 }
 0x131   :  { %2459 = vmatpush.msra.mxu2 %v11240_v15  ;;  %2526 = vmatpush.msra.mxu3 %v7707_v49  ;;  %v8039_v30 = vpop.f32.mrf.mxu3 }
 0x132   :  { %2184 = vmatpush.msrb.mxu1 %v7711_v14  ;;  %2362 = vmatpush.msra.mxu0 %v7788_v27  ;;  %v11244_v14 = vand.u32 4294901760, %v7773_v7  ;;  %v8047_v7 = vpop.f32.mrf.mxu0 }
 0x133   :  { %1972 = vmatmul.f32.gmra.mxu1 %v11241_v44  ;;  %2463 = vmatpush.msra.mxu2 %v11242_v21  ;;  %v11254_v21 = vand.u32 4294901760, %v7858_v58 }
 0x134   :  { %2408 = vmatpush.msra.mxu1 %v7707_v49  ;;  %2528 = vmatpush.msra.mxu3 %v11243_v9  ;;  %v590_v49 = vadd.f32 %v7927_v50, %v545_v29  ;;  %v11249_v50 = vand.u32 4294901760, %v7801_v42 }
 0x135   :  { %2365 = vmatpush.msra.mxu0 %v7801_v42  ;;  %2467 = vmatpush.msra.mxu2 %v11244_v14 }
 0x136   :  { %2410 = vmatpush.msra.mxu1 %v11243_v9  ;;  %2530 = vmatpush.msra.mxu3 %v7733_v23  ;;  %v663_v27 = vadd.f32 %v7987_v33, %v590_v49  ;;  %v8065_v60 = vpop.f32.mrf.mxu2  ;;  %v11251_v33 = vand.u32 4294901760, %v7829_v11  ;;  %v11257_v49 = vld [vmem:[#allocation24_spill] sm:$0xff] }
 0x137   :  { %2231 = vmatmul.f32.vlgmr.msrb.gmra.mxu2 %v11245_v63  ;;  %2368 = vmatpush.msra.mxu0 %v7816_v53  ;;  %v8063_v56 = vpop.f32.mrf.mxu1 }
 0x138   :  { %2412 = vmatpush.msra.mxu1 %v7733_v23  ;;  %2471 = vmatpush.msra.mxu2 %v11246_v47  ;;  %v745_v23 = vadd.f32 %v7965_v36, %v700_v55  ;;  %v704_v42 = vadd.f32 %v7998_v61, %v663_v27  ;;  %v11258_v47 = vand.u32 4294901760, %v7925_v43 }
 0x139   :  { %2532 = vmatpush.msra.mxu3 %v11247_v32  ;;  %2145 = vmatmul.f32.vlgmr.msrb.gmra.mxu0 %v11235_v40  ;;  %v8076_v36 = vpop.f32.mrf.mxu3 }
 0x13a   :  { %2340 = vmatmul.f32.vlgmr.msrb.gmra.mxu3 %v11248_v52  ;;  %2371 = vmatpush.msra.mxu0 %v7829_v11  ;;  %v1116_v15 = vpop.f32.mrf.mxu0  ;;  %v854_v53 = vadd.f32 %v7980_v22, %v745_v23  ;;  %v753_v61 = vadd.f32 %v8000_v46, %v704_v42  ;;  %v233_v42 = vld [vmem:[#allocation5 + $0x528] sm:$0xff] }
 0x13b   :  { %2414 = vmatpush.msra.mxu1 %v11247_v32  ;;  %2475 = vmatpush.msra.mxu2 %v11249_v50  ;;  %v237_v50 = vld [vmem:[#allocation5 + $0x548] sm:$0xff] }
 0x13c   :  { %2534 = vmatpush.msra.mxu3 %v7763_v35  ;;  %2186 = vmatmul.f32.vlgmr.msrb.gmra.mxu1 %v11235_v40  ;;  %v912_v11 = vadd.f32 %v911_v13, %v854_v53  ;;  %v858_v13 = vadd.f32 %v8007_v25, %v753_v61 }
 0x13d   :  { %2374 = vmatpush.msra.mxu0 %v7845_v4  ;;  %2416 = vmatpush.msra.mxu1 %v7763_v35  ;;  %v11252_v35 = vld [vmem:[#allocation46_spill] sm:$0xff]  ;;  %v253_v4 = vld [vmem:[#allocation5 + $0x5c8] sm:$0xff] }
 0x13e   :  { %2479 = vmatpush.msra.mxu2 %v11250_v38  ;;  %2536 = vmatpush.msra.mxu3 %v7775_v18  ;;  %v956_v22 = vadd.f32 %v955_v24, %v912_v11  ;;  %v8092_v9 = vpop.f32.mrf.mxu2 }
 0x13f   :  { %2377 = vmatpush.msra.mxu0 %v7858_v58  ;;  %2418 = vmatpush.msra.mxu1 %v7775_v18  ;;  %v257_v18 = vld [vmem:[#allocation5 + $0x5e8] sm:$0xff]  ;;  %v1225_v29 = vpop.f32.mrf.mxu1 }
 0x140   :  { %2483 = vmatpush.msra.mxu2 %v11251_v33  ;;  %2538 = vmatpush.msra.mxu3 %v11252_v35  ;;  %v8097_v46 = vand.u32 4294901760, %v257_v18  ;;  %v249_v58 = vld [vmem:[#allocation5 + $0x5a8] sm:$0xff]  ;;  %v1031_v14 = vadd.f32 %v8029_v26, %v956_v22  ;;  %v917_v26 = vadd.f32 %v8047_v7, %v858_v13 }
 0x141   :  { %2380 = vmatpush.msra.mxu0 %v7873_v31  ;;  %2420 = vmatpush.msra.mxu1 %v11252_v35  ;;  %v8107_v24 = vpop.f32.mrf.mxu3 }
 0x142   :  { %2487 = vmatpush.msra.mxu2 %v11253_v16  ;;  %2540 = vmatpush.msra.mxu3 %v7803_v3  ;;  %v8117_v25 = vsub.f32 %v257_v18, %v8097_v46  ;;  %v8176_v16 = vand.u32 4294901760, %v233_v42  ;;  %v225_v18 = vld [vmem:[#allocation5 + $0x4e8] sm:$0xff] }
 0x143   :  { %2383 = vmatpush.msra.mxu0 %v7891_v54  ;;  %2422 = vmatpush.msra.mxu1 %v7803_v3  ;;  %v11255_v3 = vand.u32 4294901760, %v7873_v31  ;;  %v11256_v31 = vld [vmem:[#allocation27_spill] sm:$0xff]  ;;  %v245_v54 = vld [vmem:[#allocation5 + $0x588] sm:$0xff] }
 0x144   :  { %2491 = vmatpush.msra.mxu2 %v11254_v21  ;;  %2542 = vmatpush.msra.mxu3 %v7818_v51  ;;  %v8133_v32 = vand.u32 4294901760, %v245_v54  ;;  %v11002_v7 = vand.u32 4294901760, %v8117_v25 }
 0x145   :  { %2149 = vmatmul.f32.gmra.mxu0 %v11241_v44  ;;  %2424 = vmatpush.msra.mxu1 %v7818_v51  ;;  %v8105_v51 = vand.u32 4294901760, %v253_v4 }
 0x146   :  { %2386 = vmatpush.msra.mxu0 %v7912_v20  ;;  %2495 = vmatpush.msra.mxu2 %v11255_v3  ;;  %v1072_v20 = vadd.f32 %v8039_v30, %v1031_v14  ;;  %v8149_v23 = vpop.f32.mrf.mxu2  ;;  %v8201_v3 = vand.u32 4294901760, %v225_v18 }
 0x147   :  { %2544 = vmatpush.msra.mxu3 %v7831_v41  ;;  %2426 = vmatpush.msra.mxu1 %v7831_v41  ;;  %v8114_v41 = vand.u32 4294901760, %v249_v58  ;;  %v8147_v30 = vpop.f32.mrf.mxu1 }
 0x148   :  { %2389 = vmatpush.msra.mxu0 %v7925_v43  ;;  %2499 = vmatpush.msra.mxu2 %v2311_v62  ;;  %v8119_v62 = vpop.f32.mrf.mxu0  ;;  %v962_v43 = vadd.f32 %v8063_v56, %v917_v26  ;;  %v1117_v27 = vadd.f32 %v1116_v15, %v1072_v20  ;;  %v8160_v56 = vsub.f32 %v245_v54, %v8133_v32  ;;  %v11260_v26 = vld [vmem:[#allocation23_spill] sm:$0xff] }
 0x149   :  { %2546 = vmatpush.msra.mxu3 %v7847_v5  ;;  %2239 = vmatmul.f32.gmra.mxu2 %v11256_v31  ;;  %v8142_v55 = vsub.f32 %v249_v58, %v8114_v41  ;;  %v8172_v15 = vpop.f32.mrf.mxu3 }
 0x14a   :  { %2392 = vmatpush.msra.mxu0 %v7937_v19  ;;  %2428 = vmatpush.msra.mxu1 %v7847_v5  ;;  %v8128_v5 = vsub.f32 %v253_v4, %v8105_v51  ;;  %v1226_v33 = vadd.f32 %v1225_v29, %v1117_v27  ;;  %v2618_v19 = vsub.f32 %v8117_v25, %v11002_v7  ;;  %v10997_v61 = vand.u32 4294901760, %v8160_v56  ;;  %v221_v29 = vld [vmem:[#allocation5 + $0x4c8] sm:$0xff] }
 0x14b   :  { %2503 = vmatpush.msra.mxu2 %v2317_v34  ;;  %2548 = vmatpush.msra.mxu3 %v7865_v37  ;;  %v8138_v34 = vand.u32 4294901760, %v241_v48  ;;  %v8214_v20 = vand.u32 4294901760, %v221_v29 }
 0x14c   :  { %2344 = vmatmul.f32.gmra.mxu3 %v11257_v49  ;;  %2395 = vmatpush.msra.mxu0 %v7953_v6  ;;  %v11000_v38 = vand.u32 4294901760, %v8128_v5  ;;  %v1035_v6 = vadd.f32 %v8065_v60, %v962_v43  ;;  %v1284_v60 = vadd.f32 %v8092_v9, %v1226_v33  ;;  %v2619_v4 = vand.u32 4294901760, %v2618_v19 }
 0x14d   :  { %2430 = vmatpush.msra.mxu1 %v7865_v37  ;;  %2507 = vmatpush.msra.mxu2 %v11258_v47  ;;  %v11259_v37 = vld [vmem:[#allocation21_spill] sm:$0xff]  ;;  %v8170_v35 = vsub.f32 %v241_v48, %v8138_v34  ;;  %v8204_v9 = vsub.f32 %v233_v42, %v8176_v16  ;;  %v2636_v47 = vsub.f32 %v8160_v56, %v10997_v61 }
 0x14e   :  { %2550 = vmatpush.msra.mxu3 %v7885_v59  ;;  %2190 = vmatmul.f32.gmra.mxu1 %v11241_v44  ;;  %v1076_v58 = vadd.f32 %v8076_v36, %v1035_v6  ;;  %v1488_v54 = vpop.f32.mrf.mxu2  ;;  %v217_v48 = vld [vmem:[#allocation5 + $0x4a8] sm:$0xff]  ;;  %v1328_v27 = vadd.f32 %v8107_v24, %v1284_v60  ;;  %v8234_v24 = vsub.f32 %v225_v18, %v8201_v3  ;;  %v11270_v44 = vand.u32 4294901760, %v8117_v25 }
 0x14f   :  { %2398 = vmatmul.f32.vlgmr.msra.gmra.mxu0 %v11259_v37  ;;  %2432 = vmatpush.msra.mxu1 %v7885_v59  ;;  %v8157_v59 = vand.u32 4294901760, %v237_v50  ;;  %v10995_v22 = vand.u32 4294901760, %v8170_v35  ;;  %v1443_v13 = vpop.f32.mrf.mxu1  ;;  %v209_v6 = vld [vmem:[#allocation5 + $0x468] sm:$0xff] }
 0x150   :  { %2567 = vmatpush.msrb.mxu0 %v8097_v46  ;;  %2511 = vmatpush.msra.mxu2 %v2329_v2  ;;  %v10999_v2 = vand.u32 4294901760, %v8142_v55  ;;  %v1402_v53 = vpop.f32.mrf.mxu0  ;;  %v1125_v43 = vadd.f32 %v8119_v62, %v1076_v58  ;;  %v10998_v62 = vand.u32 4294901760, %v8204_v9  ;;  %v2637_v58 = vand.u32 4294901760, %v2636_v47  ;;  %v11261_v47 = vld [vmem:[#allocation25_spill] sm:$0xff] }
 0x151   :  { %2552 = vmatpush.msra.mxu3 %v7898_v17  ;;  %2434 = vmatpush.msra.mxu1 %v7898_v17  ;;  %v229_v17 = vld [vmem:[#allocation5 + $0x508] sm:$0xff]  ;;  %v8190_v21 = vsub.f32 %v237_v50, %v8157_v59  ;;  %v2642_v33 = vsub.f32 %v8170_v35, %v10995_v22  ;;  %v8228_v19 = vpop.f32.mrf.mxu3  ;;  %v1403_v60 = vadd.f32 %v1402_v53, %v1328_v27  ;;  %v11003_v61 = vand.u32 4294901760, %v8234_v24 }
 0x152   :  { %2569 = vmatpush.msrb.mxu0 %v8105_v51  ;;  %2515 = vmatpush.msra.mxu2 %v2335_v0  ;;  %v2624_v0 = vsub.f32 %v8128_v5, %v11000_v38  ;;  %v8186_v11 = vand.u32 4294901760, %v229_v17  ;;  %v213_v50 = vld [vmem:[#allocation5 + $0x488] sm:$0xff] }
 0x153   :  { %2554 = vmatpush.msra.mxu3 %v7914_v1  ;;  %2517 = vmatmul.f32.vlgmr.msra.gmra.mxu2 %v11248_v52  ;;  %v10996_v36 = vand.u32 4294901760, %v8190_v21  ;;  %v2643_v53 = vand.u32 4294901760, %v2642_v33  ;;  %v1444_v27 = vadd.f32 %v1443_v13, %v1403_v60 }
 0x154   :  { %2571 = vmatpush.msrb.mxu0 %v8114_v41  ;;  %2722 = vmatpush.msrb.mxu2 %v8117_v25  ;;  %v2625_v14 = vand.u32 4294901760, %v2624_v0  ;;  %v1230_v0 = vadd.f32 %v8147_v30, %v1125_v43  ;;  %v8247_v30 = vsub.f32 %v221_v29, %v8214_v20  ;;  %v205_v43 = vld [vmem:[#allocation5 + $0x448] sm:$0xff]  ;;  %v11272_v25 = vand.u32 4294901760, %v8128_v5 }
 0x155   :  { %2436 = vmatpush.msra.mxu1 %v7914_v1  ;;  %2556 = vmatpush.msra.mxu3 %v7932_v57  ;;  %v2630_v1 = vsub.f32 %v8142_v55, %v10999_v2  ;;  %v2648_v18 = vsub.f32 %v8190_v21, %v10996_v36  ;;  %v2654_v36 = vsub.f32 %v8204_v9, %v10998_v62  ;;  %v8271_v62 = vand.u32 4294901760, %v205_v43 }
 0x156   :  { %2558 = vmatmul.f32.vlgmr.msra.gmra.mxu3 %v11248_v52  ;;  %2573 = vmatpush.msrb.mxu0 %v8133_v32  ;;  %v1496_v2 = vpop.f32.mrf.mxu2  ;;  %v1489_v38 = vadd.f32 %v1488_v54, %v1444_v27  ;;  %v309_v52 = vld [vmem:[#allocation5 + $0x788] sm:$0xff] }
 0x157   :  { %2725 = vmatpush.msrb.mxu2 %v8128_v5  ;;  %2780 = vmatpush.msrb.mxu3 %v8097_v46  ;;  %v2631_v42 = vand.u32 4294901760, %v2630_v1  ;;  %v2649_v33 = vand.u32 4294901760, %v2648_v18  ;;  %v2655_v18 = vand.u32 4294901760, %v2654_v36  ;;  %v11275_v5 = vand.u32 4294901760, %v8142_v55 }
 0x158   :  { %2438 = vmatpush.msra.mxu1 %v7932_v57  ;;  %2575 = vmatpush.msrb.mxu0 %v8138_v34  ;;  %v8218_v57 = vsub.f32 %v229_v17, %v8186_v11  ;;  %v8230_v17 = vand.u32 4294901760, %v217_v48  ;;  %v1406_v1 = vpop.f32.mrf.mxu0 }
 0x159   :  { %2442 = vmatmul.f32.vlgmr.msra.gmra.mxu1 %v11260_v26  ;;  %2728 = vmatpush.msrb.mxu2 %v8142_v55  ;;  %v8289_v54 = vpop.f32.mrf.mxu3  ;;  %v285_v55 = vld [vmem:[#allocation5 + $0x6c8] sm:$0xff] }
 0x15a   :  { %2620 = vmatpush.msrb.mxu1 %v2619_v4  ;;  %2782 = vmatpush.msrb.mxu3 %v8105_v51  ;;  %v8238_v4 = vand.u32 4294901760, %v213_v50  ;;  %v11001_v22 = vand.u32 4294901760, %v8218_v57  ;;  %v8259_v29 = vsub.f32 %v217_v48, %v8230_v17 }
 0x15b   :  { %2577 = vmatpush.msrb.mxu0 %v8157_v59  ;;  %2731 = vmatpush.msrb.mxu2 %v8160_v56 }
 0x15c   :  { %2626 = vmatpush.msrb.mxu1 %v2625_v14  ;;  %2784 = vmatpush.msrb.mxu3 %v8114_v41  ;;  %v8250_v14 = vand.u32 4294901760, %v209_v6  ;;  %v8265_v13 = vsub.f32 %v213_v50, %v8238_v4  ;;  %v2660_v60 = vsub.f32 %v8218_v57, %v11001_v22  ;;  %v201_v50 = vld [vmem:[#allocation5 + $0x428] sm:$0xff]  ;;  %v2666_v22 = vsub.f32 %v8234_v24, %v11003_v61 }
 0x15d   :  { %2521 = vmatmul.f32.gmra.mxu2 %v11257_v49  ;;  %2579 = vmatpush.msrb.mxu0 %v8176_v16  ;;  %v8294_v61 = vand.u32 4294901760, %v201_v50 }
 0x15e   :  { %2632 = vmatpush.msrb.mxu1 %v2631_v42  ;;  %2734 = vmatpush.msrb.mxu2 %v8170_v35  ;;  %v1289_v42 = vadd.f32 %v8149_v23, %v1230_v0  ;;  %v11262_v23 = vld [vmem:[#allocation26_spill] sm:$0xff]  ;;  %v1447_v0 = vpop.f32.mrf.mxu1  ;;  %v2661_v36 = vand.u32 4294901760, %v2660_v60  ;;  %v1598_v60 = vadd.f32 %v8228_v19, %v1489_v38  ;;  %v317_v19 = vld [vmem:[#allocation5 + $0x7c8] sm:$0xff] }
 0x15f   :  { %2786 = vmatpush.msrb.mxu3 %v8133_v32  ;;  %2403 = vmatmul.f32.gmra.mxu0 %v11261_v47 }
 0x160   :  { %2562 = vmatmul.f32.gmra.mxu3 %v11257_v49  ;;  %2581 = vmatpush.msrb.mxu0 %v8186_v11  ;;  %v1334_v48 = vadd.f32 %v8172_v15, %v1289_v42  ;;  %v197_v15 = vld [vmem:[#allocation5 + $0x408] sm:$0xff]  ;;  %v8297_v42 = vsub.f32 %v205_v43, %v8271_v62  ;;  %v1655_v7 = vpop.f32.mrf.mxu0 }
 0x161   :  { %2638 = vmatpush.msrb.mxu1 %v2637_v58  ;;  %2737 = vmatpush.msrb.mxu2 %v8190_v21  ;;  %v8277_v58 = vsub.f32 %v209_v6, %v8250_v14  ;;  %v11264_v6 = vand.u32 4294901760, %v8259_v29 }
 0x162   :  { %2788 = vmatpush.msrb.mxu3 %v8138_v34  ;;  %2448 = vmatmul.f32.gmra.mxu1 %v11262_v23  ;;  %v321_v23 = vld [vmem:[#allocation5 + $0x7e8] sm:$0xff]  ;;  %v1407_v47 = vadd.f32 %v1406_v1, %v1334_v48  ;;  %v8311_v1 = vand.u32 4294901760, %v197_v15  ;;  %v11265_v48 = vand.u32 4294901760, %v8265_v13 }
 0x163   :  { %2583 = vmatpush.msrb.mxu0 %v8201_v3  ;;  %2644 = vmatpush.msrb.mxu1 %v2643_v53  ;;  %v11263_v53 = vand.u32 4294901760, %v8247_v30  ;;  %v2678_v26 = vsub.f32 %v8259_v29, %v11264_v6  ;;  %v8307_v43 = vand.u32 4294901760, %v321_v23  ;;  %v8318_v6 = vsub.f32 %v201_v50, %v8294_v61 }
 0x164   :  { %2740 = vmatpush.msrb.mxu2 %v8204_v9  ;;  %2790 = vmatpush.msrb.mxu3 %v8157_v59  ;;  %v1448_v37 = vadd.f32 %v1447_v0, %v1407_v47  ;;  %v2684_v38 = vsub.f32 %v8265_v13, %v11265_v48  ;;  %v313_v48 = vld [vmem:[#allocation5 + $0x7a8] sm:$0xff] }
 0x165   :  { %2585 = vmatpush.msrb.mxu0 %v8214_v20  ;;  %2650 = vmatpush.msrb.mxu1 %v2649_v33  ;;  %v2672_v27 = vsub.f32 %v8247_v30, %v11263_v53  ;;  %v11005_v33 = vand.u32 4294901760, %v8277_v58  ;;  %v2667_v53 = vand.u32 4294901760, %v2666_v22  ;;  %v8328_v50 = vsub.f32 %v321_v23, %v8307_v43 }
 0x166   :  { %2743 = vmatpush.msrb.mxu2 %v8218_v57  ;;  %2792 = vmatpush.msrb.mxu3 %v8176_v16  ;;  %v2685_v47 = vand.u32 4294901760, %v2684_v38  ;;  %v305_v38 = vld [vmem:[#allocation5 + $0x768] sm:$0xff] }
 0x167   :  { %2587 = vmatpush.msrb.mxu0 %v8230_v17  ;;  %2656 = vmatpush.msrb.mxu1 %v2655_v18  ;;  %v2673_v22 = vand.u32 4294901760, %v2672_v27  ;;  %v1656_v18 = vadd.f32 %v1655_v7, %v1598_v60  ;;  %v2690_v0 = vsub.f32 %v8277_v58, %v11005_v33  ;;  %v2679_v7 = vand.u32 4294901760, %v2678_v26 }
 0x168   :  { %2746 = vmatpush.msrb.mxu2 %v8234_v24  ;;  %2794 = vmatpush.msrb.mxu3 %v8186_v11  ;;  %v1497_v60 = vadd.f32 %v1496_v2, %v1448_v37  ;;  %v8335_v33 = vsub.f32 %v197_v15, %v8311_v1  ;;  %v11266_v26 = vand.u32 4294901760, %v8297_v42 }
 0x169   :  { %2589 = vmatpush.msrb.mxu0 %v8238_v4  ;;  %2662 = vmatpush.msrb.mxu1 %v2661_v36  ;;  %v8330_v36 = vand.u32 4294901760, %v317_v19  ;;  %v2691_v15 = vand.u32 4294901760, %v2690_v0  ;;  %v297_v0 = vld [vmem:[#allocation5 + $0x728] sm:$0xff] }
 0x16a   :  { %2749 = vmatpush.msrb.mxu2 %v8247_v30  ;;  %2796 = vmatpush.msrb.mxu3 %v8201_v3  ;;  %v1699_v49 = vpop.f32.mrf.mxu1  ;;  %v1774_v31 = vpop.f32.mrf.mxu2  ;;  %v2696_v23 = vsub.f32 %v8297_v42, %v11266_v26 }
 0x16b   :  { %2591 = vmatpush.msrb.mxu0 %v8250_v14  ;;  %2668 = vmatpush.msrb.mxu1 %v2667_v53  ;;  %v1700_v27 = vadd.f32 %v1699_v49, %v1656_v18  ;;  %v8342_v49 = vand.u32 4294901760, %v313_v48  ;;  %v8349_v18 = vsub.f32 %v317_v19, %v8330_v36  ;;  %v1660_v26 = vpop.f32.mrf.mxu0  ;;  %v8351_v53 = vand.u32 4294901760, %v309_v52 }
 0x16c   :  { %2752 = vmatpush.msrb.mxu2 %v8259_v29  ;;  %2798 = vmatpush.msrb.mxu3 %v8214_v20 }
 0x16d   :  { %2593 = vmatpush.msrb.mxu0 %v8271_v62  ;;  %2674 = vmatpush.msrb.mxu1 %v2673_v22  ;;  %v1775_v37 = vadd.f32 %v1774_v31, %v1700_v27  ;;  %v1815_v2 = vpop.f32.mrf.mxu3  ;;  %v1602_v31 = vadd.f32 %v8289_v54, %v1497_v60  ;;  %v11267_v27 = vand.u32 4294901760, %v8318_v6  ;;  %v8362_v22 = vsub.f32 %v313_v48, %v8342_v49  ;;  %v301_v54 = vld [vmem:[#allocation5 + $0x748] sm:$0xff] }
 0x16e   :  { %2755 = vmatpush.msrb.mxu2 %v8265_v13  ;;  %2800 = vmatpush.msrb.mxu3 %v8230_v17  ;;  %v8374_v48 = vsub.f32 %v309_v52, %v8351_v53 }
 0x16f   :  { %2595 = vmatpush.msrb.mxu0 %v8294_v61  ;;  %2680 = vmatpush.msrb.mxu1 %v2679_v7  ;;  %v1816_v63 = vadd.f32 %v1815_v2, %v1775_v37  ;;  %v2697_v7 = vand.u32 4294901760, %v2696_v23  ;;  %v2702_v19 = vsub.f32 %v8318_v6, %v11267_v27  ;;  %v8364_v37 = vand.u32 4294901760, %v305_v38  ;;  %v11268_v2 = vld [vmem:[#allocation34_spill] sm:$0xff]  ;;  %v289_v27 = vld [vmem:[#allocation5 + $0x6e8] sm:$0xff] }
 0x170   :  { %2758 = vmatpush.msrb.mxu2 %v8277_v58  ;;  %2802 = vmatpush.msrb.mxu3 %v8238_v4  ;;  %v1661_v60 = vadd.f32 %v1660_v26, %v1602_v31  ;;  %v11271_v26 = vand.u32 4294901760, %v8335_v33  ;;  %v8382_v31 = vand.u32 4294901760, %v301_v54  ;;  %v8419_v40 = vand.u32 4294901760, %v289_v27 }
 0x171   :  { %2597 = vmatpush.msrb.mxu0 %v8311_v1  ;;  %2686 = vmatpush.msrb.mxu1 %v2685_v47  ;;  %6286 = vst [vmem:[#allocation8] sm:$0xff] %v1816_v63  ;;  %v11269_v47 = vand.u32 4294901760, %v8328_v50  ;;  %v2703_v52 = vand.u32 4294901760, %v2702_v19  ;;  %v8387_v39 = vsub.f32 %v305_v38, %v8364_v37  ;;  %v11274_v19 = vand.u32 4294901760, %v8349_v18 }
 0x172   :  { %2761 = vmatpush.msrb.mxu2 %v8297_v42  ;;  %2804 = vmatpush.msrb.mxu3 %v8250_v14 }
 0x173   :  { %2603 = vmatmul.f32.vlgmr.msrb.gmra.mxu0 %v11268_v2  ;;  %2692 = vmatpush.msrb.mxu1 %v2691_v15  ;;  %v2990_v23 = vsub.f32 %v8328_v50, %v11269_v47  ;;  %v1705_v63 = vpop.f32.mrf.mxu1  ;;  %v2708_v15 = vsub.f32 %v8335_v33, %v11271_v26  ;;  %v8392_v26 = vand.u32 4294901760, %v297_v0 }
 0x174   :  { %2827 = vmatpush.msra.mxu0 %v11270_v44  ;;  %2764 = vmatpush.msrb.mxu2 %v8318_v6  ;;  %v1706_v2 = vadd.f32 %v1705_v63, %v1661_v60  ;;  %v1778_v47 = vpop.f32.mrf.mxu2  ;;  %v293_v44 = vld [vmem:[#allocation5 + $0x708] sm:$0xff]  ;;  %v2996_v63 = vsub.f32 %v8349_v18, %v11274_v19  ;;  %v11276_v19 = vand.u32 4294901760, %v8362_v22 }
 0x175   :  { %2806 = vmatpush.msrb.mxu3 %v8271_v62  ;;  %2698 = vmatpush.msrb.mxu1 %v2697_v7  ;;  %v11273_v60 = vld [vmem:[#allocation29_spill] sm:$0xff]  ;;  %v2991_v7 = vand.u32 4294901760, %v2990_v23 }
 0x176   :  { %2831 = vmatpush.msra.mxu0 %v11272_v25  ;;  %2767 = vmatpush.msrb.mxu2 %v8335_v33  ;;  %v1779_v8 = vadd.f32 %v1778_v47, %v1706_v2  ;;  %v2709_v25 = vand.u32 4294901760, %v2708_v15  ;;  %v8404_v2 = vsub.f32 %v301_v54, %v8382_v31  ;;  %v8406_v47 = vand.u32 4294901760, %v293_v44 }
 0x177   :  { %2808 = vmatpush.msrb.mxu3 %v8294_v61  ;;  %2770 = vmatmul.f32.vlgmr.msrb.gmra.mxu2 %v11273_v60  ;;  %v1819_v10 = vpop.f32.mrf.mxu3  ;;  %v3002_v38 = vsub.f32 %v8362_v22, %v11276_v19  ;;  %v11278_v15 = vand.u32 4294901760, %v8160_v56  ;;  %v8417_v54 = vsub.f32 %v297_v0, %v8392_v26  ;;  %v281_v19 = vld [vmem:[#allocation5 + $0x6a8] sm:$0xff]  ;;  %v8442_v56 = vsub.f32 %v289_v27, %v8419_v40 }
 0x178   :  { %2835 = vmatpush.msra.mxu0 %v11275_v5  ;;  %2939 = vmatpush.msra.mxu2 %v8307_v43  ;;  %v1820_v23 = vadd.f32 %v1819_v10, %v1779_v8  ;;  %v11277_v5 = vld [vmem:[#allocation30_spill] sm:$0xff]  ;;  %v2997_v10 = vand.u32 4294901760, %v2996_v63  ;;  %v11279_v8 = vand.u32 4294901760, %v8374_v48  ;;  %v11280_v60 = vld [vmem:[#allocation36_spill] sm:$0xff]  ;;  %v8428_v0 = vsub.f32 %v293_v44, %v8406_v47 }
 0x179   :  { %2704 = vmatpush.msrb.mxu1 %v2703_v52  ;;  %2810 = vmatpush.msrb.mxu3 %v8311_v1  ;;  %v3003_v63 = vand.u32 4294901760, %v3002_v38 }
 0x17a   :  { %2814 = vmatmul.f32.vlgmr.msrb.gmra.mxu3 %v11277_v5  ;;  %2839 = vmatpush.msra.mxu0 %v11278_v15  ;;  %6290 = vst [vmem:[#allocation8 + $0x20] sm:$0xff] %v1820_v23  ;;  %v3008_v52 = vsub.f32 %v8374_v48, %v11279_v8  ;;  %v8430_v15 = vand.u32 4294901760, %v285_v55  ;;  %v11281_v23 = vld [vmem:[#allocation28_spill] sm:$0xff]  ;;  %v11283_v5 = vand.u32 4294901760, %v8387_v39 }
 0x17b   :  { %2941 = vmatpush.msra.mxu2 %v8330_v36  ;;  %2992 = vmatpush.msra.mxu3 %v2991_v7  ;;  %v11282_v7 = vand.u32 4294901760, %v8170_v35  ;;  %v11284_v35 = vand.u32 4294901760, %v8190_v21  ;;  %v11286_v21 = vld [vmem:[#allocation32_spill] sm:$0xff] }
 0x17c   :  { %2710 = vmatpush.msrb.mxu1 %v2709_v25  ;;  %2611 = vmatmul.f32.gmra.mxu0 %v11280_v60  ;;  %v3014_v8 = vsub.f32 %v8387_v39, %v11283_v5  ;;  %v277_v25 = vld [vmem:[#allocation5 + $0x688] sm:$0xff]  ;;  %v8444_v60 = vand.u32 4294901760, %v281_v19  ;;  %v3009_v38 = vand.u32 4294901760, %v3008_v52  ;;  %v8455_v27 = vsub.f32 %v285_v55, %v8430_v15 }
 0x17d   :  { %2712 = vmatmul.f32.vlgmr.msrb.gmra.mxu1 %v11281_v23  ;;  %2843 = vmatpush.msra.mxu0 %v11282_v7  ;;  %v273_v7 = vld [vmem:[#allocation5 + $0x668] sm:$0xff]  ;;  %v8457_v28 = vand.u32 4294901760, %v277_v25  ;;  %v11287_v52 = vand.u32 4294901760, %v8204_v9  ;;  %v11290_v9 = vand.u32 4294901760, %v8218_v57  ;;  %v11292_v57 = vld [vmem:[#allocation31_spill] sm:$0xff] }
 0x17e   :  { %2898 = vmatpush.msra.mxu1 %v8097_v46  ;;  %2943 = vmatpush.msra.mxu2 %v8342_v49  ;;  %v11285_v46 = vand.u32 4294901760, %v8404_v2  ;;  %v8468_v55 = vsub.f32 %v281_v19, %v8444_v60  ;;  %v8470_v44 = vand.u32 4294901760, %v273_v7 }
 0x17f   :  { %2998 = vmatpush.msra.mxu3 %v2997_v10  ;;  %2847 = vmatpush.msra.mxu0 %v11284_v35  ;;  %v3015_v10 = vand.u32 4294901760, %v3014_v8  ;;  %v11289_v8 = vld [vmem:[#allocation35_spill] sm:$0xff]  ;;  %v8481_v19 = vsub.f32 %v277_v25, %v8457_v28 }
 0x180   :  { %2900 = vmatpush.msra.mxu1 %v8105_v51  ;;  %2945 = vmatpush.msra.mxu2 %v8351_v53  ;;  %v3020_v5 = vsub.f32 %v8404_v2, %v11285_v46  ;;  %v11288_v51 = vand.u32 4294901760, %v8417_v54  ;;  %v8493_v25 = vsub.f32 %v273_v7, %v8470_v44  ;;  %v11296_v7 = vand.u32 4294901760, %v8247_v30 }
 0x181   :  { %3004 = vmatpush.msra.mxu3 %v3003_v63  ;;  %2775 = vmatmul.f32.gmra.mxu2 %v11286_v21  ;;  %v269_v63 = vld [vmem:[#allocation5 + $0x648] sm:$0xff]  ;;  %v3055_v46 = vand.u32 4294901760, %v8481_v19  ;;  %v11298_v30 = vand.u32 4294901760, %v8259_v29 }
 0x182   :  { %2851 = vmatpush.msra.mxu0 %v11287_v52  ;;  %2902 = vmatpush.msra.mxu1 %v8114_v41  ;;  %v3026_v35 = vsub.f32 %v8417_v54, %v11288_v51  ;;  %v3021_v41 = vand.u32 4294901760, %v3020_v5  ;;  %v11291_v52 = vand.u32 4294901760, %v8428_v0  ;;  %v265_v21 = vld [vmem:[#allocation5 + $0x628] sm:$0xff] }
 0x183   :  { %2947 = vmatpush.msra.mxu2 %v8364_v37  ;;  %3010 = vmatpush.msra.mxu3 %v3009_v38  ;;  %v8485_v38 = vand.u32 4294901760, %v269_v63  ;;  %v8498_v12 = vand.u32 4294901760, %v265_v21 }
 0x184   :  { %2820 = vmatmul.f32.gmra.mxu3 %v11289_v8  ;;  %2855 = vmatpush.msra.mxu0 %v11290_v9  ;;  %v3032_v51 = vsub.f32 %v8428_v0, %v11291_v52  ;;  %v3027_v5 = vand.u32 4294901760, %v3026_v35  ;;  %v11293_v9 = vand.u32 4294901760, %v8442_v56  ;;  %v261_v8 = vld [vmem:[#allocation5 + $0x608] sm:$0xff]  ;;  %v11295_v35 = vand.u32 4294901760, %v8455_v27 }
 0x185   :  { %2904 = vmatpush.msra.mxu1 %v8133_v32  ;;  %2949 = vmatpush.msra.mxu2 %v8382_v31  ;;  %v11294_v32 = vand.u32 4294901760, %v8234_v24  ;;  %v8509_v24 = vsub.f32 %v269_v63, %v8485_v38 }
 0x186   :  { %3016 = vmatpush.msra.mxu3 %v3015_v10  ;;  %2716 = vmatmul.f32.gmra.mxu1 %v11292_v57  ;;  %v3038_v52 = vsub.f32 %v8442_v56, %v11293_v9  ;;  %v3033_v10 = vand.u32 4294901760, %v3032_v51  ;;  %v3044_v9 = vsub.f32 %v8455_v27, %v11295_v35  ;;  %v11297_v51 = vand.u32 4294901760, %v8468_v55 }
 0x187   :  { %2859 = vmatpush.msra.mxu0 %v11294_v32  ;;  %2906 = vmatpush.msra.mxu1 %v8138_v34  ;;  %v8511_v34 = vand.u32 4294901760, %v261_v8  ;;  %v3061_v35 = vand.u32 4294901760, %v8493_v25  ;;  %v3067_v29 = vand.u32 4294901760, %v8509_v24 }
 0x188   :  { %2951 = vmatpush.msra.mxu2 %v8392_v26  ;;  %3022 = vmatpush.msra.mxu3 %v3021_v41  ;;  %v3039_v41 = vand.u32 4294901760, %v3038_v52  ;;  %v3050_v32 = vsub.f32 %v8468_v55, %v11297_v51  ;;  %v3045_v63 = vand.u32 4294901760, %v3044_v9  ;;  %v11299_v52 = vand.u32 4294901760, %v8265_v13 }
 0x189   :  { %2863 = vmatpush.msra.mxu0 %v11296_v7  ;;  %2908 = vmatpush.msra.mxu1 %v8157_v59  ;;  %v8522_v59 = vsub.f32 %v265_v21, %v8498_v12  ;;  %v11300_v9 = vand.u32 4294901760, %v8277_v58  ;;  %v3068_v7 = vsub.f32 %v8509_v24, %v3067_v29 }
 0x18a   :  { %2953 = vmatpush.msra.mxu2 %v8406_v47  ;;  %3028 = vmatpush.msra.mxu3 %v3027_v5  ;;  %v3056_v5 = vsub.f32 %v8481_v19, %v3055_v46  ;;  %v3051_v21 = vand.u32 4294901760, %v3050_v32  ;;  %v11306_v32 = vld [vmem:[#allocation37_spill] sm:$0xff] }
 0x18b   :  { %2867 = vmatpush.msra.mxu0 %v11298_v30  ;;  %2910 = vmatpush.msra.mxu1 %v8176_v16  ;;  %v8533_v16 = vsub.f32 %v261_v8, %v8511_v34  ;;  %v11301_v8 = vand.u32 4294901760, %v8297_v42  ;;  %v3069_v51 = vand.u32 4294901760, %v3068_v7 }
 0x18c   :  { %2955 = vmatpush.msra.mxu2 %v8419_v40  ;;  %3034 = vmatpush.msra.mxu3 %v3033_v10  ;;  %v3062_v10 = vsub.f32 %v8493_v25, %v3061_v35  ;;  %v3057_v13 = vand.u32 4294901760, %v3056_v5 }
 0x18d   :  { %2871 = vmatpush.msra.mxu0 %v11299_v52  ;;  %2912 = vmatpush.msra.mxu1 %v8186_v11  ;;  %v3073_v11 = vand.u32 4294901760, %v8522_v59  ;;  %v3079_v58 = vand.u32 4294901760, %v8533_v16 }
 0x18e   :  { %2957 = vmatpush.msra.mxu2 %v8430_v15  ;;  %3040 = vmatpush.msra.mxu3 %v3039_v41  ;;  %v11302_v41 = vand.u32 4294901760, %v8318_v6 }
 0x18f   :  { %2875 = vmatpush.msra.mxu0 %v11300_v9  ;;  %2914 = vmatpush.msra.mxu1 %v8201_v3  ;;  %v3063_v3 = vand.u32 4294901760, %v3062_v10  ;;  %v3074_v42 = vsub.f32 %v8522_v59, %v3073_v11  ;;  %v3080_v6 = vsub.f32 %v8533_v16, %v3079_v58  ;;  %v94_v9 = vld [vmem:[#allocation5 + $0xd0] sm:$0xff] }
 0x190   :  { %2959 = vmatpush.msra.mxu2 %v8444_v60  ;;  %3046 = vmatpush.msra.mxu3 %v3045_v63 }
 0x191   :  { %2879 = vmatpush.msra.mxu0 %v11301_v8  ;;  %2916 = vmatpush.msra.mxu1 %v8214_v20  ;;  %v11303_v20 = vand.u32 4294901760, %v8335_v33  ;;  %v11304_v33 = vld [vmem:[#allocation42_spill] sm:$0xff] }
 0x192   :  { %2961 = vmatpush.msra.mxu2 %v8457_v28  ;;  %3052 = vmatpush.msra.mxu3 %v3051_v21 }
 0x193   :  { %2883 = vmatpush.msra.mxu0 %v11302_v41  ;;  %2918 = vmatpush.msra.mxu1 %v8230_v17  ;;  %v3075_v17 = vand.u32 4294901760, %v3074_v42  ;;  %v8724_v41 = vand.u32 4294901760, %v94_v9  ;;  %v90_v42 = vld [vmem:[#allocation5 + $0xb0] sm:$0xff] }
 0x194   :  { %2963 = vmatpush.msra.mxu2 %v8470_v44  ;;  %3058 = vmatpush.msra.mxu3 %v3057_v13 }
 0x195   :  { %2887 = vmatpush.msra.mxu0 %v11303_v20  ;;  %2920 = vmatpush.msra.mxu1 %v8238_v4  ;;  %v3081_v4 = vand.u32 4294901760, %v3080_v6  ;;  %v11321_v20 = vld [vmem:[#allocation39_spill] sm:$0xff] }
 0x196   :  { %2965 = vmatpush.msra.mxu2 %v8485_v38  ;;  %3064 = vmatpush.msra.mxu3 %v3063_v3 }
 0x197   :  { %2889 = vmatmul.f32.vlgmr.msra.gmra.mxu0 %v11281_v23  ;;  %2922 = vmatpush.msra.mxu1 %v8250_v14  ;;  %v11305_v14 = vand.u32 4294901760, %v8328_v50 }
 0x198   :  { %3094 = vmatpush.msrb.mxu0 %v8328_v50  ;;  %2967 = vmatpush.msra.mxu2 %v8498_v12  ;;  %v11309_v50 = vand.u32 4294901760, %v8374_v48 }
 0x199   :  { %3070 = vmatpush.msra.mxu3 %v3069_v51  ;;  %2924 = vmatpush.msra.mxu1 %v8271_v62  ;;  %v11307_v62 = vand.u32 4294901760, %v8349_v18 }
 0x19a   :  { %3097 = vmatpush.msrb.mxu0 %v8349_v18  ;;  %2969 = vmatpush.msra.mxu2 %v8511_v34  ;;  %v11316_v18 = vand.u32 4294901760, %v8442_v56 }
 0x19b   :  { %3076 = vmatpush.msra.mxu3 %v3075_v17  ;;  %2975 = vmatmul.f32.vlgmr.msra.gmra.mxu2 %v11304_v33 }
 0x19c   :  { %3100 = vmatpush.msrb.mxu0 %v8362_v22  ;;  %3199 = vmatpush.msrb.mxu2 %v11305_v14  ;;  %v86_v14 = vld [vmem:[#allocation5 + $0x90] sm:$0xff] }
 0x19d   :  { %2926 = vmatpush.msra.mxu1 %v8294_v61  ;;  %3082 = vmatpush.msra.mxu3 %v3081_v4  ;;  %v11308_v61 = vand.u32 4294901760, %v8362_v22  ;;  %v11312_v22 = vld [vmem:[#allocation40_spill] sm:$0xff] }
 0x19e   :  { %3084 = vmatmul.f32.vlgmr.msra.gmra.mxu3 %v11306_v32  ;;  %3103 = vmatpush.msrb.mxu0 %v8374_v48  ;;  %v11317_v48 = vand.u32 4294901760, %v8455_v27 }
 0x19f   :  { %3203 = vmatpush.msrb.mxu2 %v11307_v62  ;;  %3270 = vmatpush.msrb.mxu3 %v8307_v43  ;;  %v8741_v62 = vand.u32 4294901760, %v90_v42 }
 0x1a0   :  { %2928 = vmatpush.msra.mxu1 %v8311_v1  ;;  %2893 = vmatmul.f32.gmra.mxu0 %v11292_v57  ;;  %v11310_v1 = vld [vmem:[#allocation44_spill] sm:$0xff] }
 0x1a1   :  { %2930 = vmatmul.f32.vlgmr.msra.gmra.mxu1 %v11281_v23  ;;  %3106 = vmatpush.msrb.mxu0 %v8387_v39 }
 0x1a2   :  { %3152 = vmatpush.msrb.mxu1 %v8307_v43  ;;  %3207 = vmatpush.msrb.mxu2 %v11308_v61  ;;  %v11311_v43 = vand.u32 4294901760, %v8387_v39  ;;  %v11314_v39 = vand.u32 4294901760, %v8417_v54 }
 0x1a3   :  { %3272 = vmatpush.msrb.mxu3 %v8330_v36  ;;  %3109 = vmatpush.msrb.mxu0 %v8404_v2 }
 0x1a4   :  { %3154 = vmatpush.msrb.mxu1 %v8330_v36  ;;  %3211 = vmatpush.msrb.mxu2 %v11309_v50  ;;  %v11313_v36 = vand.u32 4294901760, %v8404_v2  ;;  %v11318_v2 = vand.u32 4294901760, %v8468_v55 }
 0x1a5   :  { %3274 = vmatpush.msrb.mxu3 %v8342_v49  ;;  %2983 = vmatmul.f32.gmra.mxu2 %v11310_v1 }
 0x1a6   :  { %3112 = vmatpush.msrb.mxu0 %v8417_v54  ;;  %3156 = vmatpush.msrb.mxu1 %v8342_v49  ;;  %v130_v49 = vld [vmem:[#allocation5 + $0x1f0] sm:$0xff] }
 0x1a7   :  { %3215 = vmatpush.msrb.mxu2 %v11311_v43  ;;  %3276 = vmatpush.msrb.mxu3 %v8351_v53  ;;  %v8749_v43 = vsub.f32 %v94_v9, %v8724_v41  ;;  %v11322_v9 = vld [vmem:[#allocation43_spill] sm:$0xff] }
 0x1a8   :  { %3088 = vmatmul.f32.gmra.mxu3 %v11312_v22  ;;  %3115 = vmatpush.msrb.mxu0 %v8428_v0 }
 0x1a9   :  { %3158 = vmatpush.msrb.mxu1 %v8351_v53  ;;  %3219 = vmatpush.msrb.mxu2 %v11313_v36  ;;  %v11315_v53 = vand.u32 4294901760, %v8428_v0  ;;  %v114_v0 = vld [vmem:[#allocation5 + $0x170] sm:$0xff] }
 0x1aa   :  { %3278 = vmatpush.msrb.mxu3 %v8364_v37  ;;  %2934 = vmatmul.f32.gmra.mxu1 %v11292_v57  ;;  %v82_v36 = vld [vmem:[#allocation5 + $0x70] sm:$0xff] }
 0x1ab   :  { %3118 = vmatpush.msrb.mxu0 %v8442_v56  ;;  %3160 = vmatpush.msrb.mxu1 %v8364_v37  ;;  %v126_v37 = vld [vmem:[#allocation5 + $0x1d0] sm:$0xff] }
 0x1ac   :  { %3223 = vmatpush.msrb.mxu2 %v11314_v39  ;;  %3280 = vmatpush.msrb.mxu3 %v8382_v31  ;;  %v8636_v54 = vand.u32 4294901760, %v126_v37  ;;  %v118_v56 = vld [vmem:[#allocation5 + $0x190] sm:$0xff] }
 0x1ad   :  { %3121 = vmatpush.msrb.mxu0 %v8455_v27  ;;  %3162 = vmatpush.msrb.mxu1 %v8382_v31  ;;  %v8629_v31 = vand.u32 4294901760, %v130_v49  ;;  %v8658_v27 = vand.u32 4294901760, %v118_v56  ;;  %v158_v57 = vld [vmem:[#allocation5 + $0x2d0] sm:$0xff] }
 0x1ae   :  { %3227 = vmatpush.msrb.mxu2 %v11315_v53  ;;  %3282 = vmatpush.msrb.mxu3 %v8392_v26 }
 0x1af   :  { %3124 = vmatpush.msrb.mxu0 %v8468_v55  ;;  %3164 = vmatpush.msrb.mxu1 %v8392_v26  ;;  %v122_v26 = vld [vmem:[#allocation5 + $0x1b0] sm:$0xff]  ;;  %v8680_v30 = vsub.f32 %v118_v56, %v8658_v27 }
 0x1b0   :  { %3231 = vmatpush.msrb.mxu2 %v11316_v18  ;;  %3284 = vmatpush.msrb.mxu3 %v8406_v47 }
 0x1b1   :  { %3127 = vmatpush.msrb.mxu0 %v8481_v19  ;;  %3166 = vmatpush.msrb.mxu1 %v8406_v47  ;;  %v8643_v47 = vand.u32 4294901760, %v122_v26  ;;  %v110_v19 = vld [vmem:[#allocation5 + $0x150] sm:$0xff]  ;;  %v11016_v21 = vand.u32 4294901760, %v8680_v30 }
 0x1b2   :  { %3235 = vmatpush.msrb.mxu2 %v11317_v48  ;;  %3286 = vmatpush.msrb.mxu3 %v8419_v40  ;;  %v78_v48 = vld [vmem:[#allocation5 + $0x50] sm:$0xff] }
 0x1b3   :  { %3130 = vmatpush.msrb.mxu0 %v8493_v25  ;;  %3168 = vmatpush.msrb.mxu1 %v8419_v40  ;;  %v8646_v40 = vsub.f32 %v130_v49, %v8629_v31  ;;  %v8667_v55 = vsub.f32 %v122_v26, %v8643_v47  ;;  %v11319_v25 = vld [vmem:[#allocation38_spill] sm:$0xff]  ;;  %v3380_v51 = vsub.f32 %v8680_v30, %v11016_v21  ;;  %v8756_v49 = vand.u32 4294901760, %v86_v14 }
 0x1b4   :  { %3239 = vmatpush.msrb.mxu2 %v11318_v2  ;;  %3288 = vmatpush.msrb.mxu3 %v8430_v15  ;;  %v8765_v2 = vand.u32 4294901760, %v82_v36  ;;  %v182_v21 = vld [vmem:[#allocation5 + $0x390] sm:$0xff] }
 0x1b5   :  { %3133 = vmatpush.msrb.mxu0 %v8509_v24  ;;  %3170 = vmatpush.msrb.mxu1 %v8430_v15  ;;  %v8654_v15 = vsub.f32 %v126_v37, %v8636_v54  ;;  %v106_v24 = vld [vmem:[#allocation5 + $0x130] sm:$0xff]  ;;  %v3381_v39 = vand.u32 4294901760, %v3380_v51 }
 0x1b6   :  { %3243 = vmatpush.msrb.mxu2 %v3055_v46  ;;  %3290 = vmatpush.msrb.mxu3 %v8444_v60  ;;  %v11021_v46 = vand.u32 4294901760, %v8646_v40  ;;  %v8694_v5 = vand.u32 4294901760, %v106_v24  ;;  %v8791_v51 = vsub.f32 %v82_v36, %v8765_v2 }
 0x1b7   :  { %3136 = vmatpush.msrb.mxu0 %v8522_v59  ;;  %3172 = vmatpush.msrb.mxu1 %v8444_v60  ;;  %v8663_v60 = vand.u32 4294901760, %v114_v0  ;;  %v11018_v59 = vand.u32 4294901760, %v8667_v55 }
 0x1b8   :  { %3247 = vmatpush.msrb.mxu2 %v3061_v35  ;;  %3292 = vmatpush.msrb.mxu3 %v8457_v28  ;;  %v8677_v35 = vand.u32 4294901760, %v110_v19  ;;  %v8720_v7 = vsub.f32 %v106_v24, %v8694_v5 }
 0x1b9   :  { %3139 = vmatpush.msrb.mxu0 %v8533_v16  ;;  %3174 = vmatpush.msrb.mxu1 %v8457_v28  ;;  %v11020_v28 = vand.u32 4294901760, %v8654_v15  ;;  %v8690_v63 = vsub.f32 %v114_v0, %v8663_v60  ;;  %v3374_v13 = vsub.f32 %v8667_v55, %v11018_v59  ;;  %v8769_v0 = vsub.f32 %v90_v42, %v8741_v62 }
 0x1ba   :  { %3251 = vmatpush.msrb.mxu2 %v3067_v29  ;;  %3294 = vmatpush.msrb.mxu3 %v8470_v44  ;;  %v98_v29 = vld [vmem:[#allocation5 + $0xf0] sm:$0xff]  ;;  %v8707_v10 = vsub.f32 %v110_v19, %v8677_v35  ;;  %v11012_v61 = vand.u32 4294901760, %v8720_v7  ;;  %v11010_v19 = vand.u32 4294901760, %v8749_v43 }
 0x1bb   :  { %3142 = vmatmul.f32.vlgmr.msrb.gmra.mxu0 %v11319_v25  ;;  %3176 = vmatpush.msrb.mxu1 %v8470_v44  ;;  %v3362_v44 = vsub.f32 %v8646_v40, %v11021_v46  ;;  %v3368_v52 = vsub.f32 %v8654_v15, %v11020_v28  ;;  %v8717_v8 = vand.u32 4294901760, %v98_v29  ;;  %v11014_v42 = vand.u32 4294901760, %v8769_v0  ;;  %v174_v28 = vld [vmem:[#allocation5 + $0x350] sm:$0xff] }
 0x1bc   :  { %3311 = vmatpush.msra.mxu0 %v8629_v31  ;;  %3255 = vmatpush.msrb.mxu2 %v3073_v11  ;;  %v11013_v6 = vand.u32 4294901760, %v8707_v10  ;;  %v3398_v26 = vsub.f32 %v8720_v7, %v11012_v61  ;;  %v8873_v46 = vand.u32 4294901760, %v174_v28 }
 0x1bd   :  { %3296 = vmatpush.msrb.mxu3 %v8485_v38  ;;  %3178 = vmatpush.msrb.mxu1 %v8485_v38  ;;  %v102_v38 = vld [vmem:[#allocation5 + $0x110] sm:$0xff]  ;;  %v3363_v11 = vand.u32 4294901760, %v3362_v44  ;;  %v3369_v3 = vand.u32 4294901760, %v3368_v52  ;;  %v8745_v50 = vsub.f32 %v98_v29, %v8717_v8  ;;  %v8781_v52 = vsub.f32 %v86_v14, %v8756_v49 }
 0x1be   :  { %3313 = vmatpush.msra.mxu0 %v8636_v54  ;;  %3259 = vmatpush.msrb.mxu2 %v3079_v58  ;;  %v8703_v16 = vand.u32 4294901760, %v102_v38  ;;  %v11320_v58 = vld [vmem:[#allocation41_spill] sm:$0xff]  ;;  %v3392_v53 = vsub.f32 %v8707_v10, %v11013_v6 }
 0x1bf   :  { %3298 = vmatpush.msrb.mxu3 %v8498_v12  ;;  %3261 = vmatmul.f32.vlgmr.msrb.gmra.mxu2 %v11306_v32  ;;  %v11009_v56 = vand.u32 4294901760, %v8745_v50  ;;  %v74_v29 = vld [vmem:[#allocation5 + $0x30] sm:$0xff] }
 0x1c0   :  { %3315 = vmatpush.msra.mxu0 %v8643_v47  ;;  %3466 = vmatpush.msra.mxu2 %v8646_v40  ;;  %v8733_v17 = vsub.f32 %v102_v38, %v8703_v16  ;;  %v3393_v24 = vand.u32 4294901760, %v3392_v53  ;;  %v8778_v38 = vand.u32 4294901760, %v78_v48  ;;  %v8798_v14 = vand.u32 4294901760, %v74_v29 }
 0x1c1   :  { %3180 = vmatpush.msrb.mxu1 %v8498_v12  ;;  %3300 = vmatpush.msrb.mxu3 %v8511_v34  ;;  %v11015_v12 = vand.u32 4294901760, %v8690_v63 }
 0x1c2   :  { %3302 = vmatmul.f32.vlgmr.msrb.gmra.mxu3 %v11306_v32  ;;  %3317 = vmatpush.msra.mxu0 %v8658_v27  ;;  %v11011_v18 = vand.u32 4294901760, %v8733_v17  ;;  %v8803_v36 = vsub.f32 %v78_v48, %v8778_v38  ;;  %v11019_v48 = vand.u32 4294901760, %v8791_v51  ;;  %v8821_v6 = vsub.f32 %v74_v29, %v8798_v14 }
 0x1c3   :  { %3469 = vmatpush.msra.mxu2 %v8654_v15  ;;  %3524 = vmatpush.msra.mxu3 %v8629_v31  ;;  %v3386_v4 = vsub.f32 %v8690_v63, %v11015_v12 }
 0x1c4   :  { %3182 = vmatpush.msrb.mxu1 %v8511_v34  ;;  %3147 = vmatmul.f32.gmra.mxu0 %v11320_v58  ;;  %v3375_v34 = vand.u32 4294901760, %v3374_v13  ;;  %v3404_v44 = vsub.f32 %v8733_v17, %v11011_v18  ;;  %v3399_v13 = vand.u32 4294901760, %v3398_v26  ;;  %v166_v58 = vld [vmem:[#allocation5 + $0x310] sm:$0xff] }
 0x1c5   :  { %3186 = vmatmul.f32.vlgmr.msrb.gmra.mxu1 %v11321_v20  ;;  %3319 = vmatpush.msra.mxu0 %v8663_v60  ;;  %v3387_v37 = vand.u32 4294901760, %v3386_v4  ;;  %v3416_v4 = vsub.f32 %v8749_v43, %v11010_v19  ;;  %v186_v19 = vld [vmem:[#allocation5 + $0x3b0] sm:$0xff]  ;;  %v8901_v32 = vand.u32 4294901760, %v166_v58 }
 0x1c6   :  { %3364 = vmatpush.msra.mxu1 %v3363_v11  ;;  %3472 = vmatpush.msra.mxu2 %v8667_v55  ;;  %v194_v11 = vld [vmem:[#allocation5 + $0x3f0] sm:$0xff]  ;;  %v3405_v53 = vand.u32 4294901760, %v3404_v44  ;;  %v8831_v12 = vand.u32 4294901760, %v186_v19 }
 0x1c7   :  { %3526 = vmatpush.msra.mxu3 %v8636_v54  ;;  %3321 = vmatpush.msra.mxu0 %v8677_v35  ;;  %v8805_v26 = vand.u32 4294901760, %v194_v11  ;;  %v3417_v61 = vand.u32 4294901760, %v3416_v4 }
 0x1c8   :  { %3370 = vmatpush.msra.mxu1 %v3369_v3  ;;  %3475 = vmatpush.msra.mxu2 %v8680_v30  ;;  %v3410_v3 = vsub.f32 %v8745_v50, %v11009_v56 }
 0x1c9   :  { %3528 = vmatpush.msra.mxu3 %v8643_v47  ;;  %3265 = vmatmul.f32.gmra.mxu2 %v11312_v22 }
 0x1ca   :  { %3323 = vmatpush.msra.mxu0 %v8694_v5  ;;  %3376 = vmatpush.msra.mxu1 %v3375_v34  ;;  %v70_v34 = vld [vmem:[#allocation5 + $0x10] sm:$0xff]  ;;  %v3411_v18 = vand.u32 4294901760, %v3410_v3  ;;  %v11022_v3 = vand.u32 4294901760, %v8803_v36 }
 0x1cb   :  { %3478 = vmatpush.msra.mxu2 %v8690_v63  ;;  %3530 = vmatpush.msra.mxu3 %v8658_v27  ;;  %v8809_v56 = vand.u32 4294901760, %v70_v34 }
 0x1cc   :  { %3306 = vmatmul.f32.gmra.mxu3 %v11312_v22  ;;  %3325 = vmatpush.msra.mxu0 %v8703_v16  ;;  %v162_v22 = vld [vmem:[#allocation5 + $0x2f0] sm:$0xff] }
 0x1cd   :  { %3382 = vmatpush.msra.mxu1 %v3381_v39  ;;  %3481 = vmatpush.msra.mxu2 %v8707_v10  ;;  %v190_v39 = vld [vmem:[#allocation5 + $0x3d0] sm:$0xff]  ;;  %11323 = vst [vmem:[#allocation14_spill] sm:$0xff] %v8809_v56  ;;  %v8836_v29 = vsub.f32 %v70_v34, %v8809_v56  ;;  %v8848_v34 = vand.u32 4294901760, %v182_v21  ;;  %v8916_v23 = vand.u32 4294901760, %v162_v22 }
 0x1ce   :  { %3532 = vmatpush.msra.mxu3 %v8663_v60  ;;  %3192 = vmatmul.f32.gmra.mxu1 %v11322_v9  ;;  %v8816_v44 = vand.u32 4294901760, %v190_v39 }
 0x1cf   :  { %3327 = vmatpush.msra.mxu0 %v8717_v8  ;;  %3388 = vmatpush.msra.mxu1 %v3387_v37  ;;  %v11017_v37 = vand.u32 4294901760, %v8781_v52  ;;  %11325 = vst [vmem:[#allocation45_spill] sm:$0xff] %v8848_v34  ;;  %v8871_v9 = vsub.f32 %v182_v21, %v8848_v34  ;;  %v11328_v21 = vand.u32 4294901760, %v8836_v29 }
 0x1d0   :  { %3484 = vmatpush.msra.mxu2 %v8720_v7  ;;  %3534 = vmatpush.msra.mxu3 %v8677_v35  ;;  %11324 = vst [vmem:[#allocation33_spill] sm:$0xff] %v8816_v44 }
 0x1d1   :  { %3329 = vmatpush.msra.mxu0 %v8724_v41  ;;  %3394 = vmatpush.msra.mxu1 %v3393_v24  ;;  %v3422_v24 = vsub.f32 %v8769_v0, %v11014_v42  ;;  %v8829_v42 = vsub.f32 %v194_v11, %v8805_v26  ;;  %v8843_v11 = vsub.f32 %v190_v39, %v8816_v44 }
 0x1d2   :  { %3487 = vmatpush.msra.mxu2 %v8733_v17  ;;  %3536 = vmatpush.msra.mxu3 %v8694_v5 }
 0x1d3   :  { %3331 = vmatpush.msra.mxu0 %v8741_v62  ;;  %3400 = vmatpush.msra.mxu1 %v3399_v13  ;;  %v3428_v13 = vsub.f32 %v8781_v52, %v11017_v37  ;;  %v3423_v4 = vand.u32 4294901760, %v3422_v24  ;;  %v178_v37 = vld [vmem:[#allocation5 + $0x370] sm:$0xff]  ;;  %v3440_v24 = vsub.f32 %v8803_v36, %v11022_v3 }
 0x1d4   :  { %3490 = vmatpush.msra.mxu2 %v8745_v50  ;;  %3538 = vmatpush.msra.mxu3 %v8703_v16  ;;  %v8861_v59 = vand.u32 4294901760, %v178_v37  ;;  %v170_v3 = vld [vmem:[#allocation5 + $0x330] sm:$0xff] }
 0x1d5   :  { %3333 = vmatpush.msra.mxu0 %v8756_v49  ;;  %3406 = vmatpush.msra.mxu1 %v3405_v53  ;;  %v3434_v53 = vsub.f32 %v8791_v51, %v11019_v48  ;;  %v8856_v48 = vsub.f32 %v186_v19, %v8831_v12  ;;  %v11326_v19 = vand.u32 4294901760, %v8821_v6 }
 0x1d6   :  { %3493 = vmatpush.msra.mxu2 %v8749_v43  ;;  %3540 = vmatpush.msra.mxu3 %v8717_v8  ;;  %v8886_v25 = vsub.f32 %v178_v37, %v8861_v59  ;;  %v8899_v37 = vsub.f32 %v174_v28, %v8873_v46 }
 0x1d7   :  { %3335 = vmatpush.msra.mxu0 %v8765_v2  ;;  %3412 = vmatpush.msra.mxu1 %v3411_v18  ;;  %v3429_v18 = vand.u32 4294901760, %v3428_v13  ;;  %v3446_v39 = vsub.f32 %v8821_v6, %v11326_v19  ;;  %v3452_v19 = vsub.f32 %v8836_v29, %v11328_v21 }
 0x1d8   :  { %3496 = vmatpush.msra.mxu2 %v8769_v0  ;;  %3542 = vmatpush.msra.mxu3 %v8724_v41 }
 0x1d9   :  { %3337 = vmatpush.msra.mxu0 %v8778_v38  ;;  %3418 = vmatpush.msra.mxu1 %v3417_v61  ;;  %v3435_v61 = vand.u32 4294901760, %v3434_v53  ;;  %v11327_v53 = vand.u32 4294901760, %v8829_v42  ;;  %v3447_v1 = vand.u32 4294901760, %v3446_v39  ;;  %v3453_v28 = vand.u32 4294901760, %v3452_v19 }
 0x1da   :  { %3499 = vmatpush.msra.mxu2 %v8781_v52  ;;  %3544 = vmatpush.msra.mxu3 %v8741_v62  ;;  %v8929_v39 = vand.u32 4294901760, %v158_v57 }
 0x1db   :  { %3339 = vmatpush.msra.mxu0 %v8798_v14  ;;  %3424 = vmatpush.msra.mxu1 %v3423_v4  ;;  %v3441_v4 = vand.u32 4294901760, %v3440_v24  ;;  %v3734_v13 = vsub.f32 %v8829_v42, %v11327_v53  ;;  %v11330_v24 = vand.u32 4294901760, %v8646_v40  ;;  %v11331_v53 = vand.u32 4294901760, %v8843_v11  ;;  %v8903_v40 = vpop.f32.mrf.mxu0 }
 0x1dc   :  { %3502 = vmatpush.msra.mxu2 %v8791_v51  ;;  %3546 = vmatpush.msra.mxu3 %v8756_v49 }
 0x1dd   :  { %3341 = vmatpush.msra.mxu0 %v8809_v56  ;;  %3430 = vmatpush.msra.mxu1 %v3429_v18  ;;  %v8888_v18 = vand.u32 4294901760, %v170_v3  ;;  %v3740_v20 = vsub.f32 %v8843_v11, %v11331_v53  ;;  %v11333_v53 = vand.u32 4294901760, %v8856_v48 }
 0x1de   :  { %3505 = vmatpush.msra.mxu2 %v8803_v36  ;;  %3548 = vmatpush.msra.mxu3 %v8765_v2 }
 0x1df   :  { %11329 = vst [vmem:[#allocation46_spill] sm:$0xff] %v8888_v18  ;;  %3571 = vmatpush.msrb.mxu0 %v11330_v24  ;;  %3436 = vmatpush.msra.mxu1 %v3435_v61  ;;  %v11332_v61 = vand.u32 4294901760, %v8654_v15  ;;  %v3735_v24 = vand.u32 4294901760, %v3734_v13  ;;  %v3746_v33 = vsub.f32 %v8856_v48, %v11333_v53  ;;  %v8914_v21 = vsub.f32 %v170_v3, %v8888_v18 }
 0x1e0   :  { %3508 = vmatpush.msra.mxu2 %v8821_v6  ;;  %3550 = vmatpush.msra.mxu3 %v8778_v38  ;;  %v11334_v15 = vand.u32 4294901760, %v8667_v55  ;;  %v3741_v13 = vand.u32 4294901760, %v3740_v20  ;;  %v8927_v3 = vsub.f32 %v166_v58, %v8901_v32  ;;  %v11336_v55 = vand.u32 4294901760, %v8680_v30 }
 0x1e1   :  { %3575 = vmatpush.msrb.mxu0 %v11332_v61  ;;  %3442 = vmatpush.msra.mxu1 %v3441_v4  ;;  %v154_v4 = vld [vmem:[#allocation5 + $0x2b0] sm:$0xff]  ;;  %v11335_v61 = vand.u32 4294901760, %v8871_v9  ;;  %v3747_v20 = vand.u32 4294901760, %v3746_v33  ;;  %v11338_v33 = vand.u32 4294901760, %v8690_v63  ;;  %v11340_v63 = vand.u32 4294901760, %v8707_v10 }
 0x1e2   :  { %3511 = vmatpush.msra.mxu2 %v8836_v29  ;;  %3552 = vmatpush.msra.mxu3 %v8798_v14  ;;  %v8945_v30 = vand.u32 4294901760, %v154_v4 }
 0x1e3   :  { %3579 = vmatpush.msrb.mxu0 %v11334_v15  ;;  %3448 = vmatpush.msra.mxu1 %v3447_v1  ;;  %v3752_v19 = vsub.f32 %v8871_v9, %v11335_v61  ;;  %v8934_v1 = vpop.f32.mrf.mxu1  ;;  %v8936_v15 = vpop.f32.mrf.mxu2  ;;  %v11337_v61 = vand.u32 4294901760, %v8886_v25 }
 0x1e4   :  { %3683 = vmatpush.msrb.mxu2 %v8805_v26  ;;  %3554 = vmatpush.msra.mxu3 %v8809_v56  ;;  %v8943_v56 = vsub.f32 %v162_v22, %v8916_v23  ;;  %v8956_v22 = vsub.f32 %v158_v57, %v8929_v39  ;;  %v8971_v58 = vsub.f32 %v154_v4, %v8945_v30  ;;  %v8973_v10 = vpop.f32.mrf.mxu0 }
 0x1e5   :  { %3583 = vmatpush.msrb.mxu0 %v11336_v55  ;;  %3454 = vmatpush.msra.mxu1 %v3453_v28  ;;  %v3758_v53 = vsub.f32 %v8886_v25, %v11337_v61  ;;  %v150_v55 = vld [vmem:[#allocation5 + $0x290] sm:$0xff]  ;;  %v11339_v28 = vand.u32 4294901760, %v8899_v37 }
 0x1e6   :  { %3685 = vmatpush.msrb.mxu2 %v8816_v44  ;;  %3736 = vmatpush.msrb.mxu3 %v3735_v24  ;;  %v3753_v24 = vand.u32 4294901760, %v3752_v19  ;;  %v8958_v44 = vpop.f32.mrf.mxu3 }
 0x1e7   :  { %3587 = vmatpush.msrb.mxu0 %v11338_v33  ;;  %3642 = vmatpush.msrb.mxu1 %v8629_v31  ;;  %v3764_v61 = vsub.f32 %v8899_v37, %v11339_v28  ;;  %v8963_v31 = vand.u32 4294901760, %v150_v55  ;;  %v3759_v19 = vand.u32 4294901760, %v3758_v53  ;;  %v11341_v33 = vand.u32 4294901760, %v8914_v21 }
 0x1e8   :  { %3687 = vmatpush.msrb.mxu2 %v8831_v12  ;;  %3742 = vmatpush.msrb.mxu3 %v3741_v13  ;;  %v146_v13 = vld [vmem:[#allocation5 + $0x270] sm:$0xff] }
 0x1e9   :  { %3591 = vmatpush.msrb.mxu0 %v11340_v63  ;;  %3644 = vmatpush.msrb.mxu1 %v8636_v54  ;;  %v3770_v28 = vsub.f32 %v8914_v21, %v11341_v33  ;;  %v11342_v54 = vand.u32 4294901760, %v8720_v7  ;;  %v142_v63 = vld [vmem:[#allocation5 + $0x250] sm:$0xff]  ;;  %v3765_v53 = vand.u32 4294901760, %v3764_v61  ;;  %v8983_v4 = vand.u32 4294901760, %v146_v13 }
 0x1ea   :  { %3689 = vmatpush.msrb.mxu2 %v8848_v34  ;;  %3748 = vmatpush.msrb.mxu3 %v3747_v20  ;;  %v11343_v20 = vand.u32 4294901760, %v8927_v3  ;;  %v11344_v34 = vand.u32 4294901760, %v8733_v17  ;;  %v138_v7 = vld [vmem:[#allocation5 + $0x230] sm:$0xff]  ;;  %v11345_v61 = vand.u32 4294901760, %v8943_v56  ;;  %v8996_v57 = vand.u32 4294901760, %v142_v63 }
 0x1eb   :  { %3595 = vmatpush.msrb.mxu0 %v11342_v54  ;;  %3646 = vmatpush.msrb.mxu1 %v8643_v47  ;;  %v8989_v47 = vsub.f32 %v150_v55, %v8963_v31  ;;  %v11346_v17 = vand.u32 4294901760, %v8745_v50  ;;  %v134_v50 = vld [vmem:[#allocation5 + $0x210] sm:$0xff] }
 0x1ec   :  { %3691 = vmatpush.msrb.mxu2 %v8861_v59  ;;  %3754 = vmatpush.msrb.mxu3 %v3753_v24  ;;  %v3776_v33 = vsub.f32 %v8927_v3, %v11343_v20  ;;  %v3771_v24 = vand.u32 4294901760, %v3770_v28  ;;  %v3782_v54 = vsub.f32 %v8943_v56, %v11345_v61  ;;  %v9010_v61 = vsub.f32 %v146_v13, %v8983_v4 }
 0x1ed   :  { %3599 = vmatpush.msrb.mxu0 %v11344_v34  ;;  %3648 = vmatpush.msrb.mxu1 %v8658_v27  ;;  %v9001_v27 = vpop.f32.mrf.mxu1  ;;  %v9003_v34 = vpop.f32.mrf.mxu2  ;;  %v9012_v20 = vand.u32 4294901760, %v138_v7  ;;  %v9023_v13 = vsub.f32 %v142_v63, %v8996_v57 }
 0x1ee   :  { %3693 = vmatpush.msrb.mxu2 %v8873_v46  ;;  %3760 = vmatpush.msrb.mxu3 %v3759_v19  ;;  %v3777_v55 = vand.u32 4294901760, %v3776_v33  ;;  %v11347_v19 = vand.u32 4294901760, %v8956_v22  ;;  %v11349_v33 = vand.u32 4294901760, %v8971_v58  ;;  %v9037_v63 = vpop.f32.mrf.mxu0 }
 0x1ef   :  { %3603 = vmatpush.msrb.mxu0 %v11346_v17  ;;  %3650 = vmatpush.msrb.mxu1 %v8663_v60  ;;  %v11348_v60 = vand.u32 4294901760, %v8749_v43  ;;  %v3799_v17 = vand.u32 4294901760, %v8989_v47  ;;  %v11350_v43 = vand.u32 4294901760, %v8769_v0 }
 0x1f0   :  { %3695 = vmatpush.msrb.mxu2 %v8888_v18  ;;  %3766 = vmatpush.msrb.mxu3 %v3765_v53  ;;  %v3788_v28 = vsub.f32 %v8956_v22, %v11347_v19  ;;  %v3783_v53 = vand.u32 4294901760, %v3782_v54  ;;  %v3794_v19 = vsub.f32 %v8971_v58, %v11349_v33  ;;  %v9025_v18 = vpop.f32.mrf.mxu3  ;;  %v3805_v54 = vand.u32 4294901760, %v9010_v61 }
 0x1f1   :  { %3607 = vmatpush.msrb.mxu0 %v11348_v60  ;;  %3652 = vmatpush.msrb.mxu1 %v8677_v35  ;;  %v9030_v35 = vand.u32 4294901760, %v134_v50  ;;  %v9035_v60 = vsub.f32 %v138_v7, %v9012_v20  ;;  %v11351_v33 = vand.u32 4294901760, %v8781_v52  ;;  %v11352_v7 = vand.u32 4294901760, %v8791_v51 }
 0x1f2   :  { %3697 = vmatpush.msrb.mxu2 %v8901_v32  ;;  %3772 = vmatpush.msrb.mxu3 %v3771_v24  ;;  %v3789_v24 = vand.u32 4294901760, %v3788_v28  ;;  %v3795_v0 = vand.u32 4294901760, %v3794_v19  ;;  %v6320_v19 = vld [vmem:[#allocation7] sm:$0xf] }
 0x1f3   :  { %3611 = vmatpush.msrb.mxu0 %v11350_v43  ;;  %3654 = vmatpush.msrb.mxu1 %v8694_v5  ;;  %v3800_v5 = vsub.f32 %v8989_v47, %v3799_v17  ;;  %v9051_v52 = vsub.f32 %v134_v50, %v9030_v35  ;;  %v3817_v28 = vand.u32 4294901760, %v9035_v60 }
 0x1f4   :  { %3699 = vmatpush.msrb.mxu2 %v8916_v23  ;;  %3778 = vmatpush.msrb.mxu3 %v3777_v55  ;;  %v3811_v55 = vand.u32 4294901760, %v9023_v13 }
 0x1f5   :  { %3615 = vmatpush.msrb.mxu0 %v11351_v33  ;;  %3656 = vmatpush.msrb.mxu1 %v8703_v16  ;;  %v3806_v16 = vsub.f32 %v9010_v61, %v3805_v54  ;;  %v3801_v51 = vand.u32 4294901760, %v3800_v5  ;;  %v9061_v43 = vpop.f32.mrf.mxu1  ;;  %v9063_v50 = vpop.f32.mrf.mxu2  ;;  %v3818_v5 = vsub.f32 %v9035_v60, %v3817_v28 }
 0x1f6   :  { %3701 = vmatpush.msrb.mxu2 %v8929_v39  ;;  %3784 = vmatpush.msrb.mxu3 %v3783_v53  ;;  %v11353_v53 = vand.u32 4294901760, %v8803_v36  ;;  %v11354_v36 = vand.u32 4294901760, %v8821_v6  ;;  %v11356_v6 = vld [vmem:[#allocation15_spill] sm:$0xff] }
 0x1f7   :  { %3619 = vmatpush.msrb.mxu0 %v11352_v7  ;;  %3658 = vmatpush.msrb.mxu1 %v8717_v8  ;;  %v327_v8 = vperm.slane %v6320_v19, 1  ;;  %v3807_v33 = vand.u32 4294901760, %v3806_v16  ;;  %v11355_v7 = vld [vmem:[#allocation18_spill] sm:$0xff]  ;;  %v11357_v19 = vand.u32 4294901760, %v8836_v29 }
 0x1f8   :  { %3703 = vmatpush.msrb.mxu2 %v8945_v30  ;;  %3790 = vmatpush.msrb.mxu3 %v3789_v24  ;;  %v3812_v24 = vsub.f32 %v9023_v13, %v3811_v55 }
 0x1f9   :  { %3623 = vmatpush.msrb.mxu0 %v11353_v53  ;;  %3660 = vmatpush.msrb.mxu1 %v8724_v41  ;;  %v3823_v41 = vand.u32 4294901760, %v9051_v52  ;;  %v1861_v53 = vadd.f32 %v8903_v40, %v327_v8  ;;  %v3819_v40 = vand.u32 4294901760, %v3818_v5 }
 0x1fa   :  { %3705 = vmatpush.msrb.mxu2 %v8963_v31  ;;  %3796 = vmatpush.msrb.mxu3 %v3795_v0  ;;  %v9078_v0 = vpop.f32.mrf.mxu3 }
 0x1fb   :  { %3514 = vmatmul.f32.vlgmr.msra.gmra.mxu2 %v11230_v45  ;;  %3627 = vmatpush.msrb.mxu0 %v11354_v36  ;;  %v9085_v36 = vpop.f32.mrf.mxu0  ;;  %v3824_v16 = vsub.f32 %v9051_v52, %v3823_v41  ;;  %v1970_v29 = vadd.f32 %v8934_v1, %v1861_v53  ;;  %v11359_v1 = vld [vmem:[#allocation17_spill] sm:$0xff]  ;;  %v11360_v53 = vand.u32 4294901760, %v8829_v42 }
 0x1fc   :  { %3662 = vmatpush.msrb.mxu1 %v8741_v62  ;;  %3707 = vmatpush.msrb.mxu2 %v8983_v4  ;;  %v3813_v62 = vand.u32 4294901760, %v3812_v24 }
 0x1fd   :  { %3802 = vmatpush.msrb.mxu3 %v3801_v51  ;;  %3347 = vmatmul.f32.vlgmr.msra.gmra.mxu0 %v11355_v7  ;;  %v11358_v51 = vld [vmem:[#allocation13_spill] sm:$0xff]  ;;  %v9096_v24 = vpop.f32.mrf.mxu1  ;;  %v2028_v5 = vadd.f32 %v8936_v15, %v1970_v29  ;;  %v11364_v15 = vld [vmem:[#allocation14_spill] sm:$0xff] }
 0x1fe   :  { %3558 = vmatmul.f32.vlgmr.msra.gmra.mxu3 %v11356_v6  ;;  %3631 = vmatpush.msrb.mxu0 %v11357_v19  ;;  %v9098_v19 = vpop.f32.mrf.mxu2 }
 0x1ff   :  { %3664 = vmatpush.msrb.mxu1 %v8756_v49  ;;  %3709 = vmatpush.msrb.mxu2 %v8996_v57  ;;  %v3825_v49 = vand.u32 4294901760, %v3824_v16  ;;  %v11363_v16 = vand.u32 4294901760, %v8843_v11 }
 0x200   :  { %3808 = vmatpush.msrb.mxu3 %v3807_v33  ;;  %3456 = vmatmul.f32.vlgmr.msra.gmra.mxu1 %v11358_v51  ;;  %v1869_v33 = vadd.f32 %v8973_v10, %v327_v8  ;;  %v11362_v8 = vld [vmem:[#allocation19_spill] sm:$0xff] }
 0x201   :  { %3838 = vmatpush.msra.mxu0 %v8829_v42  ;;  %3666 = vmatpush.msrb.mxu1 %v8765_v2  ;;  %v2072_v42 = vadd.f32 %v8958_v44, %v2028_v5  ;;  %v11368_v44 = vand.u32 4294901760, %v8871_v9  ;;  %v11370_v5 = vand.u32 4294901760, %v8886_v25 }
 0x202   :  { %3711 = vmatpush.msrb.mxu2 %v9012_v20  ;;  %3814 = vmatpush.msrb.mxu3 %v3813_v62  ;;  %v9105_v2 = vpop.f32.mrf.mxu3  ;;  %v1974_v10 = vadd.f32 %v9001_v27, %v1869_v33  ;;  %v11366_v27 = vand.u32 4294901760, %v8856_v48 }
 0x203   :  { %3841 = vmatpush.msra.mxu0 %v8843_v11  ;;  %3668 = vmatpush.msrb.mxu1 %v8778_v38  ;;  %v11361_v38 = vld [vmem:[#allocation22_spill] sm:$0xff]  ;;  %v2399_v62 = vpop.f32.mrf.mxu0  ;;  %v11367_v11 = vld [vmem:[#allocation33_spill] sm:$0xff]  ;;  %v2147_v33 = vadd.f32 %v9037_v63, %v2072_v42  ;;  %v11374_v42 = vand.u32 4294901760, %v8914_v21 }
 0x204   :  { %3713 = vmatpush.msrb.mxu2 %v9030_v35  ;;  %3820 = vmatpush.msrb.mxu3 %v3819_v40  ;;  %v2033_v40 = vadd.f32 %v9003_v34, %v1974_v10  ;;  %v11369_v34 = vld [vmem:[#allocation12_spill] sm:$0xff]  ;;  %v11371_v63 = vld [vmem:[#allocation45_spill] sm:$0xff] }
 0x205   :  { %3519 = vmatmul.f32.gmra.mxu2 %v11359_v1  ;;  %3844 = vmatpush.msra.mxu0 %v8856_v48  ;;  %v2443_v29 = vpop.f32.mrf.mxu1  ;;  %v11372_v10 = vld [vmem:[#allocation20_spill] sm:$0xff] }
 0x206   :  { %3943 = vmatpush.msra.mxu2 %v11360_v53  ;;  %3670 = vmatpush.msrb.mxu1 %v8798_v14  ;;  %v11365_v14 = vld [vmem:[#allocation16_spill] sm:$0xff]  ;;  %v2188_v53 = vadd.f32 %v9061_v43, %v2147_v33 }
 0x207   :  { %3826 = vmatpush.msrb.mxu3 %v3825_v49  ;;  %3355 = vmatmul.f32.gmra.mxu0 %v11361_v38  ;;  %v9127_v49 = vpop.f32.mrf.mxu2 }
 0x208   :  { %3564 = vmatmul.f32.gmra.mxu3 %v11362_v8  ;;  %3847 = vmatpush.msra.mxu0 %v8871_v9 }
 0x209   :  { %3947 = vmatpush.msra.mxu2 %v11363_v16  ;;  %4014 = vmatpush.msra.mxu3 %v8805_v26 }
 0x20a   :  { %3672 = vmatpush.msrb.mxu1 %v11364_v15  ;;  %3850 = vmatpush.msra.mxu0 %v8886_v25  ;;  %v9137_v48 = vpop.f32.mrf.mxu3 }
 0x20b   :  { %3460 = vmatmul.f32.gmra.mxu1 %v11365_v14  ;;  %3951 = vmatpush.msra.mxu2 %v11366_v27  ;;  %v9145_v9 = vpop.f32.mrf.mxu0  ;;  %v11377_v27 = vand.u32 4294901760, %v8943_v56 }
 0x20c   :  { %3896 = vmatpush.msra.mxu1 %v8805_v26  ;;  %4016 = vmatpush.msra.mxu3 %v11367_v11  ;;  %v2078_v26 = vadd.f32 %v9025_v18, %v2033_v40  ;;  %v11373_v18 = vand.u32 4294901760, %v8899_v37  ;;  %v11378_v40 = vand.u32 4294901760, %v8956_v22 }
 0x20d   :  { %3853 = vmatpush.msra.mxu0 %v8899_v37  ;;  %3955 = vmatpush.msra.mxu2 %v11368_v44  ;;  %v9161_v43 = vpop.f32.mrf.mxu1 }
 0x20e   :  { %3898 = vmatpush.msra.mxu1 %v11367_v11  ;;  %4018 = vmatpush.msra.mxu3 %v8831_v12  ;;  %v2151_v25 = vadd.f32 %v9085_v36, %v2078_v26  ;;  %v11375_v36 = vand.u32 4294901760, %v8927_v3  ;;  %v242_v26 = vld [vmem:[#allocation5 + $0x570] sm:$0xff] }
 0x20f   :  { %3719 = vmatmul.f32.vlgmr.msrb.gmra.mxu2 %v11369_v34  ;;  %3856 = vmatpush.msra.mxu0 %v8914_v21  ;;  %v9163_v16 = vpop.f32.mrf.mxu2 }
 0x210   :  { %3900 = vmatpush.msra.mxu1 %v8831_v12  ;;  %3959 = vmatpush.msra.mxu2 %v11370_v5  ;;  %v2233_v12 = vadd.f32 %v9063_v50, %v2188_v53  ;;  %v2192_v37 = vadd.f32 %v9096_v24, %v2151_v25  ;;  %v11381_v5 = vld [vmem:[#allocation24_spill] sm:$0xff] }
 0x211   :  { %4020 = vmatpush.msra.mxu3 %v11371_v63  ;;  %3633 = vmatmul.f32.vlgmr.msrb.gmra.mxu0 %v11358_v51 }
 0x212   :  { %3828 = vmatmul.f32.vlgmr.msrb.gmra.mxu3 %v11372_v10  ;;  %3859 = vmatpush.msra.mxu0 %v8927_v3  ;;  %v9174_v50 = vpop.f32.mrf.mxu3  ;;  %v2342_v21 = vadd.f32 %v9078_v0, %v2233_v12  ;;  %v2241_v24 = vadd.f32 %v9098_v19, %v2192_v37 }
 0x213   :  { %3902 = vmatpush.msra.mxu1 %v11371_v63  ;;  %3963 = vmatpush.msra.mxu2 %v11373_v18  ;;  %v2604_v15 = vpop.f32.mrf.mxu0  ;;  %v238_v18 = vld [vmem:[#allocation5 + $0x550] sm:$0xff] }
 0x214   :  { %4022 = vmatpush.msra.mxu3 %v8861_v59  ;;  %3674 = vmatmul.f32.vlgmr.msrb.gmra.mxu1 %v11358_v51  ;;  %v2400_v3 = vadd.f32 %v2399_v62, %v2342_v21  ;;  %v2346_v62 = vadd.f32 %v9105_v2, %v2241_v24 }
 0x215   :  { %3862 = vmatpush.msra.mxu0 %v8943_v56  ;;  %3904 = vmatpush.msra.mxu1 %v8861_v59  ;;  %v11376_v59 = vld [vmem:[#allocation46_spill] sm:$0xff]  ;;  %v2713_v11 = vpop.f32.mrf.mxu1 }
 0x216   :  { %3967 = vmatpush.msra.mxu2 %v11374_v42  ;;  %4024 = vmatpush.msra.mxu3 %v8873_v46  ;;  %v254_v56 = vld [vmem:[#allocation5 + $0x5d0] sm:$0xff]  ;;  %v2444_v0 = vadd.f32 %v2443_v29, %v2400_v3 }
 0x217   :  { %3865 = vmatpush.msra.mxu0 %v8956_v22  ;;  %3906 = vmatpush.msra.mxu1 %v8873_v46  ;;  %v258_v46 = vld [vmem:[#allocation5 + $0x5f0] sm:$0xff]  ;;  %v9190_v44 = vpop.f32.mrf.mxu2 }
 0x218   :  { %3971 = vmatpush.msra.mxu2 %v11375_v36  ;;  %4026 = vmatpush.msra.mxu3 %v11376_v59  ;;  %v9195_v19 = vand.u32 4294901760, %v258_v46  ;;  %v250_v22 = vld [vmem:[#allocation5 + $0x5b0] sm:$0xff]  ;;  %v2519_v33 = vadd.f32 %v9127_v49, %v2444_v0  ;;  %v2405_v49 = vadd.f32 %v9145_v9, %v2346_v62 }
 0x219   :  { %3868 = vmatpush.msra.mxu0 %v8971_v58  ;;  %3908 = vmatpush.msra.mxu1 %v11376_v59  ;;  %v234_v42 = vld [vmem:[#allocation5 + $0x530] sm:$0xff] }
 0x21a   :  { %3975 = vmatpush.msra.mxu2 %v11377_v27  ;;  %4028 = vmatpush.msra.mxu3 %v8901_v32  ;;  %v9205_v29 = vpop.f32.mrf.mxu3  ;;  %v9215_v2 = vsub.f32 %v258_v46, %v9195_v19  ;;  %v9274_v21 = vand.u32 4294901760, %v234_v42  ;;  %v226_v27 = vld [vmem:[#allocation5 + $0x4f0] sm:$0xff] }
 0x21b   :  { %3871 = vmatpush.msra.mxu0 %v8989_v47  ;;  %3910 = vmatpush.msra.mxu1 %v8901_v32  ;;  %v11379_v32 = vand.u32 4294901760, %v8971_v58  ;;  %v11380_v58 = vld [vmem:[#allocation27_spill] sm:$0xff]  ;;  %v246_v47 = vld [vmem:[#allocation5 + $0x590] sm:$0xff] }
 0x21c   :  { %3979 = vmatpush.msra.mxu2 %v11378_v40  ;;  %4030 = vmatpush.msra.mxu3 %v8916_v23  ;;  %v9231_v63 = vand.u32 4294901760, %v246_v47  ;;  %v11041_v9 = vand.u32 4294901760, %v9215_v2  ;;  %v222_v0 = vld [vmem:[#allocation5 + $0x4d0] sm:$0xff] }
 0x21d   :  { %3637 = vmatmul.f32.gmra.mxu0 %v11365_v14  ;;  %3912 = vmatpush.msra.mxu1 %v8916_v23  ;;  %v9203_v23 = vand.u32 4294901760, %v254_v56 }
 0x21e   :  { %3874 = vmatpush.msra.mxu0 %v9010_v61  ;;  %3983 = vmatpush.msra.mxu2 %v11379_v32  ;;  %v2560_v61 = vadd.f32 %v9137_v48, %v2519_v33  ;;  %v9245_v48 = vpop.f32.mrf.mxu1 }
 0x21f   :  { %4032 = vmatpush.msra.mxu3 %v8929_v39  ;;  %3914 = vmatpush.msra.mxu1 %v8929_v39  ;;  %v9212_v39 = vand.u32 4294901760, %v250_v22  ;;  %v9247_v25 = vpop.f32.mrf.mxu2 }
 0x220   :  { %3877 = vmatpush.msra.mxu0 %v9023_v13  ;;  %3987 = vmatpush.msra.mxu2 %v3799_v17  ;;  %v9217_v17 = vpop.f32.mrf.mxu0  ;;  %v2450_v13 = vadd.f32 %v9161_v43, %v2405_v49  ;;  %v9258_v43 = vsub.f32 %v246_v47, %v9231_v63  ;;  %v218_v47 = vld [vmem:[#allocation5 + $0x4b0] sm:$0xff] }
 0x221   :  { %4034 = vmatpush.msra.mxu3 %v8945_v30  ;;  %3727 = vmatmul.f32.gmra.mxu2 %v11380_v58  ;;  %v9240_v53 = vsub.f32 %v250_v22, %v9212_v39 }
 0x222   :  { %3880 = vmatpush.msra.mxu0 %v9035_v60  ;;  %3916 = vmatpush.msra.mxu1 %v8945_v30  ;;  %v9226_v30 = vsub.f32 %v254_v56, %v9203_v23  ;;  %v4106_v60 = vsub.f32 %v9215_v2, %v11041_v9  ;;  %v9270_v59 = vpop.f32.mrf.mxu3  ;;  %v11036_v3 = vand.u32 4294901760, %v9258_v43 }
 0x223   :  { %3991 = vmatpush.msra.mxu2 %v3805_v54  ;;  %4036 = vmatpush.msra.mxu3 %v8963_v31  ;;  %v9236_v54 = vand.u32 4294901760, %v242_v26 }
 0x224   :  { %3832 = vmatmul.f32.gmra.mxu3 %v11381_v5  ;;  %3883 = vmatpush.msra.mxu0 %v9051_v52  ;;  %v11039_v12 = vand.u32 4294901760, %v9226_v30  ;;  %v2523_v52 = vadd.f32 %v9163_v16, %v2450_v13  ;;  %v4107_v40 = vand.u32 4294901760, %v4106_v60  ;;  %v4124_v49 = vsub.f32 %v9258_v43, %v11036_v3 }
 0x225   :  { %3918 = vmatpush.msra.mxu1 %v8963_v31  ;;  %3995 = vmatpush.msra.mxu2 %v3811_v55  ;;  %v11382_v31 = vld [vmem:[#allocation21_spill] sm:$0xff]  ;;  %v2605_v55 = vadd.f32 %v2604_v15, %v2560_v61  ;;  %v9268_v36 = vsub.f32 %v242_v26, %v9236_v54  ;;  %v11383_v26 = vld [vmem:[#allocation23_spill] sm:$0xff]  ;;  %v9312_v61 = vand.u32 4294901760, %v222_v0 }
 0x226   :  { %4038 = vmatpush.msra.mxu3 %v8983_v4  ;;  %3678 = vmatmul.f32.gmra.mxu1 %v11365_v14  ;;  %v2564_v32 = vadd.f32 %v9174_v50, %v2523_v52  ;;  %v2931_v22 = vpop.f32.mrf.mxu1  ;;  %v210_v52 = vld [vmem:[#allocation5 + $0x470] sm:$0xff]  ;;  %v11393_v14 = vand.u32 4294901760, %v9215_v2 }
 0x227   :  { %3886 = vmatmul.f32.vlgmr.msra.gmra.mxu0 %v11382_v31  ;;  %3920 = vmatpush.msra.mxu1 %v8983_v4  ;;  %v9255_v4 = vand.u32 4294901760, %v238_v18  ;;  %v2714_v37 = vadd.f32 %v2713_v11, %v2605_v55  ;;  %v11034_v56 = vand.u32 4294901760, %v9268_v36  ;;  %v9299_v11 = vand.u32 4294901760, %v226_v27  ;;  %v2976_v33 = vpop.f32.mrf.mxu2 }
 0x228   :  { %4055 = vmatpush.msrb.mxu0 %v9195_v19  ;;  %3999 = vmatpush.msra.mxu2 %v3817_v28  ;;  %v11038_v28 = vand.u32 4294901760, %v9240_v53  ;;  %v2890_v15 = vpop.f32.mrf.mxu0  ;;  %v2613_v13 = vadd.f32 %v9217_v17, %v2564_v32  ;;  %v4125_v32 = vand.u32 4294901760, %v4124_v49  ;;  %v11384_v49 = vld [vmem:[#allocation25_spill] sm:$0xff] }
 0x229   :  { %4040 = vmatpush.msra.mxu3 %v8996_v57  ;;  %3922 = vmatpush.msra.mxu1 %v8996_v57  ;;  %v230_v57 = vld [vmem:[#allocation5 + $0x510] sm:$0xff]  ;;  %v9288_v24 = vsub.f32 %v238_v18, %v9255_v4  ;;  %v2772_v16 = vadd.f32 %v9190_v44, %v2714_v37  ;;  %v9302_v44 = vsub.f32 %v234_v42, %v9274_v21 }
 0x22a   :  { %4057 = vmatpush.msrb.mxu0 %v9203_v23  ;;  %4003 = vmatpush.msra.mxu2 %v3823_v41  ;;  %v4112_v41 = vsub.f32 %v9226_v30, %v11039_v12  ;;  %v9284_v46 = vand.u32 4294901760, %v230_v57  ;;  %v214_v18 = vld [vmem:[#allocation5 + $0x490] sm:$0xff]  ;;  %v4130_v37 = vsub.f32 %v9268_v36, %v11034_v56  ;;  %v9326_v60 = vpop.f32.mrf.mxu3 }
 0x22b   :  { %4042 = vmatpush.msra.mxu3 %v9012_v20  ;;  %4005 = vmatmul.f32.vlgmr.msra.gmra.mxu2 %v11372_v10  ;;  %v11035_v50 = vand.u32 4294901760, %v9288_v24  ;;  %v2816_v55 = vadd.f32 %v9205_v29, %v2772_v16  ;;  %v11037_v17 = vand.u32 4294901760, %v9302_v44  ;;  %v9332_v29 = vsub.f32 %v226_v27, %v9299_v11 }
 0x22c   :  { %4059 = vmatpush.msrb.mxu0 %v9212_v39  ;;  %4210 = vmatpush.msrb.mxu2 %v9215_v2  ;;  %v4113_v62 = vand.u32 4294901760, %v4112_v41  ;;  %v2718_v41 = vadd.f32 %v9245_v48, %v2613_v13  ;;  %v9345_v48 = vsub.f32 %v222_v0, %v9312_v61  ;;  %v206_v13 = vld [vmem:[#allocation5 + $0x450] sm:$0xff]  ;;  %v11395_v2 = vand.u32 4294901760, %v9226_v30 }
 0x22d   :  { %3924 = vmatpush.msra.mxu1 %v9012_v20  ;;  %4044 = vmatpush.msra.mxu3 %v9030_v35  ;;  %v4118_v20 = vsub.f32 %v9240_v53, %v11038_v28  ;;  %v2891_v16 = vadd.f32 %v2890_v15, %v2816_v55  ;;  %v4136_v27 = vsub.f32 %v9288_v24, %v11035_v50  ;;  %v4131_v15 = vand.u32 4294901760, %v4130_v37 }
 0x22e   :  { %4046 = vmatmul.f32.vlgmr.msra.gmra.mxu3 %v11372_v10  ;;  %4061 = vmatpush.msrb.mxu0 %v9231_v63  ;;  %v4142_v50 = vsub.f32 %v9302_v44, %v11037_v17  ;;  %v11042_v3 = vand.u32 4294901760, %v9332_v29  ;;  %v9369_v17 = vand.u32 4294901760, %v206_v13  ;;  %v310_v10 = vld [vmem:[#allocation5 + $0x790] sm:$0xff] }
 0x22f   :  { %4213 = vmatpush.msrb.mxu2 %v9226_v30  ;;  %4268 = vmatpush.msrb.mxu3 %v9195_v19  ;;  %v4119_v42 = vand.u32 4294901760, %v4118_v20  ;;  %v2932_v55 = vadd.f32 %v2931_v22, %v2891_v16  ;;  %v4137_v37 = vand.u32 4294901760, %v4136_v27  ;;  %v2984_v28 = vpop.f32.mrf.mxu2  ;;  %v11398_v30 = vand.u32 4294901760, %v9240_v53 }
 0x230   :  { %3926 = vmatpush.msra.mxu1 %v9030_v35  ;;  %4063 = vmatpush.msrb.mxu0 %v9236_v54  ;;  %v9316_v35 = vsub.f32 %v230_v57, %v9284_v46  ;;  %v9328_v57 = vand.u32 4294901760, %v218_v47  ;;  %v2894_v20 = vpop.f32.mrf.mxu0  ;;  %v4143_v27 = vand.u32 4294901760, %v4142_v50 }
 0x231   :  { %3930 = vmatmul.f32.vlgmr.msra.gmra.mxu1 %v11383_v26  ;;  %4216 = vmatpush.msrb.mxu2 %v9240_v53  ;;  %v2977_v12 = vadd.f32 %v2976_v33, %v2932_v55  ;;  %v286_v53 = vld [vmem:[#allocation5 + $0x6d0] sm:$0xff] }
 0x232   :  { %4108 = vmatpush.msrb.mxu1 %v4107_v40  ;;  %4270 = vmatpush.msrb.mxu3 %v9203_v23  ;;  %v9336_v40 = vand.u32 4294901760, %v214_v18  ;;  %v11040_v56 = vand.u32 4294901760, %v9316_v35  ;;  %v9357_v0 = vsub.f32 %v218_v47, %v9328_v57  ;;  %v9387_v33 = vpop.f32.mrf.mxu3 }
 0x233   :  { %4065 = vmatpush.msrb.mxu0 %v9255_v4  ;;  %4219 = vmatpush.msrb.mxu2 %v9258_v43 }
 0x234   :  { %4114 = vmatpush.msrb.mxu1 %v4113_v62  ;;  %4272 = vmatpush.msrb.mxu3 %v9212_v39  ;;  %v9348_v62 = vand.u32 4294901760, %v210_v52  ;;  %v9363_v22 = vsub.f32 %v214_v18, %v9336_v40  ;;  %v4148_v16 = vsub.f32 %v9316_v35, %v11040_v56  ;;  %v202_v18 = vld [vmem:[#allocation5 + $0x430] sm:$0xff]  ;;  %v4154_v56 = vsub.f32 %v9332_v29, %v11042_v3 }
 0x235   :  { %4009 = vmatmul.f32.gmra.mxu2 %v11381_v5  ;;  %4067 = vmatpush.msrb.mxu0 %v9274_v21  ;;  %v9392_v3 = vand.u32 4294901760, %v202_v18 }
 0x236   :  { %4120 = vmatpush.msrb.mxu1 %v4119_v42  ;;  %4222 = vmatpush.msrb.mxu2 %v9268_v36  ;;  %v2777_v42 = vadd.f32 %v9247_v25, %v2718_v41  ;;  %v11385_v25 = vld [vmem:[#allocation26_spill] sm:$0xff]  ;;  %v2935_v41 = vpop.f32.mrf.mxu1  ;;  %v4149_v50 = vand.u32 4294901760, %v4148_v16  ;;  %v3086_v16 = vadd.f32 %v9326_v60, %v2977_v12 }
 0x237   :  { %4274 = vmatpush.msrb.mxu3 %v9231_v63  ;;  %3891 = vmatmul.f32.gmra.mxu0 %v11384_v49  ;;  %v318_v60 = vld [vmem:[#allocation5 + $0x7d0] sm:$0xff] }
 0x238   :  { %4050 = vmatmul.f32.gmra.mxu3 %v11381_v5  ;;  %4069 = vmatpush.msrb.mxu0 %v9284_v46  ;;  %v2822_v47 = vadd.f32 %v9270_v59, %v2777_v42  ;;  %v198_v59 = vld [vmem:[#allocation5 + $0x410] sm:$0xff]  ;;  %v9395_v42 = vsub.f32 %v206_v13, %v9369_v17  ;;  %v3143_v9 = vpop.f32.mrf.mxu0 }
 0x239   :  { %4126 = vmatpush.msrb.mxu1 %v4125_v32  ;;  %4225 = vmatpush.msrb.mxu2 %v9288_v24  ;;  %v9375_v32 = vsub.f32 %v210_v52, %v9348_v62  ;;  %v11387_v52 = vand.u32 4294901760, %v9357_v0 }
 0x23a   :  { %4276 = vmatpush.msrb.mxu3 %v9236_v54  ;;  %3936 = vmatmul.f32.gmra.mxu1 %v11385_v25  ;;  %v322_v25 = vld [vmem:[#allocation5 + $0x7f0] sm:$0xff]  ;;  %v2895_v49 = vadd.f32 %v2894_v20, %v2822_v47  ;;  %v9409_v20 = vand.u32 4294901760, %v198_v59  ;;  %v11388_v47 = vand.u32 4294901760, %v9363_v22 }
 0x23b   :  { %4071 = vmatpush.msrb.mxu0 %v9299_v11  ;;  %4132 = vmatpush.msrb.mxu1 %v4131_v15  ;;  %v11386_v15 = vand.u32 4294901760, %v9345_v48  ;;  %v4166_v26 = vsub.f32 %v9357_v0, %v11387_v52  ;;  %v9405_v13 = vand.u32 4294901760, %v322_v25  ;;  %v9416_v52 = vsub.f32 %v202_v18, %v9392_v3 }
 0x23c   :  { %4228 = vmatpush.msrb.mxu2 %v9302_v44  ;;  %4278 = vmatpush.msrb.mxu3 %v9255_v4  ;;  %v2936_v31 = vadd.f32 %v2935_v41, %v2895_v49  ;;  %v4172_v12 = vsub.f32 %v9363_v22, %v11388_v47  ;;  %v314_v47 = vld [vmem:[#allocation5 + $0x7b0] sm:$0xff] }
 0x23d   :  { %4073 = vmatpush.msrb.mxu0 %v9312_v61  ;;  %4138 = vmatpush.msrb.mxu1 %v4137_v37  ;;  %v4160_v55 = vsub.f32 %v9345_v48, %v11386_v15  ;;  %v11044_v37 = vand.u32 4294901760, %v9375_v32  ;;  %v4155_v15 = vand.u32 4294901760, %v4154_v56  ;;  %v9426_v18 = vsub.f32 %v322_v25, %v9405_v13 }
 0x23e   :  { %4231 = vmatpush.msrb.mxu2 %v9316_v35  ;;  %4280 = vmatpush.msrb.mxu3 %v9274_v21  ;;  %v4173_v49 = vand.u32 4294901760, %v4172_v12  ;;  %v306_v12 = vld [vmem:[#allocation5 + $0x770] sm:$0xff] }
 0x23f   :  { %4075 = vmatpush.msrb.mxu0 %v9328_v57  ;;  %4144 = vmatpush.msrb.mxu1 %v4143_v27  ;;  %v4161_v56 = vand.u32 4294901760, %v4160_v55  ;;  %v3144_v27 = vadd.f32 %v3143_v9, %v3086_v16  ;;  %v4178_v41 = vsub.f32 %v9375_v32, %v11044_v37  ;;  %v4167_v9 = vand.u32 4294901760, %v4166_v26 }
 0x240   :  { %4234 = vmatpush.msrb.mxu2 %v9332_v29  ;;  %4282 = vmatpush.msrb.mxu3 %v9284_v46  ;;  %v2985_v16 = vadd.f32 %v2984_v28, %v2936_v31  ;;  %v9433_v37 = vsub.f32 %v198_v59, %v9409_v20  ;;  %v11389_v26 = vand.u32 4294901760, %v9395_v42 }
 0x241   :  { %4077 = vmatpush.msrb.mxu0 %v9336_v40  ;;  %4150 = vmatpush.msrb.mxu1 %v4149_v50  ;;  %v9428_v50 = vand.u32 4294901760, %v318_v60  ;;  %v4179_v59 = vand.u32 4294901760, %v4178_v41  ;;  %v298_v41 = vld [vmem:[#allocation5 + $0x730] sm:$0xff] }
 0x242   :  { %4237 = vmatpush.msrb.mxu2 %v9345_v48  ;;  %4284 = vmatpush.msrb.mxu3 %v9299_v11  ;;  %v3187_v5 = vpop.f32.mrf.mxu1  ;;  %v3262_v58 = vpop.f32.mrf.mxu2  ;;  %v4184_v25 = vsub.f32 %v9395_v42, %v11389_v26 }
 0x243   :  { %4079 = vmatpush.msrb.mxu0 %v9348_v62  ;;  %4156 = vmatpush.msrb.mxu1 %v4155_v15  ;;  %v3188_v55 = vadd.f32 %v3187_v5, %v3144_v27  ;;  %v9440_v5 = vand.u32 4294901760, %v314_v47  ;;  %v9447_v27 = vsub.f32 %v318_v60, %v9428_v50  ;;  %v3148_v26 = vpop.f32.mrf.mxu0  ;;  %v9449_v15 = vand.u32 4294901760, %v310_v10 }
 0x244   :  { %4240 = vmatpush.msrb.mxu2 %v9357_v0  ;;  %4286 = vmatpush.msrb.mxu3 %v9312_v61 }
 0x245   :  { %4081 = vmatpush.msrb.mxu0 %v9369_v17  ;;  %4162 = vmatpush.msrb.mxu1 %v4161_v56  ;;  %v3263_v31 = vadd.f32 %v3262_v58, %v3188_v55  ;;  %v3303_v28 = vpop.f32.mrf.mxu3  ;;  %v3090_v58 = vadd.f32 %v9387_v33, %v2985_v16  ;;  %v11390_v55 = vand.u32 4294901760, %v9416_v52  ;;  %v9460_v56 = vsub.f32 %v314_v47, %v9440_v5  ;;  %v302_v33 = vld [vmem:[#allocation5 + $0x750] sm:$0xff] }
 0x246   :  { %4243 = vmatpush.msrb.mxu2 %v9363_v22  ;;  %4288 = vmatpush.msrb.mxu3 %v9328_v57  ;;  %v9472_v47 = vsub.f32 %v310_v10, %v9449_v15 }
 0x247   :  { %4083 = vmatpush.msrb.mxu0 %v9392_v3  ;;  %4168 = vmatpush.msrb.mxu1 %v4167_v9  ;;  %v3304_v34 = vadd.f32 %v3303_v28, %v3263_v31  ;;  %v4185_v9 = vand.u32 4294901760, %v4184_v25  ;;  %v4190_v60 = vsub.f32 %v9416_v52, %v11390_v55  ;;  %v9462_v31 = vand.u32 4294901760, %v306_v12  ;;  %v11391_v28 = vld [vmem:[#allocation34_spill] sm:$0xff] }
 0x248   :  { %4246 = vmatpush.msrb.mxu2 %v9375_v32  ;;  %4290 = vmatpush.msrb.mxu3 %v9336_v40  ;;  %v3149_v16 = vadd.f32 %v3148_v26, %v3090_v58  ;;  %v11394_v26 = vand.u32 4294901760, %v9433_v37  ;;  %v9480_v58 = vand.u32 4294901760, %v302_v33  ;;  %v290_v55 = vld [vmem:[#allocation5 + $0x6f0] sm:$0xff] }
 0x249   :  { %4085 = vmatpush.msrb.mxu0 %v9409_v20  ;;  %4174 = vmatpush.msrb.mxu1 %v4173_v49  ;;  %6287 = vst [vmem:[#allocation8 + $0x8] sm:$0xff] %v3304_v34  ;;  %v11392_v49 = vand.u32 4294901760, %v9426_v18  ;;  %v4191_v10 = vand.u32 4294901760, %v4190_v60  ;;  %v9485_v8 = vsub.f32 %v306_v12, %v9462_v31  ;;  %v11397_v60 = vand.u32 4294901760, %v9447_v27 }
 0x24a   :  { %4249 = vmatpush.msrb.mxu2 %v9395_v42  ;;  %4292 = vmatpush.msrb.mxu3 %v9348_v62  ;;  %v9517_v51 = vand.u32 4294901760, %v290_v55 }
 0x24b   :  { %4091 = vmatmul.f32.vlgmr.msrb.gmra.mxu0 %v11391_v28  ;;  %4180 = vmatpush.msrb.mxu1 %v4179_v59  ;;  %v4478_v25 = vsub.f32 %v9426_v18, %v11392_v49  ;;  %v3193_v34 = vpop.f32.mrf.mxu1  ;;  %v4196_v59 = vsub.f32 %v9433_v37, %v11394_v26  ;;  %v9490_v26 = vand.u32 4294901760, %v298_v41 }
 0x24c   :  { %4315 = vmatpush.msra.mxu0 %v11393_v14  ;;  %4252 = vmatpush.msrb.mxu2 %v9416_v52  ;;  %v3194_v28 = vadd.f32 %v3193_v34, %v3149_v16  ;;  %v3266_v49 = vpop.f32.mrf.mxu2  ;;  %v294_v14 = vld [vmem:[#allocation5 + $0x710] sm:$0xff]  ;;  %v4484_v34 = vsub.f32 %v9447_v27, %v11397_v60  ;;  %v11399_v60 = vand.u32 4294901760, %v9460_v56 }
 0x24d   :  { %4294 = vmatpush.msrb.mxu3 %v9369_v17  ;;  %4186 = vmatpush.msrb.mxu1 %v4185_v9  ;;  %v11396_v16 = vld [vmem:[#allocation29_spill] sm:$0xff]  ;;  %v4479_v9 = vand.u32 4294901760, %v4478_v25 }
 0x24e   :  { %4319 = vmatpush.msra.mxu0 %v11395_v2  ;;  %4255 = vmatpush.msrb.mxu2 %v9433_v37  ;;  %v3267_v38 = vadd.f32 %v3266_v49, %v3194_v28  ;;  %v4197_v2 = vand.u32 4294901760, %v4196_v59  ;;  %v9502_v28 = vsub.f32 %v302_v33, %v9480_v58  ;;  %v9504_v49 = vand.u32 4294901760, %v294_v14 }
 0x24f   :  { %4296 = vmatpush.msrb.mxu3 %v9392_v3  ;;  %4258 = vmatmul.f32.vlgmr.msrb.gmra.mxu2 %v11396_v16  ;;  %v3307_v1 = vpop.f32.mrf.mxu3  ;;  %v4490_v12 = vsub.f32 %v9460_v56, %v11399_v60  ;;  %v11401_v59 = vand.u32 4294901760, %v9258_v43  ;;  %v9515_v33 = vsub.f32 %v298_v41, %v9490_v26  ;;  %v282_v60 = vld [vmem:[#allocation5 + $0x6b0] sm:$0xff]  ;;  %v11403_v16 = vld [vmem:[#allocation36_spill] sm:$0xff]  ;;  %v9540_v43 = vsub.f32 %v290_v55, %v9517_v51 }
 0x250   :  { %4323 = vmatpush.msra.mxu0 %v11398_v30  ;;  %4427 = vmatpush.msra.mxu2 %v9405_v13  ;;  %v3308_v25 = vadd.f32 %v3307_v1, %v3267_v38  ;;  %v11400_v30 = vld [vmem:[#allocation30_spill] sm:$0xff]  ;;  %v4485_v1 = vand.u32 4294901760, %v4484_v34  ;;  %v11402_v38 = vand.u32 4294901760, %v9472_v47  ;;  %v9526_v41 = vsub.f32 %v294_v14, %v9504_v49 }
 0x251   :  { %4192 = vmatpush.msrb.mxu1 %v4191_v10  ;;  %4298 = vmatpush.msrb.mxu3 %v9409_v20  ;;  %v4491_v34 = vand.u32 4294901760, %v4490_v12 }
 0x252   :  { %4302 = vmatmul.f32.vlgmr.msrb.gmra.mxu3 %v11400_v30  ;;  %4327 = vmatpush.msra.mxu0 %v11401_v59  ;;  %6291 = vst [vmem:[#allocation8 + $0x28] sm:$0xff] %v3308_v25  ;;  %v4496_v10 = vsub.f32 %v9472_v47, %v11402_v38  ;;  %v9528_v59 = vand.u32 4294901760, %v286_v53  ;;  %v11404_v25 = vld [vmem:[#allocation28_spill] sm:$0xff]  ;;  %v11406_v30 = vand.u32 4294901760, %v9485_v8 }
 0x253   :  { %4429 = vmatpush.msra.mxu2 %v9428_v50  ;;  %4480 = vmatpush.msra.mxu3 %v4479_v9  ;;  %v11405_v9 = vand.u32 4294901760, %v9268_v36  ;;  %v11407_v36 = vand.u32 4294901760, %v9288_v24  ;;  %v11409_v24 = vld [vmem:[#allocation32_spill] sm:$0xff] }
 0x254   :  { %4198 = vmatpush.msrb.mxu1 %v4197_v2  ;;  %4099 = vmatmul.f32.gmra.mxu0 %v11403_v16  ;;  %v4502_v38 = vsub.f32 %v9485_v8, %v11406_v30  ;;  %v278_v2 = vld [vmem:[#allocation5 + $0x690] sm:$0xff]  ;;  %v9542_v16 = vand.u32 4294901760, %v282_v60  ;;  %v4497_v12 = vand.u32 4294901760, %v4496_v10  ;;  %v9553_v55 = vsub.f32 %v286_v53, %v9528_v59 }
 0x255   :  { %4200 = vmatmul.f32.vlgmr.msrb.gmra.mxu1 %v11404_v25  ;;  %4331 = vmatpush.msra.mxu0 %v11405_v9  ;;  %v274_v9 = vld [vmem:[#allocation5 + $0x670] sm:$0xff]  ;;  %v9555_v6 = vand.u32 4294901760, %v278_v2  ;;  %v11410_v10 = vand.u32 4294901760, %v9302_v44  ;;  %v11413_v44 = vand.u32 4294901760, %v9316_v35  ;;  %v11415_v35 = vld [vmem:[#allocation31_spill] sm:$0xff] }
 0x256   :  { %4386 = vmatpush.msra.mxu1 %v9195_v19  ;;  %4431 = vmatpush.msra.mxu2 %v9440_v5  ;;  %v11408_v19 = vand.u32 4294901760, %v9502_v28  ;;  %v9566_v53 = vsub.f32 %v282_v60, %v9542_v16  ;;  %v9568_v14 = vand.u32 4294901760, %v274_v9 }
 0x257   :  { %4486 = vmatpush.msra.mxu3 %v4485_v1  ;;  %4335 = vmatpush.msra.mxu0 %v11407_v36  ;;  %v4503_v1 = vand.u32 4294901760, %v4502_v38  ;;  %v11412_v38 = vld [vmem:[#allocation35_spill] sm:$0xff]  ;;  %v9579_v60 = vsub.f32 %v278_v2, %v9555_v6 }
 0x258   :  { %4388 = vmatpush.msra.mxu1 %v9203_v23  ;;  %4433 = vmatpush.msra.mxu2 %v9449_v15  ;;  %v4508_v30 = vsub.f32 %v9502_v28, %v11408_v19  ;;  %v11411_v23 = vand.u32 4294901760, %v9515_v33  ;;  %v9591_v2 = vsub.f32 %v274_v9, %v9568_v14  ;;  %v11419_v9 = vand.u32 4294901760, %v9345_v48 }
 0x259   :  { %4492 = vmatpush.msra.mxu3 %v4491_v34  ;;  %4263 = vmatmul.f32.gmra.mxu2 %v11409_v24  ;;  %v270_v34 = vld [vmem:[#allocation5 + $0x650] sm:$0xff]  ;;  %v4543_v19 = vand.u32 4294901760, %v9579_v60  ;;  %v11421_v48 = vand.u32 4294901760, %v9357_v0 }
 0x25a   :  { %4339 = vmatpush.msra.mxu0 %v11410_v10  ;;  %4390 = vmatpush.msra.mxu1 %v9212_v39  ;;  %v4514_v36 = vsub.f32 %v9515_v33, %v11411_v23  ;;  %v4509_v39 = vand.u32 4294901760, %v4508_v30  ;;  %v11414_v10 = vand.u32 4294901760, %v9526_v41  ;;  %v266_v24 = vld [vmem:[#allocation5 + $0x630] sm:$0xff] }
 0x25b   :  { %4435 = vmatpush.msra.mxu2 %v9462_v31  ;;  %4498 = vmatpush.msra.mxu3 %v4497_v12  ;;  %v9583_v12 = vand.u32 4294901760, %v270_v34  ;;  %v9596_v7 = vand.u32 4294901760, %v266_v24 }
 0x25c   :  { %4308 = vmatmul.f32.gmra.mxu3 %v11412_v38  ;;  %4343 = vmatpush.msra.mxu0 %v11413_v44  ;;  %v4520_v23 = vsub.f32 %v9526_v41, %v11414_v10  ;;  %v4515_v30 = vand.u32 4294901760, %v4514_v36  ;;  %v11416_v44 = vand.u32 4294901760, %v9540_v43  ;;  %v262_v38 = vld [vmem:[#allocation5 + $0x610] sm:$0xff]  ;;  %v11418_v36 = vand.u32 4294901760, %v9553_v55 }
 0x25d   :  { %4392 = vmatpush.msra.mxu1 %v9231_v63  ;;  %4437 = vmatpush.msra.mxu2 %v9480_v58  ;;  %v11417_v63 = vand.u32 4294901760, %v9332_v29  ;;  %v9607_v29 = vsub.f32 %v270_v34, %v9583_v12 }
 0x25e   :  { %4504 = vmatpush.msra.mxu3 %v4503_v1  ;;  %4204 = vmatmul.f32.gmra.mxu1 %v11415_v35  ;;  %v4526_v10 = vsub.f32 %v9540_v43, %v11416_v44  ;;  %v4521_v1 = vand.u32 4294901760, %v4520_v23  ;;  %v4532_v44 = vsub.f32 %v9553_v55, %v11418_v36  ;;  %v11420_v23 = vand.u32 4294901760, %v9566_v53 }
 0x25f   :  { %4347 = vmatpush.msra.mxu0 %v11417_v63  ;;  %4394 = vmatpush.msra.mxu1 %v9236_v54  ;;  %v9609_v54 = vand.u32 4294901760, %v262_v38  ;;  %v4549_v36 = vand.u32 4294901760, %v9591_v2  ;;  %v4555_v0 = vand.u32 4294901760, %v9607_v29 }
 0x260   :  { %4439 = vmatpush.msra.mxu2 %v9490_v26  ;;  %4510 = vmatpush.msra.mxu3 %v4509_v39  ;;  %v4527_v39 = vand.u32 4294901760, %v4526_v10  ;;  %v4538_v63 = vsub.f32 %v9566_v53, %v11420_v23  ;;  %v4533_v34 = vand.u32 4294901760, %v4532_v44  ;;  %v11422_v10 = vand.u32 4294901760, %v9363_v22 }
 0x261   :  { %4351 = vmatpush.msra.mxu0 %v11419_v9  ;;  %4396 = vmatpush.msra.mxu1 %v9255_v4  ;;  %v9620_v4 = vsub.f32 %v266_v24, %v9596_v7  ;;  %v11423_v44 = vand.u32 4294901760, %v9375_v32  ;;  %v4556_v9 = vsub.f32 %v9607_v29, %v4555_v0 }
 0x262   :  { %4441 = vmatpush.msra.mxu2 %v9504_v49  ;;  %4516 = vmatpush.msra.mxu3 %v4515_v30  ;;  %v4544_v30 = vsub.f32 %v9579_v60, %v4543_v19  ;;  %v4539_v24 = vand.u32 4294901760, %v4538_v63  ;;  %v11429_v63 = vld [vmem:[#allocation37_spill] sm:$0xff] }
 0x263   :  { %4355 = vmatpush.msra.mxu0 %v11421_v48  ;;  %4398 = vmatpush.msra.mxu1 %v9274_v21  ;;  %v9631_v21 = vsub.f32 %v262_v38, %v9609_v54  ;;  %v11424_v38 = vand.u32 4294901760, %v9395_v42  ;;  %v4557_v23 = vand.u32 4294901760, %v4556_v9 }
 0x264   :  { %4443 = vmatpush.msra.mxu2 %v9517_v51  ;;  %4522 = vmatpush.msra.mxu3 %v4521_v1  ;;  %v4550_v1 = vsub.f32 %v9591_v2, %v4549_v36  ;;  %v4545_v22 = vand.u32 4294901760, %v4544_v30 }
 0x265   :  { %4359 = vmatpush.msra.mxu0 %v11422_v10  ;;  %4400 = vmatpush.msra.mxu1 %v9284_v46  ;;  %v4561_v46 = vand.u32 4294901760, %v9620_v4  ;;  %v4567_v32 = vand.u32 4294901760, %v9631_v21 }
 0x266   :  { %4445 = vmatpush.msra.mxu2 %v9528_v59  ;;  %4528 = vmatpush.msra.mxu3 %v4527_v39  ;;  %v11425_v39 = vand.u32 4294901760, %v9416_v52 }
 0x267   :  { %4363 = vmatpush.msra.mxu0 %v11423_v44  ;;  %4402 = vmatpush.msra.mxu1 %v9299_v11  ;;  %v4551_v11 = vand.u32 4294901760, %v4550_v1  ;;  %v4562_v42 = vsub.f32 %v9620_v4, %v4561_v46  ;;  %v4568_v52 = vsub.f32 %v9631_v21, %v4567_v32  ;;  %v95_v44 = vld [vmem:[#allocation5 + $0xd8] sm:$0xff] }
 0x268   :  { %4447 = vmatpush.msra.mxu2 %v9542_v16  ;;  %4534 = vmatpush.msra.mxu3 %v4533_v34 }
 0x269   :  { %4367 = vmatpush.msra.mxu0 %v11424_v38  ;;  %4404 = vmatpush.msra.mxu1 %v9312_v61  ;;  %v11426_v61 = vand.u32 4294901760, %v9433_v37  ;;  %v11427_v37 = vld [vmem:[#allocation42_spill] sm:$0xff] }
 0x26a   :  { %4449 = vmatpush.msra.mxu2 %v9555_v6  ;;  %4540 = vmatpush.msra.mxu3 %v4539_v24 }
 0x26b   :  { %4371 = vmatpush.msra.mxu0 %v11425_v39  ;;  %4406 = vmatpush.msra.mxu1 %v9328_v57  ;;  %v4563_v57 = vand.u32 4294901760, %v4562_v42  ;;  %v9822_v39 = vand.u32 4294901760, %v95_v44  ;;  %v91_v42 = vld [vmem:[#allocation5 + $0xb8] sm:$0xff] }
 0x26c   :  { %4451 = vmatpush.msra.mxu2 %v9568_v14  ;;  %4546 = vmatpush.msra.mxu3 %v4545_v22 }
 0x26d   :  { %4375 = vmatpush.msra.mxu0 %v11426_v61  ;;  %4408 = vmatpush.msra.mxu1 %v9336_v40  ;;  %v4569_v40 = vand.u32 4294901760, %v4568_v52  ;;  %v11444_v61 = vld [vmem:[#allocation39_spill] sm:$0xff] }
 0x26e   :  { %4453 = vmatpush.msra.mxu2 %v9583_v12  ;;  %4552 = vmatpush.msra.mxu3 %v4551_v11 }
 0x26f   :  { %4377 = vmatmul.f32.vlgmr.msra.gmra.mxu0 %v11404_v25  ;;  %4410 = vmatpush.msra.mxu1 %v9348_v62  ;;  %v11428_v62 = vand.u32 4294901760, %v9426_v18 }
 0x270   :  { %4582 = vmatpush.msrb.mxu0 %v9426_v18  ;;  %4455 = vmatpush.msra.mxu2 %v9596_v7  ;;  %v11432_v18 = vand.u32 4294901760, %v9472_v47 }
 0x271   :  { %4558 = vmatpush.msra.mxu3 %v4557_v23  ;;  %4412 = vmatpush.msra.mxu1 %v9369_v17  ;;  %v11430_v17 = vand.u32 4294901760, %v9447_v27 }
 0x272   :  { %4585 = vmatpush.msrb.mxu0 %v9447_v27  ;;  %4457 = vmatpush.msra.mxu2 %v9609_v54  ;;  %v11439_v27 = vand.u32 4294901760, %v9540_v43 }
 0x273   :  { %4564 = vmatpush.msra.mxu3 %v4563_v57  ;;  %4463 = vmatmul.f32.vlgmr.msra.gmra.mxu2 %v11427_v37 }
 0x274   :  { %4588 = vmatpush.msrb.mxu0 %v9460_v56  ;;  %4687 = vmatpush.msrb.mxu2 %v11428_v62  ;;  %v87_v62 = vld [vmem:[#allocation5 + $0x98] sm:$0xff] }
 0x275   :  { %4414 = vmatpush.msra.mxu1 %v9392_v3  ;;  %4570 = vmatpush.msra.mxu3 %v4569_v40  ;;  %v11431_v3 = vand.u32 4294901760, %v9460_v56  ;;  %v11435_v56 = vld [vmem:[#allocation40_spill] sm:$0xff] }
 0x276   :  { %4572 = vmatmul.f32.vlgmr.msra.gmra.mxu3 %v11429_v63  ;;  %4591 = vmatpush.msrb.mxu0 %v9472_v47  ;;  %v11440_v47 = vand.u32 4294901760, %v9553_v55 }
 0x277   :  { %4691 = vmatpush.msrb.mxu2 %v11430_v17  ;;  %4758 = vmatpush.msrb.mxu3 %v9405_v13  ;;  %v9839_v17 = vand.u32 4294901760, %v91_v42 }
 0x278   :  { %4416 = vmatpush.msra.mxu1 %v9409_v20  ;;  %4381 = vmatmul.f32.gmra.mxu0 %v11415_v35  ;;  %v11433_v20 = vld [vmem:[#allocation44_spill] sm:$0xff] }
 0x279   :  { %4418 = vmatmul.f32.vlgmr.msra.gmra.mxu1 %v11404_v25  ;;  %4594 = vmatpush.msrb.mxu0 %v9485_v8 }
 0x27a   :  { %4640 = vmatpush.msrb.mxu1 %v9405_v13  ;;  %4695 = vmatpush.msrb.mxu2 %v11431_v3  ;;  %v11434_v13 = vand.u32 4294901760, %v9485_v8  ;;  %v11437_v8 = vand.u32 4294901760, %v9515_v33 }
 0x27b   :  { %4760 = vmatpush.msrb.mxu3 %v9428_v50  ;;  %4597 = vmatpush.msrb.mxu0 %v9502_v28 }
 0x27c   :  { %4642 = vmatpush.msrb.mxu1 %v9428_v50  ;;  %4699 = vmatpush.msrb.mxu2 %v11432_v18  ;;  %v11436_v50 = vand.u32 4294901760, %v9502_v28  ;;  %v11441_v28 = vand.u32 4294901760, %v9566_v53 }
 0x27d   :  { %4762 = vmatpush.msrb.mxu3 %v9440_v5  ;;  %4471 = vmatmul.f32.gmra.mxu2 %v11433_v20 }
 0x27e   :  { %4600 = vmatpush.msrb.mxu0 %v9515_v33  ;;  %4644 = vmatpush.msrb.mxu1 %v9440_v5  ;;  %v131_v5 = vld [vmem:[#allocation5 + $0x1f8] sm:$0xff] }
 0x27f   :  { %4703 = vmatpush.msrb.mxu2 %v11434_v13  ;;  %4764 = vmatpush.msrb.mxu3 %v9449_v15  ;;  %v9847_v13 = vsub.f32 %v95_v44, %v9822_v39  ;;  %v11445_v44 = vld [vmem:[#allocation43_spill] sm:$0xff] }
 0x280   :  { %4576 = vmatmul.f32.gmra.mxu3 %v11435_v56  ;;  %4603 = vmatpush.msrb.mxu0 %v9526_v41 }
 0x281   :  { %4646 = vmatpush.msrb.mxu1 %v9449_v15  ;;  %4707 = vmatpush.msrb.mxu2 %v11436_v50  ;;  %v11438_v15 = vand.u32 4294901760, %v9526_v41  ;;  %v115_v41 = vld [vmem:[#allocation5 + $0x178] sm:$0xff] }
 0x282   :  { %4766 = vmatpush.msrb.mxu3 %v9462_v31  ;;  %4422 = vmatmul.f32.gmra.mxu1 %v11415_v35  ;;  %v83_v50 = vld [vmem:[#allocation5 + $0x78] sm:$0xff] }
 0x283   :  { %4606 = vmatpush.msrb.mxu0 %v9540_v43  ;;  %4648 = vmatpush.msrb.mxu1 %v9462_v31  ;;  %v127_v31 = vld [vmem:[#allocation5 + $0x1d8] sm:$0xff] }
 0x284   :  { %4711 = vmatpush.msrb.mxu2 %v11437_v8  ;;  %4768 = vmatpush.msrb.mxu3 %v9480_v58  ;;  %v9734_v33 = vand.u32 4294901760, %v127_v31  ;;  %v119_v43 = vld [vmem:[#allocation5 + $0x198] sm:$0xff] }
 0x285   :  { %4609 = vmatpush.msrb.mxu0 %v9553_v55  ;;  %4650 = vmatpush.msrb.mxu1 %v9480_v58  ;;  %v9727_v58 = vand.u32 4294901760, %v131_v5  ;;  %v9756_v55 = vand.u32 4294901760, %v119_v43  ;;  %v159_v35 = vld [vmem:[#allocation5 + $0x2d8] sm:$0xff] }
 0x286   :  { %4715 = vmatpush.msrb.mxu2 %v11438_v15  ;;  %4770 = vmatpush.msrb.mxu3 %v9490_v26 }
 0x287   :  { %4612 = vmatpush.msrb.mxu0 %v9566_v53  ;;  %4652 = vmatpush.msrb.mxu1 %v9490_v26  ;;  %v123_v26 = vld [vmem:[#allocation5 + $0x1b8] sm:$0xff]  ;;  %v9778_v48 = vsub.f32 %v119_v43, %v9756_v55 }
 0x288   :  { %4719 = vmatpush.msrb.mxu2 %v11439_v27  ;;  %4772 = vmatpush.msrb.mxu3 %v9504_v49 }
 0x289   :  { %4615 = vmatpush.msrb.mxu0 %v9579_v60  ;;  %4654 = vmatpush.msrb.mxu1 %v9504_v49  ;;  %v9741_v49 = vand.u32 4294901760, %v123_v26  ;;  %v111_v60 = vld [vmem:[#allocation5 + $0x158] sm:$0xff]  ;;  %v11055_v24 = vand.u32 4294901760, %v9778_v48 }
 0x28a   :  { %4723 = vmatpush.msrb.mxu2 %v11440_v47  ;;  %4774 = vmatpush.msrb.mxu3 %v9517_v51  ;;  %v79_v47 = vld [vmem:[#allocation5 + $0x58] sm:$0xff] }
 0x28b   :  { %4618 = vmatpush.msrb.mxu0 %v9591_v2  ;;  %4656 = vmatpush.msrb.mxu1 %v9517_v51  ;;  %v9744_v51 = vsub.f32 %v131_v5, %v9727_v58  ;;  %v9765_v53 = vsub.f32 %v123_v26, %v9741_v49  ;;  %v11442_v2 = vld [vmem:[#allocation38_spill] sm:$0xff]  ;;  %v4868_v23 = vsub.f32 %v9778_v48, %v11055_v24  ;;  %v9854_v5 = vand.u32 4294901760, %v87_v62 }
 0x28c   :  { %4727 = vmatpush.msrb.mxu2 %v11441_v28  ;;  %4776 = vmatpush.msrb.mxu3 %v9528_v59  ;;  %v9863_v28 = vand.u32 4294901760, %v83_v50  ;;  %v183_v24 = vld [vmem:[#allocation5 + $0x398] sm:$0xff] }
 0x28d   :  { %4621 = vmatpush.msrb.mxu0 %v9607_v29  ;;  %4658 = vmatpush.msrb.mxu1 %v9528_v59  ;;  %v9752_v59 = vsub.f32 %v127_v31, %v9734_v33  ;;  %v107_v29 = vld [vmem:[#allocation5 + $0x138] sm:$0xff]  ;;  %v4869_v8 = vand.u32 4294901760, %v4868_v23 }
 0x28e   :  { %4731 = vmatpush.msrb.mxu2 %v4543_v19  ;;  %4778 = vmatpush.msrb.mxu3 %v9542_v16  ;;  %v11060_v19 = vand.u32 4294901760, %v9744_v51  ;;  %v9792_v30 = vand.u32 4294901760, %v107_v29  ;;  %v9889_v23 = vsub.f32 %v83_v50, %v9863_v28 }
 0x28f   :  { %4624 = vmatpush.msrb.mxu0 %v9620_v4  ;;  %4660 = vmatpush.msrb.mxu1 %v9542_v16  ;;  %v9761_v16 = vand.u32 4294901760, %v115_v41  ;;  %v11057_v4 = vand.u32 4294901760, %v9765_v53 }
 0x290   :  { %4735 = vmatpush.msrb.mxu2 %v4549_v36  ;;  %4780 = vmatpush.msrb.mxu3 %v9555_v6  ;;  %v9775_v36 = vand.u32 4294901760, %v111_v60  ;;  %v9818_v9 = vsub.f32 %v107_v29, %v9792_v30 }
 0x291   :  { %4627 = vmatpush.msrb.mxu0 %v9631_v21  ;;  %4662 = vmatpush.msrb.mxu1 %v9555_v6  ;;  %v11059_v6 = vand.u32 4294901760, %v9752_v59  ;;  %v9788_v34 = vsub.f32 %v115_v41, %v9761_v16  ;;  %v4862_v22 = vsub.f32 %v9765_v53, %v11057_v4  ;;  %v9867_v41 = vsub.f32 %v91_v42, %v9839_v17 }
 0x292   :  { %4739 = vmatpush.msrb.mxu2 %v4555_v0  ;;  %4782 = vmatpush.msrb.mxu3 %v9568_v14  ;;  %v99_v0 = vld [vmem:[#allocation5 + $0xf8] sm:$0xff]  ;;  %v9805_v1 = vsub.f32 %v111_v60, %v9775_v36  ;;  %v11051_v3 = vand.u32 4294901760, %v9818_v9  ;;  %v11049_v60 = vand.u32 4294901760, %v9847_v13 }
 0x293   :  { %4630 = vmatmul.f32.vlgmr.msrb.gmra.mxu0 %v11442_v2  ;;  %4664 = vmatpush.msrb.mxu1 %v9568_v14  ;;  %v4850_v14 = vsub.f32 %v9744_v51, %v11060_v19  ;;  %v4856_v10 = vsub.f32 %v9752_v59, %v11059_v6  ;;  %v9815_v38 = vand.u32 4294901760, %v99_v0  ;;  %v11053_v42 = vand.u32 4294901760, %v9867_v41  ;;  %v175_v6 = vld [vmem:[#allocation5 + $0x358] sm:$0xff] }
 0x294   :  { %4799 = vmatpush.msra.mxu0 %v9727_v58  ;;  %4743 = vmatpush.msrb.mxu2 %v4561_v46  ;;  %v11052_v52 = vand.u32 4294901760, %v9805_v1  ;;  %v4886_v26 = vsub.f32 %v9818_v9, %v11051_v3  ;;  %v9971_v19 = vand.u32 4294901760, %v175_v6 }
 0x295   :  { %4784 = vmatpush.msrb.mxu3 %v9583_v12  ;;  %4666 = vmatpush.msrb.mxu1 %v9583_v12  ;;  %v103_v12 = vld [vmem:[#allocation5 + $0x118] sm:$0xff]  ;;  %v4851_v46 = vand.u32 4294901760, %v4850_v14  ;;  %v4857_v11 = vand.u32 4294901760, %v4856_v10  ;;  %v9843_v18 = vsub.f32 %v99_v0, %v9815_v38  ;;  %v9879_v10 = vsub.f32 %v87_v62, %v9854_v5 }
 0x296   :  { %4801 = vmatpush.msra.mxu0 %v9734_v33  ;;  %4747 = vmatpush.msrb.mxu2 %v4567_v32  ;;  %v9801_v21 = vand.u32 4294901760, %v103_v12  ;;  %v11443_v32 = vld [vmem:[#allocation41_spill] sm:$0xff]  ;;  %v4880_v15 = vsub.f32 %v9805_v1, %v11052_v52  ;;  %v75_v0 = vld [vmem:[#allocation5 + $0x38] sm:$0xff] }
 0x297   :  { %4786 = vmatpush.msrb.mxu3 %v9596_v7  ;;  %4749 = vmatmul.f32.vlgmr.msrb.gmra.mxu2 %v11429_v63  ;;  %v11048_v43 = vand.u32 4294901760, %v9843_v18  ;;  %v9896_v62 = vand.u32 4294901760, %v75_v0 }
 0x298   :  { %4803 = vmatpush.msra.mxu0 %v9741_v49  ;;  %4954 = vmatpush.msra.mxu2 %v9744_v51  ;;  %v9831_v57 = vsub.f32 %v103_v12, %v9801_v21  ;;  %v4881_v29 = vand.u32 4294901760, %v4880_v15  ;;  %v9876_v12 = vand.u32 4294901760, %v79_v47 }
 0x299   :  { %4668 = vmatpush.msrb.mxu1 %v9596_v7  ;;  %4788 = vmatpush.msrb.mxu3 %v9609_v54  ;;  %v11054_v7 = vand.u32 4294901760, %v9788_v34  ;;  %v9919_v52 = vsub.f32 %v75_v0, %v9896_v62 }
 0x29a   :  { %4790 = vmatmul.f32.vlgmr.msrb.gmra.mxu3 %v11429_v63  ;;  %4805 = vmatpush.msra.mxu0 %v9756_v55  ;;  %v11050_v27 = vand.u32 4294901760, %v9831_v57  ;;  %v9901_v50 = vsub.f32 %v79_v47, %v9876_v12  ;;  %v11058_v47 = vand.u32 4294901760, %v9889_v23 }
 0x29b   :  { %4957 = vmatpush.msra.mxu2 %v9752_v59  ;;  %5012 = vmatpush.msra.mxu3 %v9727_v58  ;;  %v4874_v40 = vsub.f32 %v9788_v34, %v11054_v7 }
 0x29c   :  { %4670 = vmatpush.msrb.mxu1 %v9609_v54  ;;  %4635 = vmatmul.f32.gmra.mxu0 %v11443_v32  ;;  %v4863_v54 = vand.u32 4294901760, %v4862_v22  ;;  %v4892_v14 = vsub.f32 %v9831_v57, %v11050_v27  ;;  %v4887_v22 = vand.u32 4294901760, %v4886_v26 }
 0x29d   :  { %4674 = vmatmul.f32.vlgmr.msrb.gmra.mxu1 %v11444_v61  ;;  %4807 = vmatpush.msra.mxu0 %v9761_v16  ;;  %v4875_v31 = vand.u32 4294901760, %v4874_v40  ;;  %v4904_v40 = vsub.f32 %v9847_v13, %v11049_v60  ;;  %v187_v60 = vld [vmem:[#allocation5 + $0x3b8] sm:$0xff] }
 0x29e   :  { %4852 = vmatpush.msra.mxu1 %v4851_v46  ;;  %4960 = vmatpush.msra.mxu2 %v9765_v53  ;;  %v195_v46 = vld [vmem:[#allocation5 + $0x3f8] sm:$0xff]  ;;  %v4893_v15 = vand.u32 4294901760, %v4892_v14  ;;  %v9929_v7 = vand.u32 4294901760, %v187_v60 }
 0x29f   :  { %5014 = vmatpush.msra.mxu3 %v9734_v33  ;;  %4809 = vmatpush.msra.mxu0 %v9775_v36  ;;  %v9903_v26 = vand.u32 4294901760, %v195_v46  ;;  %v4905_v3 = vand.u32 4294901760, %v4904_v40  ;;  %v167_v61 = vld [vmem:[#allocation5 + $0x318] sm:$0xff] }
 0x2a0   :  { %4858 = vmatpush.msra.mxu1 %v4857_v11  ;;  %4963 = vmatpush.msra.mxu2 %v9778_v48  ;;  %v4898_v11 = vsub.f32 %v9843_v18, %v11048_v43  ;;  %v9999_v63 = vand.u32 4294901760, %v167_v61 }
 0x2a1   :  { %5016 = vmatpush.msra.mxu3 %v9741_v49  ;;  %4753 = vmatmul.f32.gmra.mxu2 %v11435_v56 }
 0x2a2   :  { %4811 = vmatpush.msra.mxu0 %v9792_v30  ;;  %4864 = vmatpush.msra.mxu1 %v4863_v54  ;;  %v71_v54 = vld [vmem:[#allocation5 + $0x18] sm:$0xff]  ;;  %v4899_v27 = vand.u32 4294901760, %v4898_v11  ;;  %v11061_v11 = vand.u32 4294901760, %v9901_v50 }
 0x2a3   :  { %4966 = vmatpush.msra.mxu2 %v9788_v34  ;;  %5018 = vmatpush.msra.mxu3 %v9756_v55  ;;  %v9907_v43 = vand.u32 4294901760, %v71_v54 }
 0x2a4   :  { %4794 = vmatmul.f32.gmra.mxu3 %v11435_v56  ;;  %4813 = vmatpush.msra.mxu0 %v9801_v21  ;;  %v163_v56 = vld [vmem:[#allocation5 + $0x2f8] sm:$0xff] }
 0x2a5   :  { %4870 = vmatpush.msra.mxu1 %v4869_v8  ;;  %4969 = vmatpush.msra.mxu2 %v9805_v1  ;;  %v191_v8 = vld [vmem:[#allocation5 + $0x3d8] sm:$0xff]  ;;  %11446 = vst [vmem:[#allocation14_spill] sm:$0xff] %v9907_v43  ;;  %v9934_v0 = vsub.f32 %v71_v54, %v9907_v43  ;;  %v9946_v54 = vand.u32 4294901760, %v183_v24  ;;  %v10014_v25 = vand.u32 4294901760, %v163_v56 }
 0x2a6   :  { %5020 = vmatpush.msra.mxu3 %v9761_v16  ;;  %4680 = vmatmul.f32.gmra.mxu1 %v11445_v44  ;;  %v9914_v14 = vand.u32 4294901760, %v191_v8 }
 0x2a7   :  { %4815 = vmatpush.msra.mxu0 %v9815_v38  ;;  %4876 = vmatpush.msra.mxu1 %v4875_v31  ;;  %v11056_v31 = vand.u32 4294901760, %v9879_v10  ;;  %11448 = vst [vmem:[#allocation45_spill] sm:$0xff] %v9946_v54  ;;  %v9969_v44 = vsub.f32 %v183_v24, %v9946_v54  ;;  %v11451_v24 = vand.u32 4294901760, %v9934_v0 }
 0x2a8   :  { %4972 = vmatpush.msra.mxu2 %v9818_v9  ;;  %5022 = vmatpush.msra.mxu3 %v9775_v36  ;;  %11447 = vst [vmem:[#allocation33_spill] sm:$0xff] %v9914_v14 }
 0x2a9   :  { %4817 = vmatpush.msra.mxu0 %v9822_v39  ;;  %4882 = vmatpush.msra.mxu1 %v4881_v29  ;;  %v4910_v29 = vsub.f32 %v9867_v41, %v11053_v42  ;;  %v9927_v42 = vsub.f32 %v195_v46, %v9903_v26  ;;  %v9941_v46 = vsub.f32 %v191_v8, %v9914_v14 }
 0x2aa   :  { %4975 = vmatpush.msra.mxu2 %v9831_v57  ;;  %5024 = vmatpush.msra.mxu3 %v9792_v30 }
 0x2ab   :  { %4819 = vmatpush.msra.mxu0 %v9839_v17  ;;  %4888 = vmatpush.msra.mxu1 %v4887_v22  ;;  %v4916_v22 = vsub.f32 %v9879_v10, %v11056_v31  ;;  %v4911_v40 = vand.u32 4294901760, %v4910_v29  ;;  %v179_v31 = vld [vmem:[#allocation5 + $0x378] sm:$0xff]  ;;  %v4928_v29 = vsub.f32 %v9901_v50, %v11061_v11 }
 0x2ac   :  { %4978 = vmatpush.msra.mxu2 %v9843_v18  ;;  %5026 = vmatpush.msra.mxu3 %v9801_v21  ;;  %v9959_v4 = vand.u32 4294901760, %v179_v31  ;;  %v171_v11 = vld [vmem:[#allocation5 + $0x338] sm:$0xff] }
 0x2ad   :  { %4821 = vmatpush.msra.mxu0 %v9854_v5  ;;  %4894 = vmatpush.msra.mxu1 %v4893_v15  ;;  %v4922_v15 = vsub.f32 %v9889_v23, %v11058_v47  ;;  %v9954_v47 = vsub.f32 %v187_v60, %v9929_v7  ;;  %v11449_v60 = vand.u32 4294901760, %v9919_v52 }
 0x2ae   :  { %4981 = vmatpush.msra.mxu2 %v9847_v13  ;;  %5028 = vmatpush.msra.mxu3 %v9815_v38  ;;  %v9984_v2 = vsub.f32 %v179_v31, %v9959_v4  ;;  %v9997_v31 = vsub.f32 %v175_v6, %v9971_v19 }
 0x2af   :  { %4823 = vmatpush.msra.mxu0 %v9863_v28  ;;  %4900 = vmatpush.msra.mxu1 %v4899_v27  ;;  %v4917_v27 = vand.u32 4294901760, %v4916_v22  ;;  %v4934_v8 = vsub.f32 %v9919_v52, %v11449_v60  ;;  %v4940_v60 = vsub.f32 %v9934_v0, %v11451_v24 }
 0x2b0   :  { %4984 = vmatpush.msra.mxu2 %v9867_v41  ;;  %5030 = vmatpush.msra.mxu3 %v9822_v39 }
 0x2b1   :  { %4825 = vmatpush.msra.mxu0 %v9876_v12  ;;  %4906 = vmatpush.msra.mxu1 %v4905_v3  ;;  %v4923_v3 = vand.u32 4294901760, %v4922_v15  ;;  %v11450_v15 = vand.u32 4294901760, %v9927_v42  ;;  %v4935_v20 = vand.u32 4294901760, %v4934_v8  ;;  %v4941_v6 = vand.u32 4294901760, %v4940_v60 }
 0x2b2   :  { %4987 = vmatpush.msra.mxu2 %v9879_v10  ;;  %5032 = vmatpush.msra.mxu3 %v9839_v17  ;;  %v10027_v8 = vand.u32 4294901760, %v159_v35 }
 0x2b3   :  { %4827 = vmatpush.msra.mxu0 %v9896_v62  ;;  %4912 = vmatpush.msra.mxu1 %v4911_v40  ;;  %v4929_v40 = vand.u32 4294901760, %v4928_v29  ;;  %v5222_v22 = vsub.f32 %v9927_v42, %v11450_v15  ;;  %v11453_v29 = vand.u32 4294901760, %v9744_v51  ;;  %v11454_v15 = vand.u32 4294901760, %v9941_v46  ;;  %v10001_v51 = vpop.f32.mrf.mxu0 }
 0x2b4   :  { %4990 = vmatpush.msra.mxu2 %v9889_v23  ;;  %5034 = vmatpush.msra.mxu3 %v9854_v5 }
 0x2b5   :  { %4829 = vmatpush.msra.mxu0 %v9907_v43  ;;  %4918 = vmatpush.msra.mxu1 %v4917_v27  ;;  %v9986_v27 = vand.u32 4294901760, %v171_v11  ;;  %v5228_v32 = vsub.f32 %v9941_v46, %v11454_v15  ;;  %v11456_v15 = vand.u32 4294901760, %v9954_v47 }
 0x2b6   :  { %4993 = vmatpush.msra.mxu2 %v9901_v50  ;;  %5036 = vmatpush.msra.mxu3 %v9863_v28 }
 0x2b7   :  { %11452 = vst [vmem:[#allocation46_spill] sm:$0xff] %v9986_v27  ;;  %5059 = vmatpush.msrb.mxu0 %v11453_v29  ;;  %4924 = vmatpush.msra.mxu1 %v4923_v3  ;;  %v11455_v3 = vand.u32 4294901760, %v9752_v59  ;;  %v5223_v29 = vand.u32 4294901760, %v5222_v22  ;;  %v5234_v37 = vsub.f32 %v9954_v47, %v11456_v15  ;;  %v10012_v24 = vsub.f32 %v171_v11, %v9986_v27 }
 0x2b8   :  { %4996 = vmatpush.msra.mxu2 %v9919_v52  ;;  %5038 = vmatpush.msra.mxu3 %v9876_v12  ;;  %v11457_v59 = vand.u32 4294901760, %v9765_v53  ;;  %v5229_v22 = vand.u32 4294901760, %v5228_v32  ;;  %v10025_v11 = vsub.f32 %v167_v61, %v9999_v63  ;;  %v11459_v53 = vand.u32 4294901760, %v9778_v48 }
 0x2b9   :  { %5063 = vmatpush.msrb.mxu0 %v11455_v3  ;;  %4930 = vmatpush.msra.mxu1 %v4929_v40  ;;  %v155_v40 = vld [vmem:[#allocation5 + $0x2b8] sm:$0xff]  ;;  %v11458_v3 = vand.u32 4294901760, %v9969_v44  ;;  %v5235_v32 = vand.u32 4294901760, %v5234_v37  ;;  %v11461_v37 = vand.u32 4294901760, %v9788_v34  ;;  %v11463_v34 = vand.u32 4294901760, %v9805_v1 }
 0x2ba   :  { %4999 = vmatpush.msra.mxu2 %v9934_v0  ;;  %5040 = vmatpush.msra.mxu3 %v9896_v62  ;;  %v10043_v48 = vand.u32 4294901760, %v155_v40 }
 0x2bb   :  { %5067 = vmatpush.msrb.mxu0 %v11457_v59  ;;  %4936 = vmatpush.msra.mxu1 %v4935_v20  ;;  %v5240_v60 = vsub.f32 %v9969_v44, %v11458_v3  ;;  %v10032_v20 = vpop.f32.mrf.mxu1  ;;  %v10034_v59 = vpop.f32.mrf.mxu2  ;;  %v11460_v3 = vand.u32 4294901760, %v9984_v2 }
 0x2bc   :  { %5171 = vmatpush.msrb.mxu2 %v9903_v26  ;;  %5042 = vmatpush.msra.mxu3 %v9907_v43  ;;  %v10041_v43 = vsub.f32 %v163_v56, %v10014_v25  ;;  %v10054_v56 = vsub.f32 %v159_v35, %v10027_v8  ;;  %v10069_v61 = vsub.f32 %v155_v40, %v10043_v48  ;;  %v10071_v1 = vpop.f32.mrf.mxu0 }
 0x2bd   :  { %5071 = vmatpush.msrb.mxu0 %v11459_v53  ;;  %4942 = vmatpush.msra.mxu1 %v4941_v6  ;;  %v5246_v15 = vsub.f32 %v9984_v2, %v11460_v3  ;;  %v151_v53 = vld [vmem:[#allocation5 + $0x298] sm:$0xff]  ;;  %v11462_v6 = vand.u32 4294901760, %v9997_v31 }
 0x2be   :  { %5173 = vmatpush.msrb.mxu2 %v9914_v14  ;;  %5224 = vmatpush.msrb.mxu3 %v5223_v29  ;;  %v5241_v29 = vand.u32 4294901760, %v5240_v60  ;;  %v10056_v14 = vpop.f32.mrf.mxu3 }
 0x2bf   :  { %5075 = vmatpush.msrb.mxu0 %v11461_v37  ;;  %5130 = vmatpush.msrb.mxu1 %v9727_v58  ;;  %v5252_v3 = vsub.f32 %v9997_v31, %v11462_v6  ;;  %v10061_v58 = vand.u32 4294901760, %v151_v53  ;;  %v5247_v60 = vand.u32 4294901760, %v5246_v15  ;;  %v11464_v37 = vand.u32 4294901760, %v10012_v24 }
 0x2c0   :  { %5175 = vmatpush.msrb.mxu2 %v9929_v7  ;;  %5230 = vmatpush.msrb.mxu3 %v5229_v22  ;;  %v147_v22 = vld [vmem:[#allocation5 + $0x278] sm:$0xff] }
 0x2c1   :  { %5079 = vmatpush.msrb.mxu0 %v11463_v34  ;;  %5132 = vmatpush.msrb.mxu1 %v9734_v33  ;;  %v5258_v6 = vsub.f32 %v10012_v24, %v11464_v37  ;;  %v11465_v33 = vand.u32 4294901760, %v9818_v9  ;;  %v143_v34 = vld [vmem:[#allocation5 + $0x258] sm:$0xff]  ;;  %v5253_v15 = vand.u32 4294901760, %v5252_v3  ;;  %v10081_v40 = vand.u32 4294901760, %v147_v22 }
 0x2c2   :  { %5177 = vmatpush.msrb.mxu2 %v9946_v54  ;;  %5236 = vmatpush.msrb.mxu3 %v5235_v32  ;;  %v11466_v32 = vand.u32 4294901760, %v10025_v11  ;;  %v11467_v54 = vand.u32 4294901760, %v9831_v57  ;;  %v139_v9 = vld [vmem:[#allocation5 + $0x238] sm:$0xff]  ;;  %v11468_v3 = vand.u32 4294901760, %v10041_v43  ;;  %v10094_v35 = vand.u32 4294901760, %v143_v34 }
 0x2c3   :  { %5083 = vmatpush.msrb.mxu0 %v11465_v33  ;;  %5134 = vmatpush.msrb.mxu1 %v9741_v49  ;;  %v10087_v49 = vsub.f32 %v151_v53, %v10061_v58  ;;  %v11469_v57 = vand.u32 4294901760, %v9843_v18  ;;  %v135_v18 = vld [vmem:[#allocation5 + $0x218] sm:$0xff] }
 0x2c4   :  { %5179 = vmatpush.msrb.mxu2 %v9959_v4  ;;  %5242 = vmatpush.msrb.mxu3 %v5241_v29  ;;  %v5264_v37 = vsub.f32 %v10025_v11, %v11466_v32  ;;  %v5259_v29 = vand.u32 4294901760, %v5258_v6  ;;  %v5270_v33 = vsub.f32 %v10041_v43, %v11468_v3  ;;  %v10108_v3 = vsub.f32 %v147_v22, %v10081_v40 }
 0x2c5   :  { %5087 = vmatpush.msrb.mxu0 %v11467_v54  ;;  %5136 = vmatpush.msrb.mxu1 %v9756_v55  ;;  %v10099_v55 = vpop.f32.mrf.mxu1  ;;  %v10101_v54 = vpop.f32.mrf.mxu2  ;;  %v10110_v32 = vand.u32 4294901760, %v139_v9  ;;  %v10121_v22 = vsub.f32 %v143_v34, %v10094_v35 }
 0x2c6   :  { %5181 = vmatpush.msrb.mxu2 %v9971_v19  ;;  %5248 = vmatpush.msrb.mxu3 %v5247_v60  ;;  %v5265_v53 = vand.u32 4294901760, %v5264_v37  ;;  %v11470_v60 = vand.u32 4294901760, %v10054_v56  ;;  %v11472_v37 = vand.u32 4294901760, %v10069_v61  ;;  %v10135_v34 = vpop.f32.mrf.mxu0 }
 0x2c7   :  { %5091 = vmatpush.msrb.mxu0 %v11469_v57  ;;  %5138 = vmatpush.msrb.mxu1 %v9761_v16  ;;  %v11471_v16 = vand.u32 4294901760, %v9847_v13  ;;  %v5287_v57 = vand.u32 4294901760, %v10087_v49  ;;  %v11473_v13 = vand.u32 4294901760, %v9867_v41 }
 0x2c8   :  { %5183 = vmatpush.msrb.mxu2 %v9986_v27  ;;  %5254 = vmatpush.msrb.mxu3 %v5253_v15  ;;  %v5276_v6 = vsub.f32 %v10054_v56, %v11470_v60  ;;  %v5271_v15 = vand.u32 4294901760, %v5270_v33  ;;  %v5282_v60 = vsub.f32 %v10069_v61, %v11472_v37  ;;  %v10123_v27 = vpop.f32.mrf.mxu3  ;;  %v5293_v33 = vand.u32 4294901760, %v10108_v3 }
 0x2c9   :  { %5095 = vmatpush.msrb.mxu0 %v11471_v16  ;;  %5140 = vmatpush.msrb.mxu1 %v9775_v36  ;;  %v10128_v36 = vand.u32 4294901760, %v135_v18  ;;  %v10133_v16 = vsub.f32 %v139_v9, %v10110_v32  ;;  %v11474_v37 = vand.u32 4294901760, %v9879_v10  ;;  %v11475_v9 = vand.u32 4294901760, %v9889_v23 }
 0x2ca   :  { %5185 = vmatpush.msrb.mxu2 %v9999_v63  ;;  %5260 = vmatpush.msrb.mxu3 %v5259_v29  ;;  %v5277_v29 = vand.u32 4294901760, %v5276_v6  ;;  %v5283_v41 = vand.u32 4294901760, %v5282_v60  ;;  %v6321_v60 = vld [vmem:[#allocation7] sm:$0xf] }
 0x2cb   :  { %5099 = vmatpush.msrb.mxu0 %v11473_v13  ;;  %5142 = vmatpush.msrb.mxu1 %v9792_v30  ;;  %v5288_v30 = vsub.f32 %v10087_v49, %v5287_v57  ;;  %v10149_v10 = vsub.f32 %v135_v18, %v10128_v36  ;;  %v5305_v6 = vand.u32 4294901760, %v10133_v16 }
 0x2cc   :  { %5187 = vmatpush.msrb.mxu2 %v10014_v25  ;;  %5266 = vmatpush.msrb.mxu3 %v5265_v53  ;;  %v5299_v53 = vand.u32 4294901760, %v10121_v22 }
 0x2cd   :  { %5103 = vmatpush.msrb.mxu0 %v11474_v37  ;;  %5144 = vmatpush.msrb.mxu1 %v9801_v21  ;;  %v5294_v21 = vsub.f32 %v10108_v3, %v5293_v33  ;;  %v5289_v23 = vand.u32 4294901760, %v5288_v30  ;;  %v10159_v13 = vpop.f32.mrf.mxu1  ;;  %v10161_v18 = vpop.f32.mrf.mxu2  ;;  %v5306_v30 = vsub.f32 %v10133_v16, %v5305_v6 }
 0x2ce   :  { %5189 = vmatpush.msrb.mxu2 %v10027_v8  ;;  %5272 = vmatpush.msrb.mxu3 %v5271_v15  ;;  %v11476_v15 = vand.u32 4294901760, %v9901_v50  ;;  %v11477_v50 = vand.u32 4294901760, %v9919_v52  ;;  %v11479_v52 = vld [vmem:[#allocation15_spill] sm:$0xff] }
 0x2cf   :  { %5107 = vmatpush.msrb.mxu0 %v11475_v9  ;;  %5146 = vmatpush.msrb.mxu1 %v9815_v38  ;;  %v328_v38 = vperm.slane %v6321_v60, 2  ;;  %v5295_v37 = vand.u32 4294901760, %v5294_v21  ;;  %v11478_v9 = vld [vmem:[#allocation18_spill] sm:$0xff]  ;;  %v10183_v60 = vpop.f32.mrf.mxu0 }
 0x2d0   :  { %5191 = vmatpush.msrb.mxu2 %v10043_v48  ;;  %5278 = vmatpush.msrb.mxu3 %v5277_v29  ;;  %v5300_v29 = vsub.f32 %v10121_v22, %v5299_v53 }
 0x2d1   :  { %5111 = vmatpush.msrb.mxu0 %v11476_v15  ;;  %5148 = vmatpush.msrb.mxu1 %v9822_v39  ;;  %v5311_v39 = vand.u32 4294901760, %v10149_v10  ;;  %v11480_v15 = vand.u32 4294901760, %v9934_v0 }
 0x2d2   :  { %5193 = vmatpush.msrb.mxu2 %v10061_v58  ;;  %5284 = vmatpush.msrb.mxu3 %v5283_v41  ;;  %v10176_v41 = vpop.f32.mrf.mxu3 }
 0x2d3   :  { %5002 = vmatmul.f32.vlgmr.msra.gmra.mxu2 %v11230_v45  ;;  %5115 = vmatpush.msrb.mxu0 %v11477_v50  ;;  %v3349_v45 = vadd.f32 %v10001_v51, %v328_v38  ;;  %v5312_v21 = vsub.f32 %v10149_v10, %v5311_v39  ;;  %v5307_v51 = vand.u32 4294901760, %v5306_v30 }
 0x2d4   :  { %5150 = vmatpush.msrb.mxu1 %v9839_v17  ;;  %5195 = vmatpush.msrb.mxu2 %v10081_v40  ;;  %v5301_v17 = vand.u32 4294901760, %v5300_v29 }
 0x2d5   :  { %5290 = vmatpush.msrb.mxu3 %v5289_v23  ;;  %4835 = vmatmul.f32.vlgmr.msra.gmra.mxu0 %v11478_v9  ;;  %v11481_v23 = vld [vmem:[#allocation13_spill] sm:$0xff]  ;;  %v3458_v0 = vadd.f32 %v10032_v20, %v3349_v45  ;;  %v10194_v29 = vpop.f32.mrf.mxu1  ;;  %v10196_v50 = vpop.f32.mrf.mxu2  ;;  %v11483_v9 = vand.u32 4294901760, %v9927_v42 }
 0x2d6   :  { %5046 = vmatmul.f32.vlgmr.msra.gmra.mxu3 %v11479_v52  ;;  %5119 = vmatpush.msrb.mxu0 %v11480_v15  ;;  %v11482_v20 = vld [vmem:[#allocation17_spill] sm:$0xff]  ;;  %v11486_v52 = vand.u32 4294901760, %v9941_v46 }
 0x2d7   :  { %5152 = vmatpush.msrb.mxu1 %v9854_v5  ;;  %5197 = vmatpush.msrb.mxu2 %v10094_v35  ;;  %v5313_v5 = vand.u32 4294901760, %v5312_v21  ;;  %v3516_v30 = vadd.f32 %v10034_v59, %v3458_v0  ;;  %v3887_v45 = vpop.f32.mrf.mxu0  ;;  %v11487_v59 = vld [vmem:[#allocation14_spill] sm:$0xff]  ;;  %v11493_v0 = vand.u32 4294901760, %v9984_v2 }
 0x2d8   :  { %5296 = vmatpush.msrb.mxu3 %v5295_v37  ;;  %4944 = vmatmul.f32.vlgmr.msra.gmra.mxu1 %v11481_v23  ;;  %v3357_v37 = vadd.f32 %v10071_v1, %v328_v38  ;;  %v11485_v38 = vld [vmem:[#allocation19_spill] sm:$0xff] }
 0x2d9   :  { %5326 = vmatpush.msra.mxu0 %v9927_v42  ;;  %5154 = vmatpush.msrb.mxu1 %v9863_v28  ;;  %v3560_v42 = vadd.f32 %v10056_v14, %v3516_v30  ;;  %v11491_v14 = vand.u32 4294901760, %v9969_v44  ;;  %v11497_v30 = vand.u32 4294901760, %v10012_v24 }
 0x2da   :  { %5199 = vmatpush.msrb.mxu2 %v10110_v32  ;;  %5302 = vmatpush.msrb.mxu3 %v5301_v17  ;;  %v10203_v28 = vpop.f32.mrf.mxu3  ;;  %v3462_v1 = vadd.f32 %v10099_v55, %v3357_v37  ;;  %v11489_v55 = vand.u32 4294901760, %v9954_v47  ;;  %v11495_v37 = vld [vmem:[#allocation20_spill] sm:$0xff] }
 0x2db   :  { %5329 = vmatpush.msra.mxu0 %v9941_v46  ;;  %5156 = vmatpush.msrb.mxu1 %v9876_v12  ;;  %v11484_v12 = vld [vmem:[#allocation22_spill] sm:$0xff]  ;;  %v11490_v46 = vld [vmem:[#allocation33_spill] sm:$0xff] }
 0x2dc   :  { %5201 = vmatpush.msrb.mxu2 %v10128_v36  ;;  %5308 = vmatpush.msrb.mxu3 %v5307_v51  ;;  %v3521_v15 = vadd.f32 %v10101_v54, %v3462_v1  ;;  %v3635_v51 = vadd.f32 %v10135_v34, %v3560_v42  ;;  %v11492_v54 = vld [vmem:[#allocation12_spill] sm:$0xff]  ;;  %v11494_v34 = vld [vmem:[#allocation45_spill] sm:$0xff] }
 0x2dd   :  { %5007 = vmatmul.f32.gmra.mxu2 %v11482_v20  ;;  %5332 = vmatpush.msra.mxu0 %v9954_v47  ;;  %v3931_v17 = vpop.f32.mrf.mxu1  ;;  %v10225_v21 = vpop.f32.mrf.mxu2 }
 0x2de   :  { %5431 = vmatpush.msra.mxu2 %v11483_v9  ;;  %5158 = vmatpush.msrb.mxu1 %v9896_v62  ;;  %v11488_v62 = vld [vmem:[#allocation16_spill] sm:$0xff]  ;;  %v11500_v9 = vand.u32 4294901760, %v10041_v43 }
 0x2df   :  { %5314 = vmatpush.msrb.mxu3 %v5313_v5  ;;  %4843 = vmatmul.f32.gmra.mxu0 %v11484_v12  ;;  %v3676_v5 = vadd.f32 %v10159_v13, %v3635_v51  ;;  %v11501_v12 = vand.u32 4294901760, %v10054_v56 }
 0x2e0   :  { %5052 = vmatmul.f32.gmra.mxu3 %v11485_v38  ;;  %5335 = vmatpush.msra.mxu0 %v9969_v44  ;;  %v10243_v44 = vpop.f32.mrf.mxu0 }
 0x2e1   :  { %5435 = vmatpush.msra.mxu2 %v11486_v52  ;;  %5502 = vmatpush.msra.mxu3 %v9903_v26 }
 0x2e2   :  { %5160 = vmatpush.msrb.mxu1 %v11487_v59  ;;  %5338 = vmatpush.msra.mxu0 %v9984_v2  ;;  %v10235_v47 = vpop.f32.mrf.mxu3  ;;  %v243_v59 = vld [vmem:[#allocation5 + $0x578] sm:$0xff] }
 0x2e3   :  { %4948 = vmatmul.f32.gmra.mxu1 %v11488_v62  ;;  %5439 = vmatpush.msra.mxu2 %v11489_v55 }
 0x2e4   :  { %5384 = vmatpush.msra.mxu1 %v9903_v26  ;;  %5504 = vmatpush.msra.mxu3 %v11490_v46  ;;  %v3566_v26 = vadd.f32 %v10123_v27, %v3521_v15  ;;  %v11496_v27 = vand.u32 4294901760, %v9997_v31  ;;  %v11504_v15 = vld [vmem:[#allocation24_spill] sm:$0xff] }
 0x2e5   :  { %5341 = vmatpush.msra.mxu0 %v9997_v31  ;;  %5443 = vmatpush.msra.mxu2 %v11491_v14  ;;  %v10259_v13 = vpop.f32.mrf.mxu1  ;;  %v10261_v20 = vpop.f32.mrf.mxu2  ;;  %v239_v14 = vld [vmem:[#allocation5 + $0x558] sm:$0xff] }
 0x2e6   :  { %5386 = vmatpush.msra.mxu1 %v11490_v46  ;;  %5506 = vmatpush.msra.mxu3 %v9929_v7  ;;  %v3639_v2 = vadd.f32 %v10183_v60, %v3566_v26  ;;  %v11498_v60 = vand.u32 4294901760, %v10025_v11 }
 0x2e7   :  { %5207 = vmatmul.f32.vlgmr.msrb.gmra.mxu2 %v11492_v54  ;;  %5344 = vmatpush.msra.mxu0 %v10012_v24  ;;  %v235_v54 = vld [vmem:[#allocation5 + $0x538] sm:$0xff] }
 0x2e8   :  { %5388 = vmatpush.msra.mxu1 %v9929_v7  ;;  %5447 = vmatpush.msra.mxu2 %v11493_v0  ;;  %v3721_v7 = vadd.f32 %v10161_v18, %v3676_v5  ;;  %v3680_v31 = vadd.f32 %v10194_v29, %v3639_v2  ;;  %v227_v2 = vld [vmem:[#allocation5 + $0x4f8] sm:$0xff] }
 0x2e9   :  { %5508 = vmatpush.msra.mxu3 %v11494_v34  ;;  %5121 = vmatmul.f32.vlgmr.msrb.gmra.mxu0 %v11481_v23 }
 0x2ea   :  { %5316 = vmatmul.f32.vlgmr.msrb.gmra.mxu3 %v11495_v37  ;;  %5347 = vmatpush.msra.mxu0 %v10025_v11  ;;  %v10272_v18 = vpop.f32.mrf.mxu3  ;;  %v3830_v24 = vadd.f32 %v10176_v41, %v3721_v7  ;;  %v3729_v29 = vadd.f32 %v10196_v50, %v3680_v31 }
 0x2eb   :  { %5390 = vmatpush.msra.mxu1 %v11494_v34  ;;  %5451 = vmatpush.msra.mxu2 %v11496_v27  ;;  %v10372_v27 = vand.u32 4294901760, %v235_v54 }
 0x2ec   :  { %5510 = vmatpush.msra.mxu3 %v9959_v4  ;;  %5162 = vmatmul.f32.vlgmr.msrb.gmra.mxu1 %v11481_v23  ;;  %v4092_v23 = vpop.f32.mrf.mxu0  ;;  %v3888_v11 = vadd.f32 %v3887_v45, %v3830_v24  ;;  %v3834_v45 = vadd.f32 %v10203_v28, %v3729_v29  ;;  %v219_v29 = vld [vmem:[#allocation5 + $0x4b8] sm:$0xff] }
 0x2ed   :  { %5350 = vmatpush.msra.mxu0 %v10041_v43  ;;  %5392 = vmatpush.msra.mxu1 %v9959_v4  ;;  %v11499_v4 = vld [vmem:[#allocation46_spill] sm:$0xff]  ;;  %v4201_v1 = vpop.f32.mrf.mxu1  ;;  %v10288_v38 = vpop.f32.mrf.mxu2  ;;  %v10400_v24 = vsub.f32 %v235_v54, %v10372_v27 }
 0x2ee   :  { %5455 = vmatpush.msra.mxu2 %v11497_v30  ;;  %5512 = vmatpush.msra.mxu3 %v9971_v19  ;;  %v255_v43 = vld [vmem:[#allocation5 + $0x5d8] sm:$0xff]  ;;  %v3932_v41 = vadd.f32 %v3931_v17, %v3888_v11  ;;  %v3893_v55 = vadd.f32 %v10243_v44, %v3834_v45 }
 0x2ef   :  { %5353 = vmatpush.msra.mxu0 %v10054_v56  ;;  %5394 = vmatpush.msra.mxu1 %v9971_v19  ;;  %v259_v19 = vld [vmem:[#allocation5 + $0x5f8] sm:$0xff] }
 0x2f0   :  { %5459 = vmatpush.msra.mxu2 %v11498_v60  ;;  %5514 = vmatpush.msra.mxu3 %v11499_v4  ;;  %v10293_v50 = vand.u32 4294901760, %v259_v19  ;;  %v251_v56 = vld [vmem:[#allocation5 + $0x5b8] sm:$0xff]  ;;  %v4007_v42 = vadd.f32 %v10225_v21, %v3932_v41 }
 0x2f1   :  { %5356 = vmatpush.msra.mxu0 %v10069_v61  ;;  %5396 = vmatpush.msra.mxu1 %v11499_v4  ;;  %v223_v4 = vld [vmem:[#allocation5 + $0x4d8] sm:$0xff] }
 0x2f2   :  { %5463 = vmatpush.msra.mxu2 %v11500_v9  ;;  %5516 = vmatpush.msra.mxu3 %v9999_v63  ;;  %v10303_v52 = vpop.f32.mrf.mxu3  ;;  %v10313_v28 = vsub.f32 %v259_v19, %v10293_v50  ;;  %v10410_v41 = vand.u32 4294901760, %v223_v4 }
 0x2f3   :  { %5359 = vmatpush.msra.mxu0 %v10087_v49  ;;  %5398 = vmatpush.msra.mxu1 %v9999_v63  ;;  %v11502_v63 = vand.u32 4294901760, %v10069_v61  ;;  %v11503_v61 = vld [vmem:[#allocation27_spill] sm:$0xff] }
 0x2f4   :  { %5467 = vmatpush.msra.mxu2 %v11501_v12  ;;  %5518 = vmatpush.msra.mxu3 %v10014_v25  ;;  %v247_v49 = vld [vmem:[#allocation5 + $0x598] sm:$0xff]  ;;  %v5593_v21 = vand.u32 4294901760, %v10313_v28 }
 0x2f5   :  { %5125 = vmatmul.f32.gmra.mxu0 %v11488_v62  ;;  %5400 = vmatpush.msra.mxu1 %v10014_v25  ;;  %v10301_v25 = vand.u32 4294901760, %v255_v43  ;;  %v10329_v17 = vand.u32 4294901760, %v247_v49  ;;  %v10343_v51 = vpop.f32.mrf.mxu1  ;;  %v11506_v12 = vld [vmem:[#allocation23_spill] sm:$0xff] }
 0x2f6   :  { %5362 = vmatpush.msra.mxu0 %v10108_v3  ;;  %5471 = vmatpush.msra.mxu2 %v11502_v63  ;;  %v4048_v3 = vadd.f32 %v10235_v47, %v4007_v42  ;;  %v10345_v47 = vpop.f32.mrf.mxu2  ;;  %v10426_v42 = vand.u32 4294901760, %v219_v29 }
 0x2f7   :  { %5520 = vmatpush.msra.mxu3 %v10027_v8  ;;  %5402 = vmatpush.msra.mxu1 %v10027_v8  ;;  %v10310_v8 = vand.u32 4294901760, %v251_v56  ;;  %v10356_v26 = vsub.f32 %v247_v49, %v10329_v17  ;;  %v11082_v49 = vand.u32 4294901760, %v10400_v24 }
 0x2f8   :  { %5365 = vmatpush.msra.mxu0 %v10121_v22  ;;  %5475 = vmatpush.msra.mxu2 %v5287_v57  ;;  %v10315_v57 = vpop.f32.mrf.mxu0  ;;  %v3938_v22 = vadd.f32 %v10259_v13, %v3893_v55 }
 0x2f9   :  { %5522 = vmatpush.msra.mxu3 %v10043_v48  ;;  %5215 = vmatmul.f32.gmra.mxu2 %v11503_v61  ;;  %v10338_v46 = vsub.f32 %v251_v56, %v10310_v8  ;;  %v5611_v13 = vand.u32 4294901760, %v10356_v26 }
 0x2fa   :  { %5368 = vmatpush.msra.mxu0 %v10133_v16  ;;  %5404 = vmatpush.msra.mxu1 %v10043_v48  ;;  %v10324_v48 = vsub.f32 %v255_v43, %v10301_v25  ;;  %v5594_v16 = vsub.f32 %v10313_v28, %v5593_v21  ;;  %v10368_v34 = vpop.f32.mrf.mxu3 }
 0x2fb   :  { %5479 = vmatpush.msra.mxu2 %v5293_v33  ;;  %5524 = vmatpush.msra.mxu3 %v10061_v58  ;;  %v10334_v33 = vand.u32 4294901760, %v243_v59  ;;  %v5612_v43 = vsub.f32 %v10356_v26, %v5611_v13 }
 0x2fc   :  { %5320 = vmatmul.f32.gmra.mxu3 %v11504_v15  ;;  %5371 = vmatpush.msra.mxu0 %v10149_v10  ;;  %v4011_v10 = vadd.f32 %v10261_v20, %v3938_v22  ;;  %v5595_v31 = vand.u32 4294901760, %v5594_v16  ;;  %v207_v16 = vld [vmem:[#allocation5 + $0x458] sm:$0xff] }
 0x2fd   :  { %5406 = vmatpush.msra.mxu1 %v10061_v58  ;;  %5483 = vmatpush.msra.mxu2 %v5299_v53  ;;  %v11505_v58 = vld [vmem:[#allocation21_spill] sm:$0xff]  ;;  %v4093_v53 = vadd.f32 %v4092_v23, %v4048_v3  ;;  %v10366_v44 = vsub.f32 %v243_v59, %v10334_v33  ;;  %v10397_v23 = vand.u32 4294901760, %v227_v2  ;;  %v4419_v9 = vpop.f32.mrf.mxu1 }
 0x2fe   :  { %5526 = vmatpush.msra.mxu3 %v10081_v40  ;;  %5166 = vmatmul.f32.gmra.mxu1 %v11488_v62  ;;  %v5599_v62 = vand.u32 4294901760, %v10324_v48  ;;  %v4464_v11 = vpop.f32.mrf.mxu2 }
 0x2ff   :  { %5374 = vmatmul.f32.vlgmr.msra.gmra.mxu0 %v11505_v58  ;;  %5408 = vmatpush.msra.mxu1 %v10081_v40  ;;  %v10353_v40 = vand.u32 4294901760, %v239_v14  ;;  %v4202_v0 = vadd.f32 %v4201_v1, %v4093_v53  ;;  %v5617_v60 = vand.u32 4294901760, %v10366_v44  ;;  %v215_v1 = vld [vmem:[#allocation5 + $0x498] sm:$0xff]  ;;  %v5613_v58 = vand.u32 4294901760, %v5612_v43 }
 0x300   :  { %5543 = vmatpush.msrb.mxu0 %v10293_v50  ;;  %5487 = vmatpush.msra.mxu2 %v5305_v6  ;;  %v5605_v6 = vand.u32 4294901760, %v10338_v46  ;;  %v4378_v5 = vpop.f32.mrf.mxu0  ;;  %v10434_v3 = vand.u32 4294901760, %v215_v1 }
 0x301   :  { %5528 = vmatpush.msra.mxu3 %v10094_v35  ;;  %5410 = vmatpush.msra.mxu1 %v10094_v35  ;;  %v231_v35 = vld [vmem:[#allocation5 + $0x518] sm:$0xff]  ;;  %v10386_v30 = vsub.f32 %v239_v14, %v10353_v40  ;;  %v4260_v20 = vadd.f32 %v10288_v38, %v4202_v0  ;;  %v5618_v45 = vsub.f32 %v10366_v44, %v5617_v60 }
 0x302   :  { %5545 = vmatpush.msrb.mxu0 %v10301_v25  ;;  %5491 = vmatpush.msra.mxu2 %v5311_v39  ;;  %v5600_v39 = vsub.f32 %v10324_v48, %v5599_v62  ;;  %v10382_v7 = vand.u32 4294901760, %v231_v35  ;;  %v10424_v61 = vpop.f32.mrf.mxu3 }
 0x303   :  { %5530 = vmatpush.msra.mxu3 %v10110_v32  ;;  %5493 = vmatmul.f32.vlgmr.msra.gmra.mxu2 %v11495_v37  ;;  %v4304_v63 = vadd.f32 %v10303_v52, %v4260_v20  ;;  %v10430_v52 = vsub.f32 %v227_v2, %v10397_v23  ;;  %v5619_v54 = vand.u32 4294901760, %v5618_v45  ;;  %v10455_v2 = vsub.f32 %v219_v29, %v10426_v42  ;;  %v203_v29 = vld [vmem:[#allocation5 + $0x438] sm:$0xff] }
 0x304   :  { %5547 = vmatpush.msrb.mxu0 %v10310_v8  ;;  %5698 = vmatpush.msrb.mxu2 %v10313_v28  ;;  %v5601_v19 = vand.u32 4294901760, %v5600_v39  ;;  %v295_v28 = vld [vmem:[#allocation5 + $0x718] sm:$0xff] }
 0x305   :  { %5412 = vmatpush.msra.mxu1 %v10110_v32  ;;  %5532 = vmatpush.msra.mxu3 %v10128_v36  ;;  %v5606_v32 = vsub.f32 %v10338_v46, %v5605_v6  ;;  %v4379_v55 = vadd.f32 %v4378_v5, %v4304_v63  ;;  %v11507_v5 = vld [vmem:[#allocation25_spill] sm:$0xff]  ;;  %v11077_v39 = vand.u32 4294901760, %v10430_v52  ;;  %v11074_v63 = vand.u32 4294901760, %v10455_v2 }
 0x306   :  { %5534 = vmatmul.f32.vlgmr.msra.gmra.mxu3 %v11495_v37  ;;  %5549 = vmatpush.msrb.mxu0 %v10329_v17  ;;  %v4052_v37 = vadd.f32 %v10272_v18, %v4011_v10  ;;  %v11084_v18 = vand.u32 4294901760, %v10386_v30  ;;  %v5630_v10 = vsub.f32 %v10400_v24, %v11082_v49 }
 0x307   :  { %5701 = vmatpush.msrb.mxu2 %v10324_v48  ;;  %5756 = vmatpush.msrb.mxu3 %v10293_v50  ;;  %v5607_v56 = vand.u32 4294901760, %v5606_v32 }
 0x308   :  { %5414 = vmatpush.msra.mxu1 %v10128_v36  ;;  %5551 = vmatpush.msrb.mxu0 %v10334_v33  ;;  %v10414_v36 = vsub.f32 %v231_v35, %v10382_v7  ;;  %v4101_v38 = vadd.f32 %v10315_v57, %v4052_v37  ;;  %v211_v57 = vld [vmem:[#allocation5 + $0x478] sm:$0xff]  ;;  %v4382_v14 = vpop.f32.mrf.mxu0  ;;  %v5624_v22 = vsub.f32 %v10386_v30, %v11084_v18  ;;  %v10467_v37 = vand.u32 4294901760, %v207_v16 }
 0x309   :  { %5418 = vmatmul.f32.vlgmr.msra.gmra.mxu1 %v11506_v12  ;;  %5704 = vmatpush.msrb.mxu2 %v10338_v46  ;;  %v10446_v0 = vand.u32 4294901760, %v211_v57  ;;  %v4420_v35 = vadd.f32 %v4419_v9, %v4379_v55  ;;  %v287_v46 = vld [vmem:[#allocation5 + $0x6d8] sm:$0xff] }
 0x30a   :  { %5596 = vmatpush.msrb.mxu1 %v5595_v31  ;;  %5758 = vmatpush.msrb.mxu3 %v10301_v25  ;;  %v4206_v59 = vadd.f32 %v10343_v51, %v4101_v38  ;;  %v11079_v53 = vand.u32 4294901760, %v10414_v36  ;;  %v10443_v51 = vsub.f32 %v223_v4, %v10410_v41  ;;  %v10461_v31 = vsub.f32 %v215_v1, %v10434_v3 }
 0x30b   :  { %5553 = vmatpush.msrb.mxu0 %v10353_v40  ;;  %5707 = vmatpush.msrb.mxu2 %v10356_v26  ;;  %v5625_v32 = vand.u32 4294901760, %v5624_v22  ;;  %v10473_v12 = vsub.f32 %v211_v57, %v10446_v0  ;;  %v4465_v43 = vadd.f32 %v4464_v11, %v4420_v35  ;;  %v5631_v1 = vand.u32 4294901760, %v5630_v10  ;;  %v323_v57 = vld [vmem:[#allocation5 + $0x7f8] sm:$0xff]  ;;  %v10485_v11 = vpop.f32.mrf.mxu3 }
 0x30c   :  { %5602 = vmatpush.msrb.mxu1 %v5601_v19  ;;  %5760 = vmatpush.msrb.mxu3 %v10310_v8  ;;  %v4265_v20 = vadd.f32 %v10345_v47, %v4206_v59  ;;  %v5636_v4 = vsub.f32 %v10414_v36, %v11079_v53  ;;  %v11075_v9 = vand.u32 4294901760, %v10443_v51  ;;  %v4423_v47 = vpop.f32.mrf.mxu1  ;;  %v4472_v19 = vpop.f32.mrf.mxu2  ;;  %v5642_v38 = vsub.f32 %v10430_v52, %v11077_v39  ;;  %v311_v39 = vld [vmem:[#allocation5 + $0x798] sm:$0xff] }
 0x30d   :  { %5497 = vmatmul.f32.gmra.mxu2 %v11504_v15  ;;  %5555 = vmatpush.msrb.mxu0 %v10372_v27  ;;  %v11073_v45 = vand.u32 4294901760, %v10461_v31  ;;  %v10493_v22 = vsub.f32 %v207_v16, %v10467_v37  ;;  %v4574_v10 = vadd.f32 %v10424_v61, %v4465_v43  ;;  %v10503_v16 = vand.u32 4294901760, %v323_v57 }
 0x30e   :  { %5608 = vmatpush.msrb.mxu1 %v5607_v56  ;;  %5710 = vmatpush.msrb.mxu2 %v10366_v44  ;;  %v4310_v56 = vadd.f32 %v10368_v34, %v4265_v20  ;;  %v5637_v59 = vand.u32 4294901760, %v5636_v4  ;;  %v5648_v55 = vsub.f32 %v10443_v51, %v11075_v9  ;;  %v199_v34 = vld [vmem:[#allocation5 + $0x418] sm:$0xff]  ;;  %v5643_v20 = vand.u32 4294901760, %v5642_v38 }
 0x30f   :  { %5762 = vmatpush.msrb.mxu3 %v10329_v17  ;;  %5379 = vmatmul.f32.gmra.mxu0 %v11507_v5  ;;  %v11076_v5 = vand.u32 4294901760, %v10473_v12  ;;  %v5660_v61 = vsub.f32 %v10461_v31, %v11073_v45  ;;  %v11514_v44 = vand.u32 4294901760, %v10386_v30 }
 0x310   :  { %5538 = vmatmul.f32.gmra.mxu3 %v11504_v15  ;;  %5557 = vmatpush.msrb.mxu0 %v10382_v7  ;;  %v11508_v15 = vld [vmem:[#allocation26_spill] sm:$0xff]  ;;  %v4383_v35 = vadd.f32 %v4382_v14, %v4310_v56  ;;  %v10507_v14 = vand.u32 4294901760, %v199_v34  ;;  %v5649_v43 = vand.u32 4294901760, %v5648_v55 }
 0x311   :  { %5614 = vmatpush.msrb.mxu1 %v5613_v58  ;;  %5713 = vmatpush.msrb.mxu2 %v10386_v30  ;;  %v10490_v58 = vand.u32 4294901760, %v203_v29  ;;  %v5666_v56 = vsub.f32 %v10473_v12, %v11076_v5  ;;  %v5661_v9 = vand.u32 4294901760, %v5660_v61  ;;  %v11515_v30 = vld [vmem:[#allocation32_spill] sm:$0xff] }
 0x312   :  { %5764 = vmatpush.msrb.mxu3 %v10334_v33  ;;  %5424 = vmatmul.f32.gmra.mxu1 %v11508_v15  ;;  %v4424_v4 = vadd.f32 %v4423_v47, %v4383_v35  ;;  %v319_v15 = vld [vmem:[#allocation5 + $0x7d8] sm:$0xff]  ;;  %v11078_v47 = vand.u32 4294901760, %v10493_v22  ;;  %v10531_v5 = vsub.f32 %v199_v34, %v10507_v14 }
 0x313   :  { %5559 = vmatpush.msrb.mxu0 %v10397_v23  ;;  %5620 = vmatpush.msrb.mxu1 %v5619_v54  ;;  %v4631_v54 = vpop.f32.mrf.mxu0  ;;  %v10514_v38 = vsub.f32 %v203_v29, %v10490_v58  ;;  %v315_v35 = vld [vmem:[#allocation5 + $0x7b8] sm:$0xff]  ;;  %v10524_v29 = vsub.f32 %v323_v57, %v10503_v16  ;;  %v10526_v55 = vand.u32 4294901760, %v319_v15  ;;  %v5667_v34 = vand.u32 4294901760, %v5666_v56 }
 0x314   :  { %5716 = vmatpush.msrb.mxu2 %v10400_v24  ;;  %5766 = vmatpush.msrb.mxu3 %v10353_v40  ;;  %v5672_v57 = vsub.f32 %v10493_v22, %v11078_v47  ;;  %v10547_v47 = vand.u32 4294901760, %v311_v39  ;;  %v11083_v56 = vand.u32 4294901760, %v10531_v5 }
 0x315   :  { %5561 = vmatpush.msrb.mxu0 %v10410_v41  ;;  %5626 = vmatpush.msrb.mxu1 %v5625_v32  ;;  %v5654_v32 = vsub.f32 %v10455_v2, %v11074_v63  ;;  %v11081_v61 = vand.u32 4294901760, %v10524_v29 }
 0x316   :  { %5719 = vmatpush.msrb.mxu2 %v10414_v36  ;;  %5768 = vmatpush.msrb.mxu3 %v10372_v27 }
 0x317   :  { %5563 = vmatpush.msrb.mxu0 %v10426_v42  ;;  %5632 = vmatpush.msrb.mxu1 %v5631_v1  ;;  %v4632_v1 = vadd.f32 %v4631_v54, %v4574_v10  ;;  %v4473_v10 = vadd.f32 %v4472_v19, %v4424_v4  ;;  %v307_v4 = vld [vmem:[#allocation5 + $0x778] sm:$0xff] }
 0x318   :  { %5722 = vmatpush.msrb.mxu2 %v10430_v52  ;;  %5770 = vmatpush.msrb.mxu3 %v10382_v7 }
 0x319   :  { %5565 = vmatpush.msrb.mxu0 %v10434_v3  ;;  %5638 = vmatpush.msrb.mxu1 %v5637_v59  ;;  %v5655_v59 = vand.u32 4294901760, %v5654_v32 }
 0x31a   :  { %5725 = vmatpush.msrb.mxu2 %v10443_v51  ;;  %5772 = vmatpush.msrb.mxu3 %v10397_v23  ;;  %v4675_v45 = vpop.f32.mrf.mxu1  ;;  %v4750_v63 = vpop.f32.mrf.mxu2 }
 0x31b   :  { %5567 = vmatpush.msrb.mxu0 %v10446_v0  ;;  %5644 = vmatpush.msrb.mxu1 %v5643_v20  ;;  %v4676_v54 = vadd.f32 %v4675_v45, %v4632_v1  ;;  %v11080_v20 = vand.u32 4294901760, %v10514_v38  ;;  %v10538_v45 = vand.u32 4294901760, %v315_v35  ;;  %v4636_v1 = vpop.f32.mrf.mxu0 }
 0x31c   :  { %5728 = vmatpush.msrb.mxu2 %v10455_v2  ;;  %5774 = vmatpush.msrb.mxu3 %v10410_v41 }
 0x31d   :  { %5569 = vmatpush.msrb.mxu0 %v10467_v37  ;;  %5650 = vmatpush.msrb.mxu1 %v5649_v43  ;;  %v4751_v19 = vadd.f32 %v4750_v63, %v4676_v54  ;;  %v4791_v32 = vpop.f32.mrf.mxu3  ;;  %v10545_v43 = vsub.f32 %v319_v15, %v10526_v55  ;;  %v4578_v63 = vadd.f32 %v10485_v11, %v4473_v10  ;;  %v303_v11 = vld [vmem:[#allocation5 + $0x758] sm:$0xff] }
 0x31e   :  { %5731 = vmatpush.msrb.mxu2 %v10461_v31  ;;  %5776 = vmatpush.msrb.mxu3 %v10426_v42  ;;  %v5678_v15 = vsub.f32 %v10514_v38, %v11080_v20  ;;  %v10558_v54 = vsub.f32 %v315_v35, %v10538_v45  ;;  %v10570_v35 = vsub.f32 %v311_v39, %v10547_v47  ;;  %v299_v20 = vld [vmem:[#allocation5 + $0x738] sm:$0xff] }
 0x31f   :  { %5571 = vmatpush.msrb.mxu0 %v10490_v58  ;;  %5656 = vmatpush.msrb.mxu1 %v5655_v59  ;;  %v4792_v53 = vadd.f32 %v4791_v32, %v4751_v19  ;;  %v5673_v59 = vand.u32 4294901760, %v5672_v57  ;;  %v10560_v19 = vand.u32 4294901760, %v307_v4  ;;  %v4637_v10 = vadd.f32 %v4636_v1, %v4578_v63  ;;  %v11509_v32 = vld [vmem:[#allocation34_spill] sm:$0xff] }
 0x320   :  { %5734 = vmatpush.msrb.mxu2 %v10473_v12  ;;  %5778 = vmatpush.msrb.mxu3 %v10434_v3  ;;  %v11091_v57 = vand.u32 4294901760, %v10545_v43  ;;  %v10578_v1 = vand.u32 4294901760, %v303_v11  ;;  %v5679_v39 = vand.u32 4294901760, %v5678_v15 }
 0x321   :  { %5573 = vmatpush.msrb.mxu0 %v10507_v14  ;;  %5662 = vmatpush.msrb.mxu1 %v5661_v9  ;;  %6288 = vst [vmem:[#allocation8 + $0x10] sm:$0xff] %v4792_v53  ;;  %v5966_v9 = vsub.f32 %v10524_v29, %v11081_v61  ;;  %v11087_v61 = vand.u32 4294901760, %v10558_v54  ;;  %v10583_v49 = vsub.f32 %v307_v4, %v10560_v19  ;;  %v11085_v4 = vand.u32 4294901760, %v10570_v35 }
 0x322   :  { %5737 = vmatpush.msrb.mxu2 %v10493_v22  ;;  %5780 = vmatpush.msrb.mxu3 %v10446_v0  ;;  %v5972_v15 = vsub.f32 %v10545_v43, %v11091_v57 }
 0x323   :  { %5579 = vmatmul.f32.vlgmr.msrb.gmra.mxu0 %v11509_v32  ;;  %5668 = vmatpush.msrb.mxu1 %v5667_v34  ;;  %v4681_v53 = vpop.f32.mrf.mxu1  ;;  %v5684_v34 = vsub.f32 %v10531_v5, %v11083_v56 }
 0x324   :  { %5803 = vmatpush.msra.mxu0 %v5593_v21  ;;  %5740 = vmatpush.msrb.mxu2 %v10514_v38  ;;  %v4682_v63 = vadd.f32 %v4681_v53, %v4637_v10  ;;  %v4754_v32 = vpop.f32.mrf.mxu2  ;;  %v10588_v21 = vand.u32 4294901760, %v299_v20  ;;  %v11510_v10 = vld [vmem:[#allocation29_spill] sm:$0xff]  ;;  %v291_v53 = vld [vmem:[#allocation5 + $0x6f8] sm:$0xff] }
 0x325   :  { %5782 = vmatpush.msrb.mxu3 %v10467_v37  ;;  %5674 = vmatpush.msrb.mxu1 %v5673_v59  ;;  %v5967_v59 = vand.u32 4294901760, %v5966_v9  ;;  %v5685_v48 = vand.u32 4294901760, %v5684_v34  ;;  %v10615_v34 = vand.u32 4294901760, %v291_v53 }
 0x326   :  { %5807 = vmatpush.msra.mxu0 %v5599_v62  ;;  %5743 = vmatpush.msrb.mxu2 %v10531_v5  ;;  %v4755_v56 = vadd.f32 %v4754_v32, %v4682_v63  ;;  %v10600_v62 = vsub.f32 %v303_v11, %v10578_v1  ;;  %v10602_v63 = vand.u32 4294901760, %v295_v28  ;;  %v5978_v32 = vsub.f32 %v10558_v54, %v11087_v61 }
 0x327   :  { %5784 = vmatpush.msrb.mxu3 %v10490_v58  ;;  %5746 = vmatmul.f32.vlgmr.msrb.gmra.mxu2 %v11510_v10  ;;  %v4795_v18 = vpop.f32.mrf.mxu3  ;;  %v11086_v10 = vand.u32 4294901760, %v10583_v49  ;;  %v10613_v11 = vsub.f32 %v299_v20, %v10588_v21  ;;  %v10626_v20 = vand.u32 4294901760, %v287_v46 }
 0x328   :  { %5811 = vmatpush.msra.mxu0 %v5605_v6  ;;  %5915 = vmatpush.msra.mxu2 %v10503_v16  ;;  %v4796_v9 = vadd.f32 %v4795_v18, %v4755_v56  ;;  %v11511_v6 = vld [vmem:[#allocation30_spill] sm:$0xff]  ;;  %v5973_v18 = vand.u32 4294901760, %v5972_v15  ;;  %v5984_v56 = vsub.f32 %v10570_v35, %v11085_v4  ;;  %v11088_v26 = vand.u32 4294901760, %v10600_v62 }
 0x329   :  { %5680 = vmatpush.msrb.mxu1 %v5679_v39  ;;  %5786 = vmatpush.msrb.mxu3 %v10507_v14  ;;  %v283_v39 = vld [vmem:[#allocation5 + $0x6b8] sm:$0xff]  ;;  %v5990_v15 = vsub.f32 %v10583_v49, %v11086_v10 }
 0x32a   :  { %5790 = vmatmul.f32.vlgmr.msrb.gmra.mxu3 %v11511_v6  ;;  %5815 = vmatpush.msra.mxu0 %v5611_v13  ;;  %6292 = vst [vmem:[#allocation8 + $0x30] sm:$0xff] %v4796_v9  ;;  %v11512_v6 = vld [vmem:[#allocation36_spill] sm:$0xff]  ;;  %v10624_v13 = vsub.f32 %v295_v28, %v10602_v63  ;;  %v11089_v28 = vand.u32 4294901760, %v10613_v11  ;;  %v10640_v4 = vand.u32 4294901760, %v283_v39 }
 0x32b   :  { %5917 = vmatpush.msra.mxu2 %v10526_v55  ;;  %5968 = vmatpush.msra.mxu3 %v5967_v59  ;;  %v11513_v9 = vld [vmem:[#allocation28_spill] sm:$0xff]  ;;  %v5979_v59 = vand.u32 4294901760, %v5978_v32  ;;  %v275_v32 = vld [vmem:[#allocation5 + $0x678] sm:$0xff] }
 0x32c   :  { %5686 = vmatpush.msrb.mxu1 %v5685_v48  ;;  %5587 = vmatmul.f32.gmra.mxu0 %v11512_v6  ;;  %v279_v48 = vld [vmem:[#allocation5 + $0x698] sm:$0xff]  ;;  %v10638_v6 = vsub.f32 %v291_v53, %v10615_v34  ;;  %v11090_v10 = vand.u32 4294901760, %v10624_v13  ;;  %v10651_v53 = vsub.f32 %v287_v46, %v10626_v20  ;;  %v10664_v46 = vsub.f32 %v283_v39, %v10640_v4 }
 0x32d   :  { %5688 = vmatmul.f32.vlgmr.msrb.gmra.mxu1 %v11513_v9  ;;  %5819 = vmatpush.msra.mxu0 %v5617_v60  ;;  %v5985_v60 = vand.u32 4294901760, %v5984_v56  ;;  %v10653_v61 = vand.u32 4294901760, %v279_v48  ;;  %v11516_v56 = vand.u32 4294901760, %v10400_v24  ;;  %v11518_v24 = vand.u32 4294901760, %v10414_v36  ;;  %v11519_v36 = vld [vmem:[#allocation31_spill] sm:$0xff] }
 0x32e   :  { %5874 = vmatpush.msra.mxu1 %v10293_v50  ;;  %5919 = vmatpush.msra.mxu2 %v10538_v45  ;;  %v5996_v50 = vsub.f32 %v10600_v62, %v11088_v26  ;;  %v10666_v26 = vand.u32 4294901760, %v275_v32 }
 0x32f   :  { %5974 = vmatpush.msra.mxu3 %v5973_v18  ;;  %5823 = vmatpush.msra.mxu0 %v11514_v44  ;;  %v5991_v18 = vand.u32 4294901760, %v5990_v15  ;;  %v11092_v44 = vand.u32 4294901760, %v10638_v6  ;;  %v11517_v15 = vld [vmem:[#allocation35_spill] sm:$0xff]  ;;  %v10677_v39 = vsub.f32 %v279_v48, %v10653_v61 }
 0x330   :  { %5876 = vmatpush.msra.mxu1 %v10301_v25  ;;  %5921 = vmatpush.msra.mxu2 %v10547_v47  ;;  %v6002_v25 = vsub.f32 %v10613_v11, %v11089_v28  ;;  %v267_v28 = vld [vmem:[#allocation5 + $0x638] sm:$0xff]  ;;  %v10689_v48 = vsub.f32 %v275_v32, %v10666_v26  ;;  %v11521_v32 = vand.u32 4294901760, %v10443_v51  ;;  %v11522_v51 = vand.u32 4294901760, %v10455_v2 }
 0x331   :  { %5980 = vmatpush.msra.mxu3 %v5979_v59  ;;  %5751 = vmatmul.f32.gmra.mxu2 %v11515_v30  ;;  %v271_v59 = vld [vmem:[#allocation5 + $0x658] sm:$0xff]  ;;  %v6008_v30 = vsub.f32 %v10624_v13, %v11090_v10  ;;  %v10694_v57 = vand.u32 4294901760, %v267_v28 }
 0x332   :  { %5827 = vmatpush.msra.mxu0 %v11516_v56  ;;  %5878 = vmatpush.msra.mxu1 %v10310_v8  ;;  %v5997_v8 = vand.u32 4294901760, %v5996_v50  ;;  %v6019_v56 = vand.u32 4294901760, %v10651_v53  ;;  %v6003_v50 = vand.u32 4294901760, %v6002_v25  ;;  %v263_v10 = vld [vmem:[#allocation5 + $0x618] sm:$0xff] }
 0x333   :  { %5923 = vmatpush.msra.mxu2 %v10560_v19  ;;  %5986 = vmatpush.msra.mxu3 %v5985_v60  ;;  %v10681_v60 = vand.u32 4294901760, %v271_v59 }
 0x334   :  { %5796 = vmatmul.f32.gmra.mxu3 %v11517_v15  ;;  %5831 = vmatpush.msra.mxu0 %v11518_v24  ;;  %v6014_v15 = vsub.f32 %v10638_v6, %v11092_v44  ;;  %v6025_v24 = vand.u32 4294901760, %v10664_v46  ;;  %v6020_v25 = vsub.f32 %v10651_v53, %v6019_v56  ;;  %v6031_v44 = vand.u32 4294901760, %v10677_v39 }
 0x335   :  { %5880 = vmatpush.msra.mxu1 %v10329_v17  ;;  %5925 = vmatpush.msra.mxu2 %v10578_v1  ;;  %v11520_v17 = vand.u32 4294901760, %v10430_v52  ;;  %v10705_v52 = vsub.f32 %v271_v59, %v10681_v60 }
 0x336   :  { %5992 = vmatpush.msra.mxu3 %v5991_v18  ;;  %5692 = vmatmul.f32.gmra.mxu1 %v11519_v36  ;;  %v6009_v18 = vand.u32 4294901760, %v6008_v30  ;;  %v6026_v30 = vsub.f32 %v10664_v46, %v6025_v24  ;;  %v6021_v59 = vand.u32 4294901760, %v6020_v25  ;;  %v11524_v25 = vand.u32 4294901760, %v10473_v12 }
 0x337   :  { %5835 = vmatpush.msra.mxu0 %v11520_v17  ;;  %5882 = vmatpush.msra.mxu1 %v10334_v33  ;;  %v10707_v33 = vand.u32 4294901760, %v263_v10  ;;  %v6037_v17 = vand.u32 4294901760, %v10689_v48  ;;  %v6043_v2 = vand.u32 4294901760, %v10705_v52 }
 0x338   :  { %5927 = vmatpush.msra.mxu2 %v10588_v21  ;;  %5998 = vmatpush.msra.mxu3 %v5997_v8  ;;  %v6015_v8 = vand.u32 4294901760, %v6014_v15  ;;  %v11523_v15 = vand.u32 4294901760, %v10461_v31 }
 0x339   :  { %5839 = vmatpush.msra.mxu0 %v11521_v32  ;;  %5884 = vmatpush.msra.mxu1 %v10353_v40  ;;  %v10718_v40 = vsub.f32 %v267_v28, %v10694_v57  ;;  %v6027_v28 = vand.u32 4294901760, %v6026_v30  ;;  %v6044_v32 = vsub.f32 %v10705_v52, %v6043_v2 }
 0x33a   :  { %5929 = vmatpush.msra.mxu2 %v10602_v63  ;;  %6004 = vmatpush.msra.mxu3 %v6003_v50  ;;  %v6032_v50 = vsub.f32 %v10677_v39, %v6031_v44 }
 0x33b   :  { %5843 = vmatpush.msra.mxu0 %v11522_v51  ;;  %5886 = vmatpush.msra.mxu1 %v10372_v27  ;;  %v10729_v27 = vsub.f32 %v263_v10, %v10707_v33  ;;  %v11525_v10 = vand.u32 4294901760, %v10493_v22  ;;  %v6045_v30 = vand.u32 4294901760, %v6044_v32  ;;  %v11530_v51 = vld [vmem:[#allocation37_spill] sm:$0xff] }
 0x33c   :  { %5931 = vmatpush.msra.mxu2 %v10615_v34  ;;  %6010 = vmatpush.msra.mxu3 %v6009_v18  ;;  %v6038_v18 = vsub.f32 %v10689_v48, %v6037_v17  ;;  %v6033_v31 = vand.u32 4294901760, %v6032_v50 }
 0x33d   :  { %5847 = vmatpush.msra.mxu0 %v11523_v15  ;;  %5888 = vmatpush.msra.mxu1 %v10382_v7  ;;  %v6049_v7 = vand.u32 4294901760, %v10718_v40  ;;  %v6055_v12 = vand.u32 4294901760, %v10729_v27 }
 0x33e   :  { %5933 = vmatpush.msra.mxu2 %v10626_v20  ;;  %6016 = vmatpush.msra.mxu3 %v6015_v8  ;;  %v11526_v8 = vand.u32 4294901760, %v10514_v38 }
 0x33f   :  { %5851 = vmatpush.msra.mxu0 %v11524_v25  ;;  %5890 = vmatpush.msra.mxu1 %v10397_v23  ;;  %v6039_v23 = vand.u32 4294901760, %v6038_v18  ;;  %v6050_v22 = vsub.f32 %v10718_v40, %v6049_v7  ;;  %v6056_v38 = vsub.f32 %v10729_v27, %v6055_v12 }
 0x340   :  { %5935 = vmatpush.msra.mxu2 %v10640_v4  ;;  %6022 = vmatpush.msra.mxu3 %v6021_v59 }
 0x341   :  { %5855 = vmatpush.msra.mxu0 %v11525_v10  ;;  %5892 = vmatpush.msra.mxu1 %v10410_v41  ;;  %v11527_v41 = vand.u32 4294901760, %v10531_v5  ;;  %v11528_v5 = vld [vmem:[#allocation42_spill] sm:$0xff] }
 0x342   :  { %5937 = vmatpush.msra.mxu2 %v10653_v61  ;;  %6028 = vmatpush.msra.mxu3 %v6027_v28 }
 0x343   :  { %5859 = vmatpush.msra.mxu0 %v11526_v8  ;;  %5894 = vmatpush.msra.mxu1 %v10426_v42  ;;  %v6051_v42 = vand.u32 4294901760, %v6050_v22 }
 0x344   :  { %5939 = vmatpush.msra.mxu2 %v10666_v26  ;;  %6034 = vmatpush.msra.mxu3 %v6033_v31 }
 0x345   :  { %5863 = vmatpush.msra.mxu0 %v11527_v41  ;;  %5896 = vmatpush.msra.mxu1 %v10434_v3  ;;  %v6057_v3 = vand.u32 4294901760, %v6056_v38 }
 0x346   :  { %5941 = vmatpush.msra.mxu2 %v10681_v60  ;;  %6040 = vmatpush.msra.mxu3 %v6039_v23 }
 0x347   :  { %5865 = vmatmul.f32.vlgmr.msra.gmra.mxu0 %v11513_v9  ;;  %5898 = vmatpush.msra.mxu1 %v10446_v0  ;;  %v11529_v0 = vand.u32 4294901760, %v10524_v29 }
 0x348   :  { %6070 = vmatpush.msrb.mxu0 %v10524_v29  ;;  %5943 = vmatpush.msra.mxu2 %v10694_v57  ;;  %v11533_v29 = vand.u32 4294901760, %v10570_v35 }
 0x349   :  { %6046 = vmatpush.msra.mxu3 %v6045_v30  ;;  %5900 = vmatpush.msra.mxu1 %v10467_v37  ;;  %v11531_v37 = vand.u32 4294901760, %v10545_v43 }
 0x34a   :  { %6073 = vmatpush.msrb.mxu0 %v10545_v43  ;;  %5945 = vmatpush.msra.mxu2 %v10707_v33  ;;  %v11536_v43 = vld [vmem:[#allocation40_spill] sm:$0xff] }
 0x34b   :  { %6052 = vmatpush.msra.mxu3 %v6051_v42  ;;  %5951 = vmatmul.f32.vlgmr.msra.gmra.mxu2 %v11528_v5 }
 0x34c   :  { %6076 = vmatpush.msrb.mxu0 %v10558_v54  ;;  %6175 = vmatpush.msrb.mxu2 %v11529_v0 }
 0x34d   :  { %5902 = vmatpush.msra.mxu1 %v10490_v58  ;;  %6058 = vmatpush.msra.mxu3 %v6057_v3  ;;  %v11532_v58 = vand.u32 4294901760, %v10558_v54  ;;  %v11541_v54 = vld [vmem:[#allocation38_spill] sm:$0xff] }
 0x34e   :  { %6060 = vmatmul.f32.vlgmr.msra.gmra.mxu3 %v11530_v51  ;;  %6079 = vmatpush.msrb.mxu0 %v10570_v35  ;;  %v11544_v35 = vld [vmem:[#allocation43_spill] sm:$0xff] }
 0x34f   :  { %6179 = vmatpush.msrb.mxu2 %v11531_v37  ;;  %6246 = vmatpush.msrb.mxu3 %v10503_v16 }
 0x350   :  { %5904 = vmatpush.msra.mxu1 %v10507_v14  ;;  %5869 = vmatmul.f32.gmra.mxu0 %v11519_v36  ;;  %v11534_v14 = vld [vmem:[#allocation44_spill] sm:$0xff] }
 0x351   :  { %5906 = vmatmul.f32.vlgmr.msra.gmra.mxu1 %v11513_v9  ;;  %6082 = vmatpush.msrb.mxu0 %v10583_v49 }
 0x352   :  { %6128 = vmatpush.msrb.mxu1 %v10503_v16  ;;  %6183 = vmatpush.msrb.mxu2 %v11532_v58  ;;  %v11535_v16 = vand.u32 4294901760, %v10583_v49  ;;  %v11538_v49 = vand.u32 4294901760, %v10613_v11 }
 0x353   :  { %6248 = vmatpush.msrb.mxu3 %v10526_v55  ;;  %6085 = vmatpush.msrb.mxu0 %v10600_v62 }
 0x354   :  { %6130 = vmatpush.msrb.mxu1 %v10526_v55  ;;  %6187 = vmatpush.msrb.mxu2 %v11533_v29  ;;  %v11537_v55 = vand.u32 4294901760, %v10600_v62 }
 0x355   :  { %6250 = vmatpush.msrb.mxu3 %v10538_v45  ;;  %5959 = vmatmul.f32.gmra.mxu2 %v11534_v14 }
 0x356   :  { %6088 = vmatpush.msrb.mxu0 %v10613_v11  ;;  %6132 = vmatpush.msrb.mxu1 %v10538_v45  ;;  %v11540_v45 = vand.u32 4294901760, %v10638_v6 }
 0x357   :  { %6191 = vmatpush.msrb.mxu2 %v11535_v16  ;;  %6252 = vmatpush.msrb.mxu3 %v10547_v47 }
 0x358   :  { %6064 = vmatmul.f32.gmra.mxu3 %v11536_v43  ;;  %6091 = vmatpush.msrb.mxu0 %v10624_v13 }
 0x359   :  { %6134 = vmatpush.msrb.mxu1 %v10547_v47  ;;  %6195 = vmatpush.msrb.mxu2 %v11537_v55  ;;  %v11539_v47 = vand.u32 4294901760, %v10624_v13  ;;  %v5047_v62 = vpop.f32.mrf.mxu3 }
 0x35a   :  { %6254 = vmatpush.msrb.mxu3 %v10560_v19  ;;  %5910 = vmatmul.f32.gmra.mxu1 %v11519_v36 }
 0x35b   :  { %6094 = vmatpush.msrb.mxu0 %v10638_v6  ;;  %6136 = vmatpush.msrb.mxu1 %v10560_v19  ;;  %v11543_v19 = vld [vmem:[#allocation41_spill] sm:$0xff] }
 0x35c   :  { %6199 = vmatpush.msrb.mxu2 %v11538_v49  ;;  %6256 = vmatpush.msrb.mxu3 %v10578_v1 }
 0x35d   :  { %6097 = vmatpush.msrb.mxu0 %v10651_v53  ;;  %6138 = vmatpush.msrb.mxu1 %v10578_v1  ;;  %v4836_v1 = vpop.f32.mrf.mxu0 }
 0x35e   :  { %6203 = vmatpush.msrb.mxu2 %v11539_v47  ;;  %6258 = vmatpush.msrb.mxu3 %v10588_v21 }
 0x35f   :  { %6100 = vmatpush.msrb.mxu0 %v10664_v46  ;;  %6140 = vmatpush.msrb.mxu1 %v10588_v21  ;;  %v4945_v21 = vpop.f32.mrf.mxu1 }
 0x360   :  { %6207 = vmatpush.msrb.mxu2 %v11540_v45  ;;  %6260 = vmatpush.msrb.mxu3 %v10602_v63 }
 0x361   :  { %6103 = vmatpush.msrb.mxu0 %v10677_v39  ;;  %6142 = vmatpush.msrb.mxu1 %v10602_v63 }
 0x362   :  { %6211 = vmatpush.msrb.mxu2 %v6019_v56  ;;  %6262 = vmatpush.msrb.mxu3 %v10615_v34 }
 0x363   :  { %6106 = vmatpush.msrb.mxu0 %v10689_v48  ;;  %6144 = vmatpush.msrb.mxu1 %v10615_v34 }
 0x364   :  { %6215 = vmatpush.msrb.mxu2 %v6025_v24  ;;  %6264 = vmatpush.msrb.mxu3 %v10626_v20 }
 0x365   :  { %6109 = vmatpush.msrb.mxu0 %v10705_v52  ;;  %6146 = vmatpush.msrb.mxu1 %v10626_v20  ;;  %v6322_v20 = vld [vmem:[#allocation7] sm:$0xf] }
 0x366   :  { %6219 = vmatpush.msrb.mxu2 %v6031_v44  ;;  %6266 = vmatpush.msrb.mxu3 %v10640_v4  ;;  %v329_v9 = vperm.slane %v6322_v20, 3 }
 0x367   :  { %6112 = vmatpush.msrb.mxu0 %v10718_v40  ;;  %6148 = vmatpush.msrb.mxu1 %v10640_v4  ;;  %v5003_v4 = vpop.f32.mrf.mxu2  ;;  %v4949_v63 = vpop.f32.mrf.mxu1 }
 0x368   :  { %6223 = vmatpush.msrb.mxu2 %v6037_v17  ;;  %6268 = vmatpush.msrb.mxu3 %v10653_v61  ;;  %v4837_v44 = vadd.f32 %v4836_v1, %v329_v9 }
 0x369   :  { %6115 = vmatpush.msrb.mxu0 %v10729_v27  ;;  %6150 = vmatpush.msrb.mxu1 %v10653_v61  ;;  %v11542_v61 = vld [vmem:[#allocation39_spill] sm:$0xff] }
 0x36a   :  { %6227 = vmatpush.msrb.mxu2 %v6043_v2  ;;  %6270 = vmatpush.msrb.mxu3 %v10666_v26  ;;  %v4946_v39 = vadd.f32 %v4945_v21, %v4837_v44 }
 0x36b   :  { %6118 = vmatmul.f32.vlgmr.msrb.gmra.mxu0 %v11541_v54  ;;  %6152 = vmatpush.msrb.mxu1 %v10666_v26  ;;  %v5053_v26 = vpop.f32.mrf.mxu3 }
 0x36c   :  { %6231 = vmatpush.msrb.mxu2 %v6049_v7  ;;  %6272 = vmatpush.msrb.mxu3 %v10681_v60  ;;  %v5004_v24 = vadd.f32 %v5003_v4, %v4946_v39 }
 0x36d   :  { %6154 = vmatpush.msrb.mxu1 %v10681_v60 }
 0x36e   :  { %6235 = vmatpush.msrb.mxu2 %v6055_v12  ;;  %6274 = vmatpush.msrb.mxu3 %v10694_v57  ;;  %v5048_v17 = vadd.f32 %v5047_v62, %v5004_v24 }
 0x36f   :  { %6237 = vmatmul.f32.vlgmr.msrb.gmra.mxu2 %v11530_v51  ;;  %6156 = vmatpush.msrb.mxu1 %v10694_v57  ;;  %v4844_v57 = vpop.f32.mrf.mxu0  ;;  %v5008_v11 = vpop.f32.mrf.mxu2 }
 0x370   :  { %6276 = vmatpush.msrb.mxu3 %v10707_v33  ;;  %v5163_v13 = vpop.f32.mrf.mxu1  ;;  %v4845_v60 = vadd.f32 %v4844_v57, %v329_v9 }
 0x371   :  { %6278 = vmatmul.f32.vlgmr.msrb.gmra.mxu3 %v11530_v51  ;;  %6158 = vmatpush.msrb.mxu1 %v10707_v33 }
 0x372   :  { %6162 = vmatmul.f32.vlgmr.msrb.gmra.mxu1 %v11542_v61  ;;  %v4950_v48 = vadd.f32 %v4949_v63, %v4845_v60 }
 0x373   :  { %6123 = vmatmul.f32.gmra.mxu0 %v11543_v19  ;;  %v5317_v46 = vpop.f32.mrf.mxu3 }
 0x374   :  { %v5009_v40 = vadd.f32 %v5008_v11, %v4950_v48 }
 0x376   :  { %v5054_v50 = vadd.f32 %v5053_v26, %v5009_v40 }
 0x377   :  { %6241 = vmatmul.f32.gmra.mxu2 %v11536_v43  ;;  %v5122_v34 = vpop.f32.mrf.mxu0  ;;  %v5208_v6 = vpop.f32.mrf.mxu2 }
 0x378   :  { %v5123_v15 = vadd.f32 %v5122_v34, %v5048_v17 }
 0x379   :  { %6282 = vmatmul.f32.gmra.mxu3 %v11536_v43 }
 0x37a   :  { %6168 = vmatmul.f32.gmra.mxu1 %v11544_v35  ;;  %v5164_v18 = vadd.f32 %v5163_v13, %v5123_v15 }
 0x37b   :  { %v5167_v56 = vpop.f32.mrf.mxu1 }
 0x37c   :  { %v5209_v31 = vadd.f32 %v5208_v6, %v5164_v18 }
 0x37e   :  { %v5318_v23 = vadd.f32 %v5317_v46, %v5209_v31 }
 0x37f   :  { %v5126_v53 = vpop.f32.mrf.mxu0  ;;  %v5216_v36 = vpop.f32.mrf.mxu2 }
 0x380   :  { %v5321_v52 = vpop.f32.mrf.mxu3  ;;  %v5127_v25 = vadd.f32 %v5126_v53, %v5054_v50 }
 0x382   :  { %v5168_v10 = vadd.f32 %v5167_v56, %v5127_v25 }
 0x384   :  { %v5217_v8 = vadd.f32 %v5216_v36, %v5168_v10 }
 0x386   :  { %v5419_v59 = vpop.f32.mrf.mxu1  ;;  %v5322_v38 = vadd.f32 %v5321_v52, %v5217_v8 }
 0x387   :  { %v5375_v33 = vpop.f32.mrf.mxu0  ;;  %v5494_v2 = vpop.f32.mrf.mxu2 }
 0x388   :  { %v5376_v41 = vadd.f32 %v5375_v33, %v5318_v23 }
 0x389   :  { %v5535_v28 = vpop.f32.mrf.mxu3 }
 0x38a   :  { %v5420_v42 = vadd.f32 %v5419_v59, %v5376_v41 }
 0x38c   :  { %v5495_v0 = vadd.f32 %v5494_v2, %v5420_v42 }
 0x38e   :  { %v5536_v58 = vadd.f32 %v5535_v28, %v5495_v0 }
 0x38f   :  { %v5380_v27 = vpop.f32.mrf.mxu0  ;;  %v5425_v7 = vpop.f32.mrf.mxu1 }
 0x390   :  { %v5498_v12 = vpop.f32.mrf.mxu2  ;;  %v5381_v51 = vadd.f32 %v5380_v27, %v5322_v38 }
 0x392   :  { %v5426_v29 = vadd.f32 %v5425_v7, %v5381_v51 }
 0x393   :  { %v5539_v22 = vpop.f32.mrf.mxu3 }
 0x394   :  { %v5499_v55 = vadd.f32 %v5498_v12, %v5426_v29 }
 0x396   :  { %v5540_v54 = vadd.f32 %v5539_v22, %v5499_v55 }
 0x3a0   :  { %v5580_v32 = vpop.f32.mrf.mxu0 }
 0x3a1   :  { %v5581_v16 = vadd.f32 %v5580_v32, %v5536_v58 }
 0x3a9   :  { %v5588_v5 = vpop.f32.mrf.mxu0 }
 0x3aa   :  { %v5689_v30 = vpop.f32.mrf.mxu1  ;;  %v5747_v3 = vpop.f32.mrf.mxu2  ;;  %v5589_v35 = vadd.f32 %v5588_v5, %v5540_v54 }
 0x3ab   :  { %v5690_v49 = vadd.f32 %v5689_v30, %v5581_v16 }
 0x3ad   :  { %v5791_v37 = vpop.f32.mrf.mxu3  ;;  %v5748_v61 = vadd.f32 %v5747_v3, %v5690_v49 }
 0x3af   :  { %v5792_v1 = vadd.f32 %v5791_v37, %v5748_v61 }
 0x3b3   :  { %v5693_v14 = vpop.f32.mrf.mxu1 }
 0x3b4   :  { %v5752_v47 = vpop.f32.mrf.mxu2  ;;  %v5694_v21 = vadd.f32 %v5693_v14, %v5589_v35 }
 0x3b6   :  { %v5753_v11 = vadd.f32 %v5752_v47, %v5694_v21 }
 0x3b7   :  { %v5797_v45 = vpop.f32.mrf.mxu3 }
 0x3b8   :  { %v5798_v13 = vadd.f32 %v5797_v45, %v5753_v11 }
 0x3c4   :  { %v5866_v43 = vpop.f32.mrf.mxu0 }
 0x3c5   :  { %v5867_v62 = vadd.f32 %v5866_v43, %v5792_v1 }
 0x3cd   :  { %v5870_v57 = vpop.f32.mrf.mxu0 }
 0x3ce   :  { %v5907_v19 = vpop.f32.mrf.mxu1  ;;  %v5952_v4 = vpop.f32.mrf.mxu2  ;;  %v5871_v6 = vadd.f32 %v5870_v57, %v5798_v13 }
 0x3cf   :  { %v5908_v34 = vadd.f32 %v5907_v19, %v5867_v62 }
 0x3d1   :  { %v6061_v63 = vpop.f32.mrf.mxu3  ;;  %v5953_v20 = vadd.f32 %v5952_v4, %v5908_v34 }
 0x3d3   :  { %v6062_v44 = vadd.f32 %v6061_v63, %v5953_v20 }
 0x3d7   :  { %v5911_v26 = vpop.f32.mrf.mxu1 }
 0x3d8   :  { %v5960_v53 = vpop.f32.mrf.mxu2  ;;  %v5912_v46 = vadd.f32 %v5911_v26, %v5871_v6 }
 0x3da   :  { %v5961_v36 = vadd.f32 %v5960_v53, %v5912_v46 }
 0x3db   :  { %v6065_v56 = vpop.f32.mrf.mxu3 }
 0x3dc   :  { %v6066_v17 = vadd.f32 %v6065_v56, %v5961_v36 }
 0x3e8   :  { %v6119_v9 = vpop.f32.mrf.mxu0 }
 0x3e9   :  { %v6120_v39 = vadd.f32 %v6119_v9, %v6062_v44 }
 0x3ef   :  { %v6163_v60 = vpop.f32.mrf.mxu1 }
 0x3f0   :  { %v6164_v24 = vadd.f32 %v6163_v60, %v6120_v39  ;;  %v6124_v52 = vpop.f32.mrf.mxu0 }
 0x3f1   :  { %v6125_v50 = vadd.f32 %v6124_v52, %v6066_v17 }
 0x3f2   :  { %v6238_v48 = vpop.f32.mrf.mxu2 }
 0x3f3   :  { %v6239_v33 = vadd.f32 %v6238_v48, %v6164_v24 }
 0x3f4   :  { %v6279_v40 = vpop.f32.mrf.mxu3 }
 0x3f5   :  { %v6280_v59 = vadd.f32 %v6279_v40, %v6239_v33 }
 0x3f7   :  { %6289 = vst [vmem:[#allocation8 + $0x18] sm:$0xff] %v6280_v59  ;;  %v6169_v15 = vpop.f32.mrf.mxu1 }
 0x3f8   :  { %v6170_v2 = vadd.f32 %v6169_v15, %v6125_v50 }
 0x3fa   :  { %v6242_v27 = vpop.f32.mrf.mxu2 }
 0x3fb   :  { %v6243_v28 = vadd.f32 %v6242_v27, %v6170_v2 }
 0x3fc   :  { %v6283_v18 = vpop.f32.mrf.mxu3 }
 0x3fd   :  { %v6284_v25 = vadd.f32 %v6283_v18, %v6243_v28 }
 0x3ff   :  { %6293 = vst [vmem:[#allocation8 + $0x38] sm:$0xff] %v6284_v25 }
 0x400   :  { %6306 = dma.vmem_to_hbm [thread:$0]  %s6299_s27, 1024, %s6301_s30, [#allocation4], %s6426_s20, %s6426_s20, %s6427_s21  }
 0x401   :  { %6423 = dma.done.wait [#allocation4], 1024  }
 0x402   :  { %6424 = vsyncadd [#allocation4], 4294966272 }
 0x403   :  { %6311 = vsyncpa [#allocation3], 1 }
 0x404   :  { %6312 = vsyncpa [#allocation6], 1 }
 0x405   :  { %6313 = vsyncpa [#allocation4], 1 }

</bundles_post_ra>
